<compile_context>
chip_gen: v5e
topology: v5e:2x2
jax: 0.10.0
libtpu: 0.0.40
codegen_flags: <defaults>
</compile_context>

<pallas_src>
import functools
import math

import numpy as np

import jax
import jax.numpy as jnp
from jax.experimental import pallas as pl
from jax.experimental.pallas import tpu as pltpu


def _round_up(x, m):
    return ((x + m - 1) // m) * m


# --------------------------------------------------------------------------- #
# Kernel                                                                       #
# --------------------------------------------------------------------------- #
def _edge_kernel(cd, pack, s_dim, d_dim, dims, out_dim, *refs):
    """One grid step = tm edges; `pack` consecutive edges share one lane-packed row.

    refs = (src_ref, dest_ref, vec_ref, *weight_refs, out_ref)
      src_ref  : (g, pack*s_dim)   compute-dtype
      dest_ref : (g, pack*d_dim)   compute-dtype
      vec_ref  : (n_vec, Wmax)     f32  (lane-tiled biases / LN gamma, beta)
      weights  : block-diagonal (kron) matrices in compute-dtype
      out_ref  : (g, pack*out_dim) f32
    """
    src_ref, dest_ref, vec_ref = refs[0], refs[1], refs[2]
    out_ref = refs[-1]
    w_refs = refs[3:-1]
    n_mid = len(dims) - 1

    def mm(x, w_ref):
        # MXU matmul: operands in compute dtype, f32 accumulation.
        return jnp.dot(x.astype(cd), w_ref[...],
                       preferred_element_type=jnp.float32)

    def vec(row, width):
        # (1, width) f32 row of the packed bias / LayerNorm-vector table.
        return vec_ref[row:row + 1, :width]

    def seg_layernorm(y, d, gamma, beta):
        # Exact per-edge LayerNorm on lane-packed activations: each edge owns d
        # consecutive lanes.  Single-pass stats, torch eps=1e-5, affine in f32.
        segs = []
        for k in range(pack):
            seg = y[:, k * d:(k + 1) * d]
            m = jnp.mean(seg, axis=-1, keepdims=True)
            v = jnp.mean(seg * seg, axis=-1, keepdims=True) - m * m
            segs.append((seg - m) * jax.lax.rsqrt(jnp.maximum(v, 0.0) + 1e-5))
        yn = segs[0] if pack == 1 else jnp.concatenate(segs, axis=-1)
        return yn * gamma + beta

    wp, vr = 0, 0

    # ---- block 0: Linear(in_dim, dims[0]) [+ folded skip] ; ReLU -------------
    w0s, w0d = w_refs[wp], w_refs[wp + 1]
    wp += 2
    b0 = vec(vr, pack * dims[0])
    vr += 1
    x = jnp.maximum(mm(src_ref[...], w0s) + mm(dest_ref[...], w0d) + b0, 0.0)

    # ---- middle blocks: Lin -> ReLU -> Lin -> LayerNorm -> (+res) -> ReLU ----
    for b in range(n_mid):
        d_in, d = dims[b], dims[b + 1]
        wa, wb = w_refs[wp], w_refs[wp + 1]
        wp += 2
        ba, bb = vec(vr, pack * d), vec(vr + 1, pack * d)
        gamma, beta = vec(vr + 2, pack * d), vec(vr + 3, pack * d)
        vr += 4
        y = jnp.maximum(mm(x, wa) + ba, 0.0)
        y = mm(y, wb) + bb
        y = seg_layernorm(y, d, gamma, beta)
        if d == d_in:                       # torch: residual iff shapes match
            y = y + x
        x = jnp.maximum(y, 0.0)

    # ---- final block: Linear(dims[-1], out_dim) [+res]; identity activation --
    wf = w_refs[wp]
    bf = vec(vr, pack * out_dim)
    y = mm(x, wf) + bf
    if out_dim == dims[-1]:
        y = y + x
    out_ref[...] = y.astype(out_ref.dtype)


# --------------------------------------------------------------------------- #
# Wrapper                                                                      #
# --------------------------------------------------------------------------- #
def edge_model_forward(src, dest, params, dims, out_dim, *,
                       rows_per_step=2048, compute_dtype=jnp.float32):
    """EdgeModel.forward(src, dest) on TPU via a single Pallas kernel.

    compute_dtype=bf16 halves input/weight DMA bytes on v5e, v6e and v7x alike
    (accumulation stays f32); float32 gives exact parity with the torch model.
    """
    N, s_dim = src.shape
    N2, d_dim = dest.shape
    assert N == N2, "src and dest must have the same number of edges"
    in_dim = s_dim + d_dim
    dims = tuple(int(d) for d in dims)
    out_dim = int(out_dim)
    n_mid = len(dims) - 1
    f32 = jnp.float32
    cd = np.dtype(compute_dtype)

    # --- lane-packing factor: pack P consecutive edges per row so the output
    #     block is 128-lane dense.  Wrapper (un)pack is a free row-major reshape.
    pack = 128 // math.gcd(128, out_dim)
    max_dim = max([in_dim, out_dim] + list(dims))
    while pack > 1 and (pack * max_dim) ** 2 * cd.itemsize > 4 * 1024 * 1024:
        pack //= 2                       # keep the widest kron'd weight <= 4 MiB

    # --- row tile: big tiles amortize the ~0.35us/step overhead; keep >= 2 grid
    #     steps for v7x's two TensorCores; lane-padded VMEM accounting.
    unit = 8 * pack
    tm = _round_up(max(1, min(rows_per_step, N)), unit)
    tm = min(tm, max(unit, _round_up(pl.cdiv(N, 2), unit)))

    def act_io_bytes(tm_rows):
        g_rows = tm_rows // pack
        io = 2 * g_rows * pack * (s_dim + d_dim) * cd.itemsize   # 2x-buffered in
        io += 2 * g_rows * pack * out_dim * 4                    # 2x-buffered out
        act = 8 * g_rows * pack * max_dim * 4                    # live f32 temps
        return io + act

    while tm > unit and act_io_bytes(tm) > 20 * 1024 * 1024:
        tm = _round_up(tm // 2, unit)

    n_pad = _round_up(N, tm)
    n_steps = n_pad // tm
    g = tm // pack

    if n_pad != N:
        # Padded rows: finite (LayerNorm with var=0), sliced off below.
        src = jnp.pad(src, ((0, n_pad - N), (0, 0)))
        dest = jnp.pad(dest, ((0, n_pad - N), (0, 0)))
    src_p = src.reshape(n_pad // pack, pack * s_dim).astype(cd)     # free reshape
    dest_p = dest.reshape(n_pad // pack, pack * d_dim).astype(cd)   # free reshape

    # --- parameter packing ----------------------------------------------------
    eye_p = jnp.eye(pack, dtype=f32)

    def kron_w(w):          # (din, dout) -> block-diagonal (P*din, P*dout)
        return jnp.kron(eye_p, w.astype(f32)).astype(cd)

    def tile_v(v):          # (1, d) or (d,) -> lane-tiled (1, P*d) f32
        return jnp.tile(v.astype(f32).reshape(1, -1), (1, pack))

    w0, b0 = params[0], params[1]
    w0s = w0[:s_dim].astype(f32)
    w0d = w0[s_dim:].astype(f32)
    if in_dim == dims[0]:
        # Fold the block-0 skip connection into the first-layer weights so the
        # kernel never lane-concatenates [src, dest].
        w0s = w0s + jnp.eye(s_dim, dims[0], dtype=f32)
        w0d = w0d + jnp.eye(d_dim, dims[0], k=s_dim, dtype=f32)

    weights = [kron_w(w0s), kron_w(w0d)]
    vec_rows = [tile_v(b0)]
    p = 2
    for _ in range(n_mid):
        wa, ba, wb, bb, ga, be = params[p:p + 6]
        p += 6
        weights += [kron_w(wa), kron_w(wb)]
        vec_rows += [tile_v(ba), tile_v(bb), tile_v(ga), tile_v(be)]
    weights.append(kron_w(params[p]))
    vec_rows.append(tile_v(params[p + 1]))

    w_vec = max(v.shape[1] for v in vec_rows)
    vec_tab = jnp.concatenate(
        [jnp.pad(v, ((0, 0), (0, w_vec - v.shape[1]))) for v in vec_rows], axis=0)

    # --- specs / scheduler hints ----------------------------------------------
    in_specs = [
        pl.BlockSpec((g, pack * s_dim), lambda i: (i, 0)),
        pl.BlockSpec((g, pack * d_dim), lambda i: (i, 0)),
        pl.BlockSpec(vec_tab.shape, lambda i: (0, 0)),
    ]
    for w in weights:
        in_specs.append(pl.BlockSpec(w.shape, lambda i: (0, 0)))
    out_specs = pl.BlockSpec((g, pack * out_dim), lambda i: (i, 0))

    mm_terms = s_dim * dims[0] + d_dim * dims[0] + dims[-1] * out_dim
    for b in range(n_mid):
        mm_terms += dims[b] * dims[b + 1] + dims[b + 1] * dims[b + 1]
    params_bytes = sum(int(w.size) * w.dtype.itemsize for w in weights)
    params_bytes += int(vec_tab.size) * 4
    cost = pl.CostEstimate(
        flops=2 * n_pad * mm_terms,
        bytes_accessed=n_pad * (in_dim * cd.itemsize + out_dim * 4) + params_bytes,
        transcendentals=n_pad * n_mid,
    )
    vmem_limit = int(min(48 * 1024 * 1024,
                         max(32 * 1024 * 1024,
                             act_io_bytes(tm) + 2 * params_bytes + (4 << 20))))

    kernel = functools.partial(_edge_kernel, cd, pack, s_dim, d_dim, dims, out_dim)
    out_p = pl.pallas_call(
        kernel,
        grid=(n_steps,),
        in_specs=in_specs,
        out_specs=out_specs,
        out_shape=jax.ShapeDtypeStruct((n_pad // pack, pack * out_dim), f32),
        compiler_params=pltpu.CompilerParams(
            dimension_semantics=("parallel",),
            vmem_limit_bytes=vmem_limit),
        cost_estimate=cost,
    )(src_p, dest_p, vec_tab, *weights)

    # Free row-major unpack, then drop the padded rows.
    return out_p.reshape(n_pad, out_dim)[:N]


# --------------------------------------------------------------------------- #
# Init + pure-JAX reference (for correctness checking)                         #
# --------------------------------------------------------------------------- #
def init_params(key, in_dim, dims, out_dim):
    """Deterministic init mimicking torch Linear defaults; weights are stored
    (in_features, out_features) so the kernel computes x @ W + b."""
    params = []

    def make_linear(k, fi, fo):
        k1, k2 = jax.random.split(k)
        bound = 1.0 / (fi ** 0.5)
        w = jax.random.uniform(k1, (fi, fo), jnp.float32, -bound, bound)
        b = jax.random.uniform(k2, (1, fo), jnp.float32, -bound, bound)
        return w, b

    n_lin = 1 + 2 * (len(dims) - 1) + 1
    keys = jax.random.split(key, n_lin)
    kidx = 0

    w, b = make_linear(keys[kidx], in_dim, dims[0]); kidx += 1
    params += [w, b]
    for i in range(len(dims) - 1):
        wa, ba = make_linear(keys[kidx], dims[i], dims[i + 1]); kidx += 1
        wb, bb = make_linear(keys[kidx], dims[i + 1], dims[i + 1]); kidx += 1
        gamma = jnp.ones((1, dims[i + 1]), jnp.float32)
        beta = jnp.zeros((1, dims[i + 1]), jnp.float32)
        params += [wa, ba, wb, bb, gamma, beta]
    w, b = make_linear(keys[kidx], dims[-1], out_dim); kidx += 1
    params += [w, b]
    return params


def reference_forward(src, dest, params, dims, out_dim, *,
                      compute_dtype=jnp.float32):
    """Pure-JAX replica of EdgeModel.forward (torch semantics)."""
    x = jnp.concatenate([src, dest], axis=1)
    p = 0

    def lin(x, w, b):
        return jnp.dot(x.astype(compute_dtype), w.astype(compute_dtype),
                       preferred_element_type=jnp.float32) + b

    residual = x
    y = lin(x, params[p], params[p + 1]); p += 2
    if y.shape == residual.shape:
        y = y + residual
    x = jnp.maximum(y, 0.0)

    for i in range(len(dims) - 1):
        residual = x
        wa, ba, wb, bb, gamma, beta = params[p:p + 6]; p += 6
        y = lin(x, wa, ba)
        y = jnp.maximum(y, 0.0)
        y = lin(y, wb, bb)
        mean = jnp.mean(y, axis=-1, keepdims=True)
        var = jnp.mean((y - mean) ** 2, axis=-1, keepdims=True)
        y = (y - mean) / jnp.sqrt(var + 1e-5) * gamma + beta
        if y.shape == residual.shape:
            y = y + residual
        x = jnp.maximum(y, 0.0)

    residual = x
    y = lin(x, params[p], params[p + 1]); p += 2
    if y.shape == residual.shape:
        y = y + residual
    return y


if __name__ == "__main__":
    key = jax.random.PRNGKey(0)
    k_src, k_dest, k_par = jax.random.split(key, 3)

    # EdgeModel(in_dim=8, dims=[32, 32], out_dim=8); src/dest each 4 features.
    N = 200                      # deliberately not a multiple of the tile
    src_dim, dest_dim = 4, 4
    dims = [32, 32]
    out_dim = 8
    in_dim = src_dim + dest_dim

    src = jax.random.normal(k_src, (N, src_dim), jnp.float32)
    dest = jax.random.normal(k_dest, (N, dest_dim), jnp.float32)
    params = init_params(k_par, in_dim, dims, out_dim)

    # f32 path (tight check vs the pure-JAX reference)
    out_f32 = jax.block_until_ready(
        edge_model_forward(src, dest, params, dims, out_dim))
    ref_f32 = reference_forward(src, dest, params, dims, out_dim)
    assert out_f32.shape == (N, out_dim)
    assert jnp.allclose(out_f32, ref_f32, atol=1e-4, rtol=1e-4), \
        "f32 kernel mismatch vs reference"

    # bf16 matmul-operand path (beneficial on v5e/v6e/v7x alike; f32 accumulate)
    out_bf16 = jax.block_until_ready(
        edge_model_forward(src, dest, params, dims, out_dim,
                           compute_dtype=jnp.bfloat16))
    ref_bf16 = reference_forward(src, dest, params, dims, out_dim,
                                 compute_dtype=jnp.bfloat16)
    assert jnp.allclose(out_bf16, ref_bf16, atol=2e-2, rtol=2e-2), \
        "bf16 kernel mismatch vs bf16 reference"

    print("KERNEL_OK")
</pallas_src>

<mosaic_0001>
module attributes {stable_mosaic.version = 11 : i64} {
  func.func @_edge_kernel(%arg0: i32, %arg1: memref<8x64xf32, #tpu.memory_space<vmem>>, %arg2: memref<8x64xf32, #tpu.memory_space<vmem>>, %arg3: memref<6x512xf32, #tpu.memory_space<vmem>>, %arg4: memref<64x512xf32, #tpu.memory_space<vmem>>, %arg5: memref<64x512xf32, #tpu.memory_space<vmem>>, %arg6: memref<512x512xf32, #tpu.memory_space<vmem>>, %arg7: memref<512x512xf32, #tpu.memory_space<vmem>>, %arg8: memref<512x128xf32, #tpu.memory_space<vmem>>, %arg9: memref<8x128xf32, #tpu.memory_space<vmem>>) attributes {dimension_semantics = [#tpu.dimension_semantics<parallel>], iteration_bounds = array<i64: 2>, scalar_prefetch = 0 : i64, scratch_operands = 0 : i64, tpu.core_type = #tpu.core_type<tc>, window_params = [{transform_indices = @transform_0, window_bounds = array<i64: 8, 64>}, {transform_indices = @transform_1, window_bounds = array<i64: 8, 64>}, {pipeline_mode = #tpu.pipeline_mode<synchronous>, transform_indices = @transform_2, window_bounds = array<i64: 6, 512>}, {pipeline_mode = #tpu.pipeline_mode<synchronous>, transform_indices = @transform_3, window_bounds = array<i64: 64, 512>}, {pipeline_mode = #tpu.pipeline_mode<synchronous>, transform_indices = @transform_4, window_bounds = array<i64: 64, 512>}, {pipeline_mode = #tpu.pipeline_mode<synchronous>, transform_indices = @transform_5, window_bounds = array<i64: 512, 512>}, {pipeline_mode = #tpu.pipeline_mode<synchronous>, transform_indices = @transform_6, window_bounds = array<i64: 512, 512>}, {pipeline_mode = #tpu.pipeline_mode<synchronous>, transform_indices = @transform_7, window_bounds = array<i64: 512, 128>}, {transform_indices = @transform_8, window_bounds = array<i64: 8, 128>}]} {
    %c0 = arith.constant 0 : index
    %c0_0 = arith.constant 0 : index
    %0 = vector.load %arg3[%c0, %c0_0] : memref<6x512xf32, #tpu.memory_space<vmem>>, vector<1x512xf32>
    %c0_1 = arith.constant 0 : index
    %c0_2 = arith.constant 0 : index
    %1 = vector.load %arg1[%c0_1, %c0_2] : memref<8x64xf32, #tpu.memory_space<vmem>>, vector<8x64xf32>
    %c0_3 = arith.constant 0 : index
    %c0_4 = arith.constant 0 : index
    %2 = vector.load %arg4[%c0_3, %c0_4] : memref<64x512xf32, #tpu.memory_space<vmem>>, vector<64x512xf32>
    %cst = arith.constant dense<0.000000e+00> : vector<8x512xf32>
    %3 = tpu.matmul %1, %2, %cst {dimension_numbers = #tpu.dot_dimension_numbers<[1], [0], [0], [1], [0, 0, 1, 1], [], []>} : vector<8x64xf32>, vector<64x512xf32>, vector<8x512xf32> -> vector<8x512xf32>
    %c0_5 = arith.constant 0 : index
    %c0_6 = arith.constant 0 : index
    %4 = vector.load %arg2[%c0_5, %c0_6] : memref<8x64xf32, #tpu.memory_space<vmem>>, vector<8x64xf32>
    %c0_7 = arith.constant 0 : index
    %c0_8 = arith.constant 0 : index
    %5 = vector.load %arg5[%c0_7, %c0_8] : memref<64x512xf32, #tpu.memory_space<vmem>>, vector<64x512xf32>
    %cst_9 = arith.constant dense<0.000000e+00> : vector<8x512xf32>
    %6 = tpu.matmul %4, %5, %cst_9 {dimension_numbers = #tpu.dot_dimension_numbers<[1], [0], [0], [1], [0, 0, 1, 1], [], []>} : vector<8x64xf32>, vector<64x512xf32>, vector<8x512xf32> -> vector<8x512xf32>
    %7 = arith.addf %3, %6 : vector<8x512xf32>
    %8 = vector.broadcast %0 : vector<1x512xf32> to vector<8x512xf32>
    %9 = arith.addf %7, %8 : vector<8x512xf32>
    %cst_10 = arith.constant 0.000000e+00 : f32
    %10 = vector.broadcast %cst_10 : f32 to vector<8x512xf32>
    %11 = arith.maximumf %9, %10 : vector<8x512xf32>
    %c1 = arith.constant 1 : index
    %c0_11 = arith.constant 0 : index
    %12 = vector.load %arg3[%c1, %c0_11] : memref<6x512xf32, #tpu.memory_space<vmem>>, vector<1x512xf32>
    %c2 = arith.constant 2 : index
    %c0_12 = arith.constant 0 : index
    %13 = vector.load %arg3[%c2, %c0_12] : memref<6x512xf32, #tpu.memory_space<vmem>>, vector<1x512xf32>
    %c3 = arith.constant 3 : index
    %c0_13 = arith.constant 0 : index
    %14 = vector.load %arg3[%c3, %c0_13] : memref<6x512xf32, #tpu.memory_space<vmem>>, vector<1x512xf32>
    %c4 = arith.constant 4 : index
    %c0_14 = arith.constant 0 : index
    %15 = vector.load %arg3[%c4, %c0_14] : memref<6x512xf32, #tpu.memory_space<vmem>>, vector<1x512xf32>
    %c0_15 = arith.constant 0 : index
    %c0_16 = arith.constant 0 : index
    %16 = vector.load %arg6[%c0_15, %c0_16] : memref<512x512xf32, #tpu.memory_space<vmem>>, vector<512x512xf32>
    %cst_17 = arith.constant dense<0.000000e+00> : vector<8x512xf32>
    %17 = tpu.matmul %11, %16, %cst_17 {dimension_numbers = #tpu.dot_dimension_numbers<[1], [0], [0], [1], [0, 0, 1, 1], [], []>} : vector<8x512xf32>, vector<512x512xf32>, vector<8x512xf32> -> vector<8x512xf32>
    %18 = vector.broadcast %12 : vector<1x512xf32> to vector<8x512xf32>
    %19 = arith.addf %17, %18 : vector<8x512xf32>
    %cst_18 = arith.constant 0.000000e+00 : f32
    %20 = vector.broadcast %cst_18 : f32 to vector<8x512xf32>
    %21 = arith.maximumf %19, %20 : vector<8x512xf32>
    %c0_19 = arith.constant 0 : index
    %c0_20 = arith.constant 0 : index
    %22 = vector.load %arg7[%c0_19, %c0_20] : memref<512x512xf32, #tpu.memory_space<vmem>>, vector<512x512xf32>
    %cst_21 = arith.constant dense<0.000000e+00> : vector<8x512xf32>
    %23 = tpu.matmul %21, %22, %cst_21 {dimension_numbers = #tpu.dot_dimension_numbers<[1], [0], [0], [1], [0, 0, 1, 1], [], []>} : vector<8x512xf32>, vector<512x512xf32>, vector<8x512xf32> -> vector<8x512xf32>
    %24 = vector.broadcast %13 : vector<1x512xf32> to vector<8x512xf32>
    %25 = arith.addf %23, %24 : vector<8x512xf32>
    %26 = vector.extract_strided_slice %25 {offsets = [0, 0], sizes = [8, 32], strides = [1, 1]} : vector<8x512xf32> to vector<8x32xf32>
    %cst_22 = arith.constant dense<0.000000e+00> : vector<8xf32>
    %27 = vector.multi_reduction <add>, %26, %cst_22 [1] : vector<8x32xf32> to vector<8xf32>
    %28 = vector.shape_cast %27 : vector<8xf32> to vector<8x1xf32>
    %cst_23 = arith.constant 3.200000e+01 : f32
    %29 = vector.broadcast %cst_23 : f32 to vector<8x1xf32>
    %30 = arith.divf %28, %29 : vector<8x1xf32>
    %31 = arith.mulf %26, %26 : vector<8x32xf32>
    %cst_24 = arith.constant dense<0.000000e+00> : vector<8xf32>
    %32 = vector.multi_reduction <add>, %31, %cst_24 [1] : vector<8x32xf32> to vector<8xf32>
    %33 = vector.shape_cast %32 : vector<8xf32> to vector<8x1xf32>
    %cst_25 = arith.constant 3.200000e+01 : f32
    %34 = vector.broadcast %cst_25 : f32 to vector<8x1xf32>
    %35 = arith.divf %33, %34 : vector<8x1xf32>
    %36 = arith.mulf %30, %30 : vector<8x1xf32>
    %37 = arith.subf %35, %36 : vector<8x1xf32>
    %38 = vector.broadcast %30 : vector<8x1xf32> to vector<8x32xf32>
    %39 = arith.subf %26, %38 : vector<8x32xf32>
    %cst_26 = arith.constant 0.000000e+00 : f32
    %40 = vector.broadcast %cst_26 : f32 to vector<8x1xf32>
    %41 = arith.maximumf %37, %40 : vector<8x1xf32>
    %cst_27 = arith.constant 9.99999974E-6 : f32
    %42 = vector.broadcast %cst_27 : f32 to vector<8x1xf32>
    %43 = arith.addf %41, %42 : vector<8x1xf32>
    %44 = math.rsqrt %43 : vector<8x1xf32>
    %45 = vector.broadcast %44 : vector<8x1xf32> to vector<8x32xf32>
    %46 = arith.mulf %39, %45 : vector<8x32xf32>
    %47 = vector.extract_strided_slice %25 {offsets = [0, 32], sizes = [8, 32], strides = [1, 1]} : vector<8x512xf32> to vector<8x32xf32>
    %cst_28 = arith.constant dense<0.000000e+00> : vector<8xf32>
    %48 = vector.multi_reduction <add>, %47, %cst_28 [1] : vector<8x32xf32> to vector<8xf32>
    %49 = vector.shape_cast %48 : vector<8xf32> to vector<8x1xf32>
    %cst_29 = arith.constant 3.200000e+01 : f32
    %50 = vector.broadcast %cst_29 : f32 to vector<8x1xf32>
    %51 = arith.divf %49, %50 : vector<8x1xf32>
    %52 = arith.mulf %47, %47 : vector<8x32xf32>
    %cst_30 = arith.constant dense<0.000000e+00> : vector<8xf32>
    %53 = vector.multi_reduction <add>, %52, %cst_30 [1] : vector<8x32xf32> to vector<8xf32>
    %54 = vector.shape_cast %53 : vector<8xf32> to vector<8x1xf32>
    %cst_31 = arith.constant 3.200000e+01 : f32
    %55 = vector.broadcast %cst_31 : f32 to vector<8x1xf32>
    %56 = arith.divf %54, %55 : vector<8x1xf32>
    %57 = arith.mulf %51, %51 : vector<8x1xf32>
    %58 = arith.subf %56, %57 : vector<8x1xf32>
    %59 = vector.broadcast %51 : vector<8x1xf32> to vector<8x32xf32>
    %60 = arith.subf %47, %59 : vector<8x32xf32>
    %cst_32 = arith.constant 0.000000e+00 : f32
    %61 = vector.broadcast %cst_32 : f32 to vector<8x1xf32>
    %62 = arith.maximumf %58, %61 : vector<8x1xf32>
    %cst_33 = arith.constant 9.99999974E-6 : f32
    %63 = vector.broadcast %cst_33 : f32 to vector<8x1xf32>
    %64 = arith.addf %62, %63 : vector<8x1xf32>
    %65 = math.rsqrt %64 : vector<8x1xf32>
    %66 = vector.broadcast %65 : vector<8x1xf32> to vector<8x32xf32>
    %67 = arith.mulf %60, %66 : vector<8x32xf32>
    %68 = vector.extract_strided_slice %25 {offsets = [0, 64], sizes = [8, 32], strides = [1, 1]} : vector<8x512xf32> to vector<8x32xf32>
    %cst_34 = arith.constant dense<0.000000e+00> : vector<8xf32>
    %69 = vector.multi_reduction <add>, %68, %cst_34 [1] : vector<8x32xf32> to vector<8xf32>
    %70 = vector.shape_cast %69 : vector<8xf32> to vector<8x1xf32>
    %cst_35 = arith.constant 3.200000e+01 : f32
    %71 = vector.broadcast %cst_35 : f32 to vector<8x1xf32>
    %72 = arith.divf %70, %71 : vector<8x1xf32>
    %73 = arith.mulf %68, %68 : vector<8x32xf32>
    %cst_36 = arith.constant dense<0.000000e+00> : vector<8xf32>
    %74 = vector.multi_reduction <add>, %73, %cst_36 [1] : vector<8x32xf32> to vector<8xf32>
    %75 = vector.shape_cast %74 : vector<8xf32> to vector<8x1xf32>
    %cst_37 = arith.constant 3.200000e+01 : f32
    %76 = vector.broadcast %cst_37 : f32 to vector<8x1xf32>
    %77 = arith.divf %75, %76 : vector<8x1xf32>
    %78 = arith.mulf %72, %72 : vector<8x1xf32>
    %79 = arith.subf %77, %78 : vector<8x1xf32>
    %80 = vector.broadcast %72 : vector<8x1xf32> to vector<8x32xf32>
    %81 = arith.subf %68, %80 : vector<8x32xf32>
    %cst_38 = arith.constant 0.000000e+00 : f32
    %82 = vector.broadcast %cst_38 : f32 to vector<8x1xf32>
    %83 = arith.maximumf %79, %82 : vector<8x1xf32>
    %cst_39 = arith.constant 9.99999974E-6 : f32
    %84 = vector.broadcast %cst_39 : f32 to vector<8x1xf32>
    %85 = arith.addf %83, %84 : vector<8x1xf32>
    %86 = math.rsqrt %85 : vector<8x1xf32>
    %87 = vector.broadcast %86 : vector<8x1xf32> to vector<8x32xf32>
    %88 = arith.mulf %81, %87 : vector<8x32xf32>
    %89 = vector.extract_strided_slice %25 {offsets = [0, 96], sizes = [8, 32], strides = [1, 1]} : vector<8x512xf32> to vector<8x32xf32>
    %cst_40 = arith.constant dense<0.000000e+00> : vector<8xf32>
    %90 = vector.multi_reduction <add>, %89, %cst_40 [1] : vector<8x32xf32> to vector<8xf32>
    %91 = vector.shape_cast %90 : vector<8xf32> to vector<8x1xf32>
    %cst_41 = arith.constant 3.200000e+01 : f32
    %92 = vector.broadcast %cst_41 : f32 to vector<8x1xf32>
    %93 = arith.divf %91, %92 : vector<8x1xf32>
    %94 = arith.mulf %89, %89 : vector<8x32xf32>
    %cst_42 = arith.constant dense<0.000000e+00> : vector<8xf32>
    %95 = vector.multi_reduction <add>, %94, %cst_42 [1] : vector<8x32xf32> to vector<8xf32>
    %96 = vector.shape_cast %95 : vector<8xf32> to vector<8x1xf32>
    %cst_43 = arith.constant 3.200000e+01 : f32
    %97 = vector.broadcast %cst_43 : f32 to vector<8x1xf32>
    %98 = arith.divf %96, %97 : vector<8x1xf32>
    %99 = arith.mulf %93, %93 : vector<8x1xf32>
    %100 = arith.subf %98, %99 : vector<8x1xf32>
    %101 = vector.broadcast %93 : vector<8x1xf32> to vector<8x32xf32>
    %102 = arith.subf %89, %101 : vector<8x32xf32>
    %cst_44 = arith.constant 0.000000e+00 : f32
    %103 = vector.broadcast %cst_44 : f32 to vector<8x1xf32>
    %104 = arith.maximumf %100, %103 : vector<8x1xf32>
    %cst_45 = arith.constant 9.99999974E-6 : f32
    %105 = vector.broadcast %cst_45 : f32 to vector<8x1xf32>
    %106 = arith.addf %104, %105 : vector<8x1xf32>
    %107 = math.rsqrt %106 : vector<8x1xf32>
    %108 = vector.broadcast %107 : vector<8x1xf32> to vector<8x32xf32>
    %109 = arith.mulf %102, %108 : vector<8x32xf32>
    %110 = vector.extract_strided_slice %25 {offsets = [0, 128], sizes = [8, 32], strides = [1, 1]} : vector<8x512xf32> to vector<8x32xf32>
    %cst_46 = arith.constant dense<0.000000e+00> : vector<8xf32>
    %111 = vector.multi_reduction <add>, %110, %cst_46 [1] : vector<8x32xf32> to vector<8xf32>
    %112 = vector.shape_cast %111 : vector<8xf32> to vector<8x1xf32>
    %cst_47 = arith.constant 3.200000e+01 : f32
    %113 = vector.broadcast %cst_47 : f32 to vector<8x1xf32>
    %114 = arith.divf %112, %113 : vector<8x1xf32>
    %115 = arith.mulf %110, %110 : vector<8x32xf32>
    %cst_48 = arith.constant dense<0.000000e+00> : vector<8xf32>
    %116 = vector.multi_reduction <add>, %115, %cst_48 [1] : vector<8x32xf32> to vector<8xf32>
    %117 = vector.shape_cast %116 : vector<8xf32> to vector<8x1xf32>
    %cst_49 = arith.constant 3.200000e+01 : f32
    %118 = vector.broadcast %cst_49 : f32 to vector<8x1xf32>
    %119 = arith.divf %117, %118 : vector<8x1xf32>
    %120 = arith.mulf %114, %114 : vector<8x1xf32>
    %121 = arith.subf %119, %120 : vector<8x1xf32>
    %122 = vector.broadcast %114 : vector<8x1xf32> to vector<8x32xf32>
    %123 = arith.subf %110, %122 : vector<8x32xf32>
    %cst_50 = arith.constant 0.000000e+00 : f32
    %124 = vector.broadcast %cst_50 : f32 to vector<8x1xf32>
    %125 = arith.maximumf %121, %124 : vector<8x1xf32>
    %cst_51 = arith.constant 9.99999974E-6 : f32
    %126 = vector.broadcast %cst_51 : f32 to vector<8x1xf32>
    %127 = arith.addf %125, %126 : vector<8x1xf32>
    %128 = math.rsqrt %127 : vector<8x1xf32>
    %129 = vector.broadcast %128 : vector<8x1xf32> to vector<8x32xf32>
    %130 = arith.mulf %123, %129 : vector<8x32xf32>
    %131 = vector.extract_strided_slice %25 {offsets = [0, 160], sizes = [8, 32], strides = [1, 1]} : vector<8x512xf32> to vector<8x32xf32>
    %cst_52 = arith.constant dense<0.000000e+00> : vector<8xf32>
    %132 = vector.multi_reduction <add>, %131, %cst_52 [1] : vector<8x32xf32> to vector<8xf32>
    %133 = vector.shape_cast %132 : vector<8xf32> to vector<8x1xf32>
    %cst_53 = arith.constant 3.200000e+01 : f32
    %134 = vector.broadcast %cst_53 : f32 to vector<8x1xf32>
    %135 = arith.divf %133, %134 : vector<8x1xf32>
    %136 = arith.mulf %131, %131 : vector<8x32xf32>
    %cst_54 = arith.constant dense<0.000000e+00> : vector<8xf32>
    %137 = vector.multi_reduction <add>, %136, %cst_54 [1] : vector<8x32xf32> to vector<8xf32>
    %138 = vector.shape_cast %137 : vector<8xf32> to vector<8x1xf32>
    %cst_55 = arith.constant 3.200000e+01 : f32
    %139 = vector.broadcast %cst_55 : f32 to vector<8x1xf32>
    %140 = arith.divf %138, %139 : vector<8x1xf32>
    %141 = arith.mulf %135, %135 : vector<8x1xf32>
    %142 = arith.subf %140, %141 : vector<8x1xf32>
    %143 = vector.broadcast %135 : vector<8x1xf32> to vector<8x32xf32>
    %144 = arith.subf %131, %143 : vector<8x32xf32>
    %cst_56 = arith.constant 0.000000e+00 : f32
    %145 = vector.broadcast %cst_56 : f32 to vector<8x1xf32>
    %146 = arith.maximumf %142, %145 : vector<8x1xf32>
    %cst_57 = arith.constant 9.99999974E-6 : f32
    %147 = vector.broadcast %cst_57 : f32 to vector<8x1xf32>
    %148 = arith.addf %146, %147 : vector<8x1xf32>
    %149 = math.rsqrt %148 : vector<8x1xf32>
    %150 = vector.broadcast %149 : vector<8x1xf32> to vector<8x32xf32>
    %151 = arith.mulf %144, %150 : vector<8x32xf32>
    %152 = vector.extract_strided_slice %25 {offsets = [0, 192], sizes = [8, 32], strides = [1, 1]} : vector<8x512xf32> to vector<8x32xf32>
    %cst_58 = arith.constant dense<0.000000e+00> : vector<8xf32>
    %153 = vector.multi_reduction <add>, %152, %cst_58 [1] : vector<8x32xf32> to vector<8xf32>
    %154 = vector.shape_cast %153 : vector<8xf32> to vector<8x1xf32>
    %cst_59 = arith.constant 3.200000e+01 : f32
    %155 = vector.broadcast %cst_59 : f32 to vector<8x1xf32>
    %156 = arith.divf %154, %155 : vector<8x1xf32>
    %157 = arith.mulf %152, %152 : vector<8x32xf32>
    %cst_60 = arith.constant dense<0.000000e+00> : vector<8xf32>
    %158 = vector.multi_reduction <add>, %157, %cst_60 [1] : vector<8x32xf32> to vector<8xf32>
    %159 = vector.shape_cast %158 : vector<8xf32> to vector<8x1xf32>
    %cst_61 = arith.constant 3.200000e+01 : f32
    %160 = vector.broadcast %cst_61 : f32 to vector<8x1xf32>
    %161 = arith.divf %159, %160 : vector<8x1xf32>
    %162 = arith.mulf %156, %156 : vector<8x1xf32>
    %163 = arith.subf %161, %162 : vector<8x1xf32>
    %164 = vector.broadcast %156 : vector<8x1xf32> to vector<8x32xf32>
    %165 = arith.subf %152, %164 : vector<8x32xf32>
    %cst_62 = arith.constant 0.000000e+00 : f32
    %166 = vector.broadcast %cst_62 : f32 to vector<8x1xf32>
    %167 = arith.maximumf %163, %166 : vector<8x1xf32>
    %cst_63 = arith.constant 9.99999974E-6 : f32
    %168 = vector.broadcast %cst_63 : f32 to vector<8x1xf32>
    %169 = arith.addf %167, %168 : vector<8x1xf32>
    %170 = math.rsqrt %169 : vector<8x1xf32>
    %171 = vector.broadcast %170 : vector<8x1xf32> to vector<8x32xf32>
    %172 = arith.mulf %165, %171 : vector<8x32xf32>
    %173 = vector.extract_strided_slice %25 {offsets = [0, 224], sizes = [8, 32], strides = [1, 1]} : vector<8x512xf32> to vector<8x32xf32>
    %cst_64 = arith.constant dense<0.000000e+00> : vector<8xf32>
    %174 = vector.multi_reduction <add>, %173, %cst_64 [1] : vector<8x32xf32> to vector<8xf32>
    %175 = vector.shape_cast %174 : vector<8xf32> to vector<8x1xf32>
    %cst_65 = arith.constant 3.200000e+01 : f32
    %176 = vector.broadcast %cst_65 : f32 to vector<8x1xf32>
    %177 = arith.divf %175, %176 : vector<8x1xf32>
    %178 = arith.mulf %173, %173 : vector<8x32xf32>
    %cst_66 = arith.constant dense<0.000000e+00> : vector<8xf32>
    %179 = vector.multi_reduction <add>, %178, %cst_66 [1] : vector<8x32xf32> to vector<8xf32>
    %180 = vector.shape_cast %179 : vector<8xf32> to vector<8x1xf32>
    %cst_67 = arith.constant 3.200000e+01 : f32
    %181 = vector.broadcast %cst_67 : f32 to vector<8x1xf32>
    %182 = arith.divf %180, %181 : vector<8x1xf32>
    %183 = arith.mulf %177, %177 : vector<8x1xf32>
    %184 = arith.subf %182, %183 : vector<8x1xf32>
    %185 = vector.broadcast %177 : vector<8x1xf32> to vector<8x32xf32>
    %186 = arith.subf %173, %185 : vector<8x32xf32>
    %cst_68 = arith.constant 0.000000e+00 : f32
    %187 = vector.broadcast %cst_68 : f32 to vector<8x1xf32>
    %188 = arith.maximumf %184, %187 : vector<8x1xf32>
    %cst_69 = arith.constant 9.99999974E-6 : f32
    %189 = vector.broadcast %cst_69 : f32 to vector<8x1xf32>
    %190 = arith.addf %188, %189 : vector<8x1xf32>
    %191 = math.rsqrt %190 : vector<8x1xf32>
    %192 = vector.broadcast %191 : vector<8x1xf32> to vector<8x32xf32>
    %193 = arith.mulf %186, %192 : vector<8x32xf32>
    %194 = vector.extract_strided_slice %25 {offsets = [0, 256], sizes = [8, 32], strides = [1, 1]} : vector<8x512xf32> to vector<8x32xf32>
    %cst_70 = arith.constant dense<0.000000e+00> : vector<8xf32>
    %195 = vector.multi_reduction <add>, %194, %cst_70 [1] : vector<8x32xf32> to vector<8xf32>
    %196 = vector.shape_cast %195 : vector<8xf32> to vector<8x1xf32>
    %cst_71 = arith.constant 3.200000e+01 : f32
    %197 = vector.broadcast %cst_71 : f32 to vector<8x1xf32>
    %198 = arith.divf %196, %197 : vector<8x1xf32>
    %199 = arith.mulf %194, %194 : vector<8x32xf32>
    %cst_72 = arith.constant dense<0.000000e+00> : vector<8xf32>
    %200 = vector.multi_reduction <add>, %199, %cst_72 [1] : vector<8x32xf32> to vector<8xf32>
    %201 = vector.shape_cast %200 : vector<8xf32> to vector<8x1xf32>
    %cst_73 = arith.constant 3.200000e+01 : f32
    %202 = vector.broadcast %cst_73 : f32 to vector<8x1xf32>
    %203 = arith.divf %201, %202 : vector<8x1xf32>
    %204 = arith.mulf %198, %198 : vector<8x1xf32>
    %205 = arith.subf %203, %204 : vector<8x1xf32>
    %206 = vector.broadcast %198 : vector<8x1xf32> to vector<8x32xf32>
    %207 = arith.subf %194, %206 : vector<8x32xf32>
    %cst_74 = arith.constant 0.000000e+00 : f32
    %208 = vector.broadcast %cst_74 : f32 to vector<8x1xf32>
    %209 = arith.maximumf %205, %208 : vector<8x1xf32>
    %cst_75 = arith.constant 9.99999974E-6 : f32
    %210 = vector.broadcast %cst_75 : f32 to vector<8x1xf32>
    %211 = arith.addf %209, %210 : vector<8x1xf32>
    %212 = math.rsqrt %211 : vector<8x1xf32>
    %213 = vector.broadcast %212 : vector<8x1xf32> to vector<8x32xf32>
    %214 = arith.mulf %207, %213 : vector<8x32xf32>
    %215 = vector.extract_strided_slice %25 {offsets = [0, 288], sizes = [8, 32], strides = [1, 1]} : vector<8x512xf32> to vector<8x32xf32>
    %cst_76 = arith.constant dense<0.000000e+00> : vector<8xf32>
    %216 = vector.multi_reduction <add>, %215, %cst_76 [1] : vector<8x32xf32> to vector<8xf32>
    %217 = vector.shape_cast %216 : vector<8xf32> to vector<8x1xf32>
    %cst_77 = arith.constant 3.200000e+01 : f32
    %218 = vector.broadcast %cst_77 : f32 to vector<8x1xf32>
    %219 = arith.divf %217, %218 : vector<8x1xf32>
    %220 = arith.mulf %215, %215 : vector<8x32xf32>
    %cst_78 = arith.constant dense<0.000000e+00> : vector<8xf32>
    %221 = vector.multi_reduction <add>, %220, %cst_78 [1] : vector<8x32xf32> to vector<8xf32>
    %222 = vector.shape_cast %221 : vector<8xf32> to vector<8x1xf32>
    %cst_79 = arith.constant 3.200000e+01 : f32
    %223 = vector.broadcast %cst_79 : f32 to vector<8x1xf32>
    %224 = arith.divf %222, %223 : vector<8x1xf32>
    %225 = arith.mulf %219, %219 : vector<8x1xf32>
    %226 = arith.subf %224, %225 : vector<8x1xf32>
    %227 = vector.broadcast %219 : vector<8x1xf32> to vector<8x32xf32>
    %228 = arith.subf %215, %227 : vector<8x32xf32>
    %cst_80 = arith.constant 0.000000e+00 : f32
    %229 = vector.broadcast %cst_80 : f32 to vector<8x1xf32>
    %230 = arith.maximumf %226, %229 : vector<8x1xf32>
    %cst_81 = arith.constant 9.99999974E-6 : f32
    %231 = vector.broadcast %cst_81 : f32 to vector<8x1xf32>
    %232 = arith.addf %230, %231 : vector<8x1xf32>
    %233 = math.rsqrt %232 : vector<8x1xf32>
    %234 = vector.broadcast %233 : vector<8x1xf32> to vector<8x32xf32>
    %235 = arith.mulf %228, %234 : vector<8x32xf32>
    %236 = vector.extract_strided_slice %25 {offsets = [0, 320], sizes = [8, 32], strides = [1, 1]} : vector<8x512xf32> to vector<8x32xf32>
    %cst_82 = arith.constant dense<0.000000e+00> : vector<8xf32>
    %237 = vector.multi_reduction <add>, %236, %cst_82 [1] : vector<8x32xf32> to vector<8xf32>
    %238 = vector.shape_cast %237 : vector<8xf32> to vector<8x1xf32>
    %cst_83 = arith.constant 3.200000e+01 : f32
    %239 = vector.broadcast %cst_83 : f32 to vector<8x1xf32>
    %240 = arith.divf %238, %239 : vector<8x1xf32>
    %241 = arith.mulf %236, %236 : vector<8x32xf32>
    %cst_84 = arith.constant dense<0.000000e+00> : vector<8xf32>
    %242 = vector.multi_reduction <add>, %241, %cst_84 [1] : vector<8x32xf32> to vector<8xf32>
    %243 = vector.shape_cast %242 : vector<8xf32> to vector<8x1xf32>
    %cst_85 = arith.constant 3.200000e+01 : f32
    %244 = vector.broadcast %cst_85 : f32 to vector<8x1xf32>
    %245 = arith.divf %243, %244 : vector<8x1xf32>
    %246 = arith.mulf %240, %240 : vector<8x1xf32>
    %247 = arith.subf %245, %246 : vector<8x1xf32>
    %248 = vector.broadcast %240 : vector<8x1xf32> to vector<8x32xf32>
    %249 = arith.subf %236, %248 : vector<8x32xf32>
    %cst_86 = arith.constant 0.000000e+00 : f32
    %250 = vector.broadcast %cst_86 : f32 to vector<8x1xf32>
    %251 = arith.maximumf %247, %250 : vector<8x1xf32>
    %cst_87 = arith.constant 9.99999974E-6 : f32
    %252 = vector.broadcast %cst_87 : f32 to vector<8x1xf32>
    %253 = arith.addf %251, %252 : vector<8x1xf32>
    %254 = math.rsqrt %253 : vector<8x1xf32>
    %255 = vector.broadcast %254 : vector<8x1xf32> to vector<8x32xf32>
    %256 = arith.mulf %249, %255 : vector<8x32xf32>
    %257 = vector.extract_strided_slice %25 {offsets = [0, 352], sizes = [8, 32], strides = [1, 1]} : vector<8x512xf32> to vector<8x32xf32>
    %cst_88 = arith.constant dense<0.000000e+00> : vector<8xf32>
    %258 = vector.multi_reduction <add>, %257, %cst_88 [1] : vector<8x32xf32> to vector<8xf32>
    %259 = vector.shape_cast %258 : vector<8xf32> to vector<8x1xf32>
    %cst_89 = arith.constant 3.200000e+01 : f32
    %260 = vector.broadcast %cst_89 : f32 to vector<8x1xf32>
    %261 = arith.divf %259, %260 : vector<8x1xf32>
    %262 = arith.mulf %257, %257 : vector<8x32xf32>
    %cst_90 = arith.constant dense<0.000000e+00> : vector<8xf32>
    %263 = vector.multi_reduction <add>, %262, %cst_90 [1] : vector<8x32xf32> to vector<8xf32>
    %264 = vector.shape_cast %263 : vector<8xf32> to vector<8x1xf32>
    %cst_91 = arith.constant 3.200000e+01 : f32
    %265 = vector.broadcast %cst_91 : f32 to vector<8x1xf32>
    %266 = arith.divf %264, %265 : vector<8x1xf32>
    %267 = arith.mulf %261, %261 : vector<8x1xf32>
    %268 = arith.subf %266, %267 : vector<8x1xf32>
    %269 = vector.broadcast %261 : vector<8x1xf32> to vector<8x32xf32>
    %270 = arith.subf %257, %269 : vector<8x32xf32>
    %cst_92 = arith.constant 0.000000e+00 : f32
    %271 = vector.broadcast %cst_92 : f32 to vector<8x1xf32>
    %272 = arith.maximumf %268, %271 : vector<8x1xf32>
    %cst_93 = arith.constant 9.99999974E-6 : f32
    %273 = vector.broadcast %cst_93 : f32 to vector<8x1xf32>
    %274 = arith.addf %272, %273 : vector<8x1xf32>
    %275 = math.rsqrt %274 : vector<8x1xf32>
    %276 = vector.broadcast %275 : vector<8x1xf32> to vector<8x32xf32>
    %277 = arith.mulf %270, %276 : vector<8x32xf32>
    %278 = vector.extract_strided_slice %25 {offsets = [0, 384], sizes = [8, 32], strides = [1, 1]} : vector<8x512xf32> to vector<8x32xf32>
    %cst_94 = arith.constant dense<0.000000e+00> : vector<8xf32>
    %279 = vector.multi_reduction <add>, %278, %cst_94 [1] : vector<8x32xf32> to vector<8xf32>
    %280 = vector.shape_cast %279 : vector<8xf32> to vector<8x1xf32>
    %cst_95 = arith.constant 3.200000e+01 : f32
    %281 = vector.broadcast %cst_95 : f32 to vector<8x1xf32>
    %282 = arith.divf %280, %281 : vector<8x1xf32>
    %283 = arith.mulf %278, %278 : vector<8x32xf32>
    %cst_96 = arith.constant dense<0.000000e+00> : vector<8xf32>
    %284 = vector.multi_reduction <add>, %283, %cst_96 [1] : vector<8x32xf32> to vector<8xf32>
    %285 = vector.shape_cast %284 : vector<8xf32> to vector<8x1xf32>
    %cst_97 = arith.constant 3.200000e+01 : f32
    %286 = vector.broadcast %cst_97 : f32 to vector<8x1xf32>
    %287 = arith.divf %285, %286 : vector<8x1xf32>
    %288 = arith.mulf %282, %282 : vector<8x1xf32>
    %289 = arith.subf %287, %288 : vector<8x1xf32>
    %290 = vector.broadcast %282 : vector<8x1xf32> to vector<8x32xf32>
    %291 = arith.subf %278, %290 : vector<8x32xf32>
    %cst_98 = arith.constant 0.000000e+00 : f32
    %292 = vector.broadcast %cst_98 : f32 to vector<8x1xf32>
    %293 = arith.maximumf %289, %292 : vector<8x1xf32>
    %cst_99 = arith.constant 9.99999974E-6 : f32
    %294 = vector.broadcast %cst_99 : f32 to vector<8x1xf32>
    %295 = arith.addf %293, %294 : vector<8x1xf32>
    %296 = math.rsqrt %295 : vector<8x1xf32>
    %297 = vector.broadcast %296 : vector<8x1xf32> to vector<8x32xf32>
    %298 = arith.mulf %291, %297 : vector<8x32xf32>
    %299 = vector.extract_strided_slice %25 {offsets = [0, 416], sizes = [8, 32], strides = [1, 1]} : vector<8x512xf32> to vector<8x32xf32>
    %cst_100 = arith.constant dense<0.000000e+00> : vector<8xf32>
    %300 = vector.multi_reduction <add>, %299, %cst_100 [1] : vector<8x32xf32> to vector<8xf32>
    %301 = vector.shape_cast %300 : vector<8xf32> to vector<8x1xf32>
    %cst_101 = arith.constant 3.200000e+01 : f32
    %302 = vector.broadcast %cst_101 : f32 to vector<8x1xf32>
    %303 = arith.divf %301, %302 : vector<8x1xf32>
    %304 = arith.mulf %299, %299 : vector<8x32xf32>
    %cst_102 = arith.constant dense<0.000000e+00> : vector<8xf32>
    %305 = vector.multi_reduction <add>, %304, %cst_102 [1] : vector<8x32xf32> to vector<8xf32>
    %306 = vector.shape_cast %305 : vector<8xf32> to vector<8x1xf32>
    %cst_103 = arith.constant 3.200000e+01 : f32
    %307 = vector.broadcast %cst_103 : f32 to vector<8x1xf32>
    %308 = arith.divf %306, %307 : vector<8x1xf32>
    %309 = arith.mulf %303, %303 : vector<8x1xf32>
    %310 = arith.subf %308, %309 : vector<8x1xf32>
    %311 = vector.broadcast %303 : vector<8x1xf32> to vector<8x32xf32>
    %312 = arith.subf %299, %311 : vector<8x32xf32>
    %cst_104 = arith.constant 0.000000e+00 : f32
    %313 = vector.broadcast %cst_104 : f32 to vector<8x1xf32>
    %314 = arith.maximumf %310, %313 : vector<8x1xf32>
    %cst_105 = arith.constant 9.99999974E-6 : f32
    %315 = vector.broadcast %cst_105 : f32 to vector<8x1xf32>
    %316 = arith.addf %314, %315 : vector<8x1xf32>
    %317 = math.rsqrt %316 : vector<8x1xf32>
    %318 = vector.broadcast %317 : vector<8x1xf32> to vector<8x32xf32>
    %319 = arith.mulf %312, %318 : vector<8x32xf32>
    %320 = vector.extract_strided_slice %25 {offsets = [0, 448], sizes = [8, 32], strides = [1, 1]} : vector<8x512xf32> to vector<8x32xf32>
    %cst_106 = arith.constant dense<0.000000e+00> : vector<8xf32>
    %321 = vector.multi_reduction <add>, %320, %cst_106 [1] : vector<8x32xf32> to vector<8xf32>
    %322 = vector.shape_cast %321 : vector<8xf32> to vector<8x1xf32>
    %cst_107 = arith.constant 3.200000e+01 : f32
    %323 = vector.broadcast %cst_107 : f32 to vector<8x1xf32>
    %324 = arith.divf %322, %323 : vector<8x1xf32>
    %325 = arith.mulf %320, %320 : vector<8x32xf32>
    %cst_108 = arith.constant dense<0.000000e+00> : vector<8xf32>
    %326 = vector.multi_reduction <add>, %325, %cst_108 [1] : vector<8x32xf32> to vector<8xf32>
    %327 = vector.shape_cast %326 : vector<8xf32> to vector<8x1xf32>
    %cst_109 = arith.constant 3.200000e+01 : f32
    %328 = vector.broadcast %cst_109 : f32 to vector<8x1xf32>
    %329 = arith.divf %327, %328 : vector<8x1xf32>
    %330 = arith.mulf %324, %324 : vector<8x1xf32>
    %331 = arith.subf %329, %330 : vector<8x1xf32>
    %332 = vector.broadcast %324 : vector<8x1xf32> to vector<8x32xf32>
    %333 = arith.subf %320, %332 : vector<8x32xf32>
    %cst_110 = arith.constant 0.000000e+00 : f32
    %334 = vector.broadcast %cst_110 : f32 to vector<8x1xf32>
    %335 = arith.maximumf %331, %334 : vector<8x1xf32>
    %cst_111 = arith.constant 9.99999974E-6 : f32
    %336 = vector.broadcast %cst_111 : f32 to vector<8x1xf32>
    %337 = arith.addf %335, %336 : vector<8x1xf32>
    %338 = math.rsqrt %337 : vector<8x1xf32>
    %339 = vector.broadcast %338 : vector<8x1xf32> to vector<8x32xf32>
    %340 = arith.mulf %333, %339 : vector<8x32xf32>
    %341 = vector.extract_strided_slice %25 {offsets = [0, 480], sizes = [8, 32], strides = [1, 1]} : vector<8x512xf32> to vector<8x32xf32>
    %cst_112 = arith.constant dense<0.000000e+00> : vector<8xf32>
    %342 = vector.multi_reduction <add>, %341, %cst_112 [1] : vector<8x32xf32> to vector<8xf32>
    %343 = vector.shape_cast %342 : vector<8xf32> to vector<8x1xf32>
    %cst_113 = arith.constant 3.200000e+01 : f32
    %344 = vector.broadcast %cst_113 : f32 to vector<8x1xf32>
    %345 = arith.divf %343, %344 : vector<8x1xf32>
    %346 = arith.mulf %341, %341 : vector<8x32xf32>
    %cst_114 = arith.constant dense<0.000000e+00> : vector<8xf32>
    %347 = vector.multi_reduction <add>, %346, %cst_114 [1] : vector<8x32xf32> to vector<8xf32>
    %348 = vector.shape_cast %347 : vector<8xf32> to vector<8x1xf32>
    %cst_115 = arith.constant 3.200000e+01 : f32
    %349 = vector.broadcast %cst_115 : f32 to vector<8x1xf32>
    %350 = arith.divf %348, %349 : vector<8x1xf32>
    %351 = arith.mulf %345, %345 : vector<8x1xf32>
    %352 = arith.subf %350, %351 : vector<8x1xf32>
    %353 = vector.broadcast %345 : vector<8x1xf32> to vector<8x32xf32>
    %354 = arith.subf %341, %353 : vector<8x32xf32>
    %cst_116 = arith.constant 0.000000e+00 : f32
    %355 = vector.broadcast %cst_116 : f32 to vector<8x1xf32>
    %356 = arith.maximumf %352, %355 : vector<8x1xf32>
    %cst_117 = arith.constant 9.99999974E-6 : f32
    %357 = vector.broadcast %cst_117 : f32 to vector<8x1xf32>
    %358 = arith.addf %356, %357 : vector<8x1xf32>
    %359 = math.rsqrt %358 : vector<8x1xf32>
    %360 = vector.broadcast %359 : vector<8x1xf32> to vector<8x32xf32>
    %361 = arith.mulf %354, %360 : vector<8x32xf32>
    %362 = tpu.concatenate %46, %67, %88, %109, %130, %151, %172, %193, %214, %235, %256, %277, %298, %319, %340, %361 in 1 : vector<8x32xf32>, vector<8x32xf32>, vector<8x32xf32>, vector<8x32xf32>, vector<8x32xf32>, vector<8x32xf32>, vector<8x32xf32>, vector<8x32xf32>, vector<8x32xf32>, vector<8x32xf32>, vector<8x32xf32>, vector<8x32xf32>, vector<8x32xf32>, vector<8x32xf32>, vector<8x32xf32>, vector<8x32xf32> -> vector<8x512xf32>
    %363 = vector.broadcast %14 : vector<1x512xf32> to vector<8x512xf32>
    %364 = arith.mulf %362, %363 : vector<8x512xf32>
    %365 = vector.broadcast %15 : vector<1x512xf32> to vector<8x512xf32>
    %366 = arith.addf %364, %365 : vector<8x512xf32>
    %367 = arith.addf %366, %11 : vector<8x512xf32>
    %cst_118 = arith.constant 0.000000e+00 : f32
    %368 = vector.broadcast %cst_118 : f32 to vector<8x512xf32>
    %369 = arith.maximumf %367, %368 : vector<8x512xf32>
    %c5 = arith.constant 5 : index
    %c0_119 = arith.constant 0 : index
    %370 = vector.load %arg3[%c5, %c0_119] : memref<6x512xf32, #tpu.memory_space<vmem>>, vector<1x128xf32>
    %c0_120 = arith.constant 0 : index
    %c0_121 = arith.constant 0 : index
    %371 = vector.load %arg8[%c0_120, %c0_121] : memref<512x128xf32, #tpu.memory_space<vmem>>, vector<512x128xf32>
    %cst_122 = arith.constant dense<0.000000e+00> : vector<8x128xf32>
    %372 = tpu.matmul %369, %371, %cst_122 {dimension_numbers = #tpu.dot_dimension_numbers<[1], [0], [0], [1], [0, 0, 1, 1], [], []>} : vector<8x512xf32>, vector<512x128xf32>, vector<8x128xf32> -> vector<8x128xf32>
    %373 = vector.broadcast %370 : vector<1x128xf32> to vector<8x128xf32>
    %374 = arith.addf %372, %373 : vector<8x128xf32>
    %c0_123 = arith.constant 0 : index
    %c0_124 = arith.constant 0 : index
    %375 = vector.load %arg9[%c0_123, %c0_124] : memref<8x128xf32, #tpu.memory_space<vmem>>, vector<8x128xf32>
    tpu.vector_store %arg9[%c0_123, %c0_124], %374 {strides = array<i32>} : memref<8x128xf32, #tpu.memory_space<vmem>>, vector<8x128xf32>,
    return
  }
  func.func @transform_0(%arg0: i32) -> (i32, i32) {
    %c0_i32 = arith.constant 0 : i32
    %c0_i32_0 = arith.constant 0 : i32
    return %arg0, %c0_i32 : i32, i32
  }
  func.func @transform_1(%arg0: i32) -> (i32, i32) {
    %c0_i32 = arith.constant 0 : i32
    %c0_i32_0 = arith.constant 0 : i32
    return %arg0, %c0_i32 : i32, i32
  }
  func.func @transform_2(%arg0: i32) -> (i32, i32) {
    %c0_i32 = arith.constant 0 : i32
    %c0_i32_0 = arith.constant 0 : i32
    %c0_i32_1 = arith.constant 0 : i32
    return %c0_i32, %c0_i32_0 : i32, i32
  }
  func.func @transform_3(%arg0: i32) -> (i32, i32) {
    %c0_i32 = arith.constant 0 : i32
    %c0_i32_0 = arith.constant 0 : i32
    %c0_i32_1 = arith.constant 0 : i32
    return %c0_i32, %c0_i32_0 : i32, i32
  }
  func.func @transform_4(%arg0: i32) -> (i32, i32) {
    %c0_i32 = arith.constant 0 : i32
    %c0_i32_0 = arith.constant 0 : i32
    %c0_i32_1 = arith.constant 0 : i32
    return %c0_i32, %c0_i32_0 : i32, i32
  }
  func.func @transform_5(%arg0: i32) -> (i32, i32) {
    %c0_i32 = arith.constant 0 : i32
    %c0_i32_0 = arith.constant 0 : i32
    %c0_i32_1 = arith.constant 0 : i32
    return %c0_i32, %c0_i32_0 : i32, i32
  }
  func.func @transform_6(%arg0: i32) -> (i32, i32) {
    %c0_i32 = arith.constant 0 : i32
    %c0_i32_0 = arith.constant 0 : i32
    %c0_i32_1 = arith.constant 0 : i32
    return %c0_i32, %c0_i32_0 : i32, i32
  }
  func.func @transform_7(%arg0: i32) -> (i32, i32) {
    %c0_i32 = arith.constant 0 : i32
    %c0_i32_0 = arith.constant 0 : i32
    %c0_i32_1 = arith.constant 0 : i32
    return %c0_i32, %c0_i32_0 : i32, i32
  }
  func.func @transform_8(%arg0: i32) -> (i32, i32) {
    %c0_i32 = arith.constant 0 : i32
    %c0_i32_0 = arith.constant 0 : i32
    return %arg0, %c0_i32 : i32, i32
  }
}

</mosaic_0001>

<bundles_post_ra>
// kernel: tpu_custom_call.1
= control target key start
LH: loop header
LB: loop body
LE: loop exit
PB: predicated region body
PF: predicated region fallthrough
CT: control target
= control target key end

     0   :  { %s3979_s0 = inlined_call_operand.hbm [shape: f32[16,64], index: 0, kind: input, shape index: {}]   ;;  %s3980_s1 = inlined_call_operand.hbm [shape: f32[16,64], index: 1, kind: input, shape index: {}]   ;;  %s3981_s2 = inlined_call_operand.hbm [shape: f32[6,512], index: 2, kind: input, shape index: {}]   ;;  %s3982_s3 = inlined_call_operand.hbm [shape: f32[64,512], index: 3, kind: input, shape index: {}]   ;;  %s3983_s4 = inlined_call_operand.hbm [shape: f32[64,512], index: 4, kind: input, shape index: {}]   ;;  %s3984_s5 = inlined_call_operand.hbm [shape: f32[512,512], index: 5, kind: input, shape index: {}]   ;;  %s3985_s6 = inlined_call_operand.hbm [shape: f32[512,512], index: 6, kind: input, shape index: {}]   ;;  %s3986_s7 = inlined_call_operand.hbm [shape: f32[512,128], index: 7, kind: input, shape index: {}]   ;;  %s3987_s8 = inlined_call_operand.hbm [shape: f32[16,128], index: 8, kind: output, shape index: {}]  }
   0x1   :  { %3988 = sst [smem:[#allocation25_spill]] %s3981_s2 }
   0x2   :  { %3989 = sst [smem:[#allocation26_spill]] %s3982_s3 }
   0x3   :  { %3990 = sst [smem:[#allocation27_spill]] %s3983_s4 }
   0x4   :  { %3991 = sst [smem:[#allocation28_spill]] %s3984_s5 }
   0x5   :  { %3992 = sst [smem:[#allocation29_spill]] %s3985_s6 }
   0x6   :  { %3993 = sst [smem:[#allocation30_spill]] %s3986_s7 }
   0x7   :  { %13 = vsyncpa [#allocation3], 0 }
   0x8   :  { %15 = vsyncpa [#allocation3 + $0x1], 0 }
   0x9   :  { %16 = vsyncpa [#allocation6], 0 }
   0xa   :  { %18 = vsyncpa [#allocation6 + $0x1], 0 }
   0xb   :  { %19 = vsyncpa [#allocation9], 0 }
   0xc   :  { %20 = vsyncpa [#allocation12], 0 }
   0xd   :  { %21 = vsyncpa [#allocation15], 0 }
   0xe   :  { %22 = vsyncpa [#allocation4], 0 }
   0xf   :  { %24 = vsyncpa [#allocation4 + $0x1], 0  ;;  %s3303_s27 = smov 0   ;;  %s3305_s28 = smov 0  }
  0x10   :  { %s3307_s29 = smov 0   ;;  %s3309_s30 = smov 0  }
  0x11 LB: > { %s3994_s2 = sld [smem:[#allocation25_spill]]  ;;  %s3327_s12 = sadd.s32 4294967295, %s3242_s30   ;;  %s3242_s30 = sphi %s3309_s30, %s4023_s30   ;;  %s3238_s29 = sphi %s3307_s29, %s4022_s29   ;;  %s3234_s28 = sphi %s3305_s28, %s4021_s28   ;;  %s3230_s27 = sphi %s3303_s27, %s4020_s27  }
  0x12   : > { %p2728_p0 = scmp.ge.s32.totalorder %s3242_s30, 1  ;;  %p51_p1 = scmp.eq.s32.totalorder %s3327_s12, 0 }
  0x13   : > { %p239_p2 = scmp.lt.s32.totalorder %s3242_s30, 3  ;;  %s3244_s14 = smov [#allocation7]  }
  0x14   : > { %s253_s15 = sshll.u32 %s3244_s14, 4  ;;  %s3996_s3 = sld [smem:[#allocation26_spill]]  ;;  %s254_s15 = int_to_ptr.vmem [resolvable:$true] %s253_s15 }
  0x15   : > { %p3332_p3 = pnand %p2728_p0, %p239_p2  ;;  %s3245_s20 = smov [#allocation8]  }
  0x16   : > { %s264_s21 = sshll.u32 %s3245_s20, 4  ;;  %s3246_s22 = smov 512   ;;  %s265_s21 = int_to_ptr.vmem [resolvable:$true] %s264_s21 }
  0x17   : > { %s251_s11 = sshll.u32 %s3994_s2, 4  ;;  %p2792_p5 = pneg %p3332_p3  ;;  %s252_s11 = int_to_ptr.hbm [resolvable:$true] %s251_s11 }
  0x18   : > { %s3247_s23 = smov 32   ;;  %s3998_s5 = sld [smem:[#allocation28_spill]] }
  0x19   : > { %p3344_p6 = pnand %p2792_p5, %p51_p1  ;;  %s3248_s9 = smov [#allocation11]  }
  0x1a   : > { %s262_s18 = sshll.u32 %s3996_s3, 4  ;;  %s292_s10 = sshll.u32 %s3248_s9, 4  ;;  %s263_s18 = int_to_ptr.hbm [resolvable:$true] %s262_s18  ;;  %s293_s10 = int_to_ptr.vmem [resolvable:$true] %s292_s10 }
  0x1b   : > { %2795 = dma.hbm_to_vmem [thread:$0]  (!%p3344_p6), %s252_s11, 512, %s254_s15, [#allocation6]  }
  0x1c   : > { %2798 = dma.hbm_to_vmem [thread:$0]  (!%p3344_p6), %s263_s18, 4096, %s265_s21, [#allocation9], %s3246_s22, %s3246_s22, %s3247_s23  }
  0x1d   : > { %s3999_s4 = sld [smem:[#allocation27_spill]]  ;;  %s3249_s11 = smov [#allocation10]  }
  0x1e   : > { %s290_s26 = sshll.u32 %s3998_s5, 4  ;;  %s278_s15 = sshll.u32 %s3249_s11, 4  ;;  %s291_s26 = int_to_ptr.hbm [resolvable:$true] %s290_s26  ;;  %s279_s15 = int_to_ptr.vmem [resolvable:$true] %s278_s15 }
  0x1f   : > { %2804 = dma.hbm_to_vmem [thread:$0]  (!%p3344_p6), %s291_s26, 32768, %s293_s10, [#allocation12], %s3246_s22, %s3246_s22, %s3247_s23  }
  0x20   : > { %s4000_s6 = sld [smem:[#allocation29_spill]]  ;;  %s3250_s9 = smov [#allocation13]  }
  0x21   : > { %s4001_s7 = sld [smem:[#allocation30_spill]]  ;;  %s306_s10 = sshll.u32 %s3250_s9, 4  ;;  %s307_s10 = int_to_ptr.vmem [resolvable:$true] %s306_s10 }
  0x22   : > { %s3251_s14 = smov [#allocation14]   ;;  %s3253_s11 = smov 8  }
  0x23   : > { %s276_s17 = sshll.u32 %s3999_s4, 4  ;;  %s320_s16 = sshll.u32 %s3251_s14, 4  ;;  %s277_s17 = int_to_ptr.hbm [resolvable:$true] %s276_s17  ;;  %s321_s16 = int_to_ptr.vmem [resolvable:$true] %s320_s16 }
  0x24   : > { %2801 = dma.hbm_to_vmem [thread:$0]  (!%p3344_p6), %s277_s17, 4096, %s279_s15, [#allocation9], %s3246_s22, %s3246_s22, %s3247_s23  }
  0x25   : > { %s3252_s17 = smov 128   ;;  %s2727_s15 = sadd.s32 4294967294, %s3242_s30  }
  0x26   : > { %s304_s21 = sshll.u32 %s4000_s6, 4  ;;  %s3374_s20 = sadd.s32 1, %s3242_s30   ;;  %s305_s21 = int_to_ptr.hbm [resolvable:$true] %s304_s21 }
  0x27   : > { %s318_s26 = sshll.u32 %s4001_s7, 4  ;;  %s34_s18 = ssub.s32 %s3242_s30, %s3374_s20  ;;  %s319_s26 = int_to_ptr.hbm [resolvable:$true] %s318_s26 }
  0x28   : > { %2807 = dma.hbm_to_vmem [thread:$0]  (!%p3344_p6), %s305_s21, 32768, %s307_s10, [#allocation12], %s3246_s22, %s3246_s22, %s3247_s23  }
  0x29   : > { %2810 = dma.hbm_to_vmem [thread:$0]  (!%p3344_p6), %s319_s26, 8192, %s321_s16, [#allocation15], %s3252_s17, %s3252_s17, %s3253_s11  }
  0x2a   : > { %s37_s24 = sadd.s32 1, %s3238_s29  ;;  %p35_p7 = scmp.eq.s32.totalorder %s34_s18, 0 }
  0x2b   : > { %p44_p8 = scmp.ne.s32.totalorder %s3238_s29, %s3234_s28  ;;  %p45_p9 = scmp.eq.s32.totalorder %s3242_s30, 0 }
  0x2c   : > { %p50_p10 = scmp.ne.s32.totalorder %s3234_s28, %s3230_s27  ;;  %p226_p13 = scmp.eq.s32.totalorder %s3327_s12, 1 }
  0x2d   : > { %s3385_s22 = scalar_select %p35_p7, %s3238_s29, %s37_s24  }
  0x2e   : > { %p3387_p11 = por %p45_p9, %p44_p8  ;;  %p3393_p12 = por %p51_p1, %p50_p10 }
  0x2f   : > { %4002 = sst [smem:[#allocation24_spill]] %s3385_s22  ;;  %p232_p0 = scmp.eq.s32.totalorder %s2727_s15, 1 }
  0x30   : > { %p2828_p2 = scmp.lt.s32.totalorder %s3242_s30, 2  ;;  %s334_s21 = sand.u32 1, %s3238_s29  }
  0x31   : > { %p3400_p5 = por %p226_p13, %p44_p8  ;;  %p3404_p6 = por %p232_p0, %p50_p10 }
  0x32   : > { %s3408_s9 = sshll.u32 %s334_s21, 3  ;;  %s2737_s10 = sshll.u32 %s3242_s30, 3 }
  0x33   : > { %s342_s17 = scalar_lea.hbm %s3979_s0, %s2737_s10  ;;  %s338_s11 = scalar_lea.vmem [#allocation2], %s3408_s9 }
  0x34   : > { %s346_s15 = sshll.u32 %s338_s11, 4  ;;  %s344_s18 = sshll.u32 %s342_s17, 4  ;;  %s347_s15 = int_to_ptr.vmem [resolvable:$true] %s346_s15  ;;  %s345_s18 = int_to_ptr.hbm [resolvable:$true] %s344_s18 }
  0x35   : > { %p3417_p7 = pnand %p2828_p2, %p3387_p11  ;;  %s361_s4 = scalar_lea.hbm %s3980_s1, %s2737_s10 }
  0x36   : > { %s353_s5 = sand.u32 1, %s3242_s30   ;;  %s335_s6 = scalar_lea.sflag [#allocation3], %s334_s21 }
  0x37   : > { %s3096_s14 = sshra.s32 %s345_s18, 4  ;;  %p3100_p9 = pneg %p3417_p7  ;;  %s3097_s14 = int_to_ptr.hbm [resolvable:$true] %s3096_s14 }
  0x38   : > { %s3098_s16 = scalar_lea.hbm %s3097_s14, 8  ;;  %s3103_s11 = scalar_lea.hbm %s3979_s0, 16 }
  0x39   : > { %p3099_p8 = scmp.ne.s32.totalorder %s3097_s14, %s3098_s16  ;;  %p3104_p13 = scmp.lt.s32.totalorder %s3097_s14, %s3979_s0 }
  0x3a   : > { %p3105_p0 = scmp.lt.s32.totalorder %s3103_s11, %s3098_s16 }
  0x3b   : > { %p3101_p10 = pnand %p3100_p9, %p3099_p8 }
  0x3c   : > { %p3106_p2 = por %p3105_p0, %p3104_p13 }
  0x3d   : > { %p3102_p11 = pneg %p3101_p10 }
  0x3f   : > { %p3107_p4 = pnand %p3106_p2, %p3102_p11 }
  0x41   : > { %3110 = shalt.err (!%p3107_p4)
}
  0x42   : > { %2814 = dma.hbm_to_vmem [thread:$0]  (!%p3417_p7), %s345_s18, 128, %s347_s15, %s335_s6  }
  0x43   : > { %s363_s21 = sshll.u32 %s361_s4, 4  ;;  %s357_s10 = scalar_lea.vmem [#allocation5], %s3408_s9  ;;  %s364_s21 = int_to_ptr.hbm [resolvable:$true] %s363_s21 }
  0x44   : > { %s365_s7 = sshll.u32 %s357_s10, 4  ;;  %s354_s23 = scalar_lea.sflag [#allocation6], %s353_s5  ;;  %s366_s7 = int_to_ptr.vmem [resolvable:$true] %s365_s7 }
  0x45   : > { %s3126_s17 = sshra.s32 %s364_s21, 4  ;;  %s3133_s11 = scalar_lea.hbm %s3980_s1, 16  ;;  %s3127_s17 = int_to_ptr.hbm [resolvable:$true] %s3126_s17 }
  0x46   : > { %s3128_s22 = scalar_lea.hbm %s3127_s17, 8  ;;  %p3134_p4 = scmp.lt.s32.totalorder %s3127_s17, %s3980_s1 }
  0x47   : > { %p3129_p8 = scmp.ne.s32.totalorder %s3127_s17, %s3128_s22  ;;  %p3135_p13 = scmp.lt.s32.totalorder %s3133_s11, %s3128_s22 }
  0x49   : > { %p3131_p10 = pnand %p3129_p8, %p3100_p9  ;;  %p3136_p0 = por %p3135_p13, %p3134_p4 }
  0x4b   : > { %p3132_p11 = pneg %p3131_p10 }
  0x4d   : > { %p3137_p2 = pnand %p3136_p0, %p3132_p11 }
  0x4f   : > { %3140 = shalt.err (!%p3137_p2)
}
  0x50   : > { %2817 = dma.hbm_to_vmem [thread:$0]  (!%p3417_p7), %s364_s21, 128, %s366_s7, %s354_s23  }
  0x51   : > { %374 = sbr.rel (%p3332_p3) target bundleno = 1284 (0x504), region = 52  ;;  %s3453_s4 = sand.u32 (!%p3332_p3), 1, %s3234_s28  }
  0x52   : > { %s3456_s5 = sshll.u32 (!%p3332_p3), %s3453_s4, 3  ;;  %s377_s9 = scalar_lea.sflag (!%p3332_p3), [#allocation3], %s3453_s4 }
  0x53   : > { %s380_s22 = scalar_lea.vmem (!%p3332_p3), [#allocation2], %s3456_s5 }
  0x56   : > { %3201 = dma.done.wait (%p3393_p12), %s377_s9, 128  }
  0x57   : > { %3203 = vsyncadd (%p3393_p12), %s377_s9, 4294967168  ;;  %s386_s7 = sand.u32 1, %s3327_s12   ;;  %s390_s15 = scalar_lea.vmem [#allocation5], %s3456_s5 }
  0x58   : > { %s387_s13 = scalar_lea.sflag [#allocation6], %s386_s7 }
  0x59   : > { %3205 = dma.done.wait (%p3393_p12), %s387_s13, 128  }
  0x5a   : > { %3207 = vsyncadd (%p3393_p12), %s387_s13, 4294967168 }
  0x5b   : > { %3209 = dma.done.wait (%p51_p1), [#allocation6], 512  }
  0x5c   : > { %3211 = vsyncadd (%p51_p1), [#allocation6], 4294966784 }
  0x5d   : > { %3213 = dma.done.wait (%p51_p1), [#allocation9], 8192  }
  0x5e   : > { %3215 = vsyncadd (%p51_p1), [#allocation9], 4294959104 }
  0x5f   : > { %3217 = dma.done.wait (%p51_p1), [#allocation12], 65536  }
  0x60   : > { %3219 = vsyncadd (%p51_p1), [#allocation12], 4294901760 }
  0x61   : > { %3221 = dma.done.wait (%p51_p1), [#allocation15], 8192  }
  0x62   : > { %3223 = vsyncadd (%p51_p1), [#allocation15], 4294959104  ;;  %v522_v0 = vld [vmem:[#allocation10 + $0xe0] sm:$0xff]  ;;  %v523_v1 = vld [vmem:[#allocation10 + $0xe8] sm:$0xff]  ;;  %vm526_vm0 = vcmask 523264   ;;  %s3254_s19 = smov 64  }
  0x63   : > { %v524_v2 = vld [vmem:[#allocation10 + $0xf0] sm:$0xff]  ;;  %538 = vmatpush.msra.mxu0 %v522_v0  ;;  %558 = vmatpush.msra.mxu1 %v523_v1  ;;  %v525_v3 = vld [vmem:[#allocation10 + $0xf8] sm:$0xff]  ;;  %v518_v4 = vld [vmem:[#allocation10 + $0xc0] sm:$0xff]  ;;  %s3255_s18 = smov 96   ;;  %s3256_s24 = smov 32   ;;  %vm1892_vm1 = vcmask 261120  }
  0x64   : > { %v519_v5 = vld [vmem:[#allocation10 + $0xc8] sm:$0xff]  ;;  %578 = vmatpush.msra.mxu2 %v524_v2  ;;  %598 = vmatpush.msra.mxu3 %v525_v3  ;;  %v520_v6 = vld [vmem:[#allocation10 + $0xd0] sm:$0xff]  ;;  %v521_v7 = vld [vmem:[#allocation10 + $0xd8] sm:$0xff]  ;;  %s2759_s3 = sshll.u32 %s3327_s12, 3  ;;  %s458_s17 = scalar_lea.vmem [#allocation16], %s3456_s5 }
  0x65   : > { %v514_v8 = vld [vmem:[#allocation10 + $0xa0] sm:$0xff]  ;;  %539 = vmatpush.msra.mxu0 %v518_v4  ;;  %559 = vmatpush.msra.mxu1 %v519_v5  ;;  %v515_v9 = vld [vmem:[#allocation10 + $0xa8] sm:$0xff]  ;;  %v516_v10 = vld [vmem:[#allocation10 + $0xb0] sm:$0xff]  ;;  %s2572_s23 = scalar_lea.hbm %s3987_s8, %s2759_s3  ;;  %s2574_s14 = sshll.u32 %s458_s17, 4  ;;  %s2575_s14 = int_to_ptr.vmem [resolvable:$true] %s2574_s14 }
  0x66   : > { %v517_v11 = vld [vmem:[#allocation10 + $0xb8] sm:$0xff]  ;;  %579 = vmatpush.msra.mxu2 %v520_v6  ;;  %599 = vmatpush.msra.mxu3 %v521_v7  ;;  %v510_v12 = vld [vmem:[#allocation10 + $0x80] sm:$0xff]  ;;  %v511_v13 = vld [vmem:[#allocation10 + $0x88] sm:$0xff]  ;;  %s2576_s16 = sshll.u32 %s2572_s23, 4  ;;  %s2562_s11 = scalar_lea.sflag [#allocation4], %s3453_s4  ;;  %s2577_s16 = int_to_ptr.hbm [resolvable:$true] %s2576_s16 }
  0x67   : > { %540 = vmatpush.msra.mxu0 %v514_v8  ;;  %560 = vmatpush.msra.mxu1 %v515_v9  ;;  %v512_v14 = vld [vmem:[#allocation10 + $0x90] sm:$0xff]  ;;  %v513_v15 = vld [vmem:[#allocation10 + $0x98] sm:$0xff]  ;;  %v506_v16 = vld [vmem:[#allocation10 + $0x60] sm:$0xff]  ;;  %s3170_s12 = sshra.s32 %s2577_s16, 4  ;;  %s3176_s5 = scalar_lea.hbm %s3987_s8, 16  ;;  %s3171_s12 = int_to_ptr.hbm [resolvable:$true] %s3170_s12 }
  0x68   : > { %580 = vmatpush.msra.mxu2 %v516_v10  ;;  %600 = vmatpush.msra.mxu3 %v517_v11  ;;  %v507_v17 = vld [vmem:[#allocation10 + $0x68] sm:$0xff]  ;;  %v508_v18 = vld [vmem:[#allocation10 + $0x70] sm:$0xff]  ;;  %v509_v19 = vld [vmem:[#allocation10 + $0x78] sm:$0xff]  ;;  %s3172_s2 = scalar_lea.hbm %s3171_s12, 8  ;;  %p3177_p7 = scmp.lt.s32.totalorder %s3171_s12, %s3987_s8 }
  0x69   : > { %541 = vmatpush.msra.mxu0 %v510_v12  ;;  %561 = vmatpush.msra.mxu1 %v511_v13  ;;  %v502_v20 = vld [vmem:[#allocation10 + $0x40] sm:$0xff]  ;;  %v503_v21 = vld [vmem:[#allocation10 + $0x48] sm:$0xff]  ;;  %v504_v22 = vld [vmem:[#allocation10 + $0x50] sm:$0xff]  ;;  %p3173_p1 = scmp.ne.s32.totalorder %s3171_s12, %s3172_s2  ;;  %p3178_p9 = scmp.lt.s32.totalorder %s3176_s5, %s3172_s2 }
  0x6a   : > { %581 = vmatpush.msra.mxu2 %v512_v14  ;;  %601 = vmatpush.msra.mxu3 %v513_v15  ;;  %v505_v23 = vld [vmem:[#allocation10 + $0x58] sm:$0xff]  ;;  %v498_v24 = vld [vmem:[#allocation10 + $0x20] sm:$0xff]  ;;  %v499_v25 = vld [vmem:[#allocation10 + $0x28] sm:$0xff] }
  0x6b   : > { %542 = vmatpush.msra.mxu0 %v506_v16  ;;  %562 = vmatpush.msra.mxu1 %v507_v17  ;;  %v500_v26 = vld [vmem:[#allocation10 + $0x30] sm:$0xff]  ;;  %v501_v27 = vld [vmem:[#allocation10 + $0x38] sm:$0xff]  ;;  %v494_v28 = vld [vmem:[#allocation10] sm:$0xff]  ;;  %p3174_p3 = pnand %p3173_p1, %p3400_p5  ;;  %p3179_p8 = por %p3178_p9, %p3177_p7 }
  0x6c   : > { %582 = vmatpush.msra.mxu2 %v508_v18  ;;  %602 = vmatpush.msra.mxu3 %v509_v19  ;;  %v495_v29 = vld [vmem:[#allocation10 + $0x8] sm:$0xff]  ;;  %v496_v30 = vld [vmem:[#allocation10 + $0x10] sm:$0xff]  ;;  %v497_v31 = vld [vmem:[#allocation10 + $0x18] sm:$0xff] }
  0x6d   : > { %543 = vmatpush.msra.mxu0 %v502_v20  ;;  %563 = vmatpush.msra.mxu1 %v503_v21  ;;  %v489_v32 = vld [vmem:[#allocation8 + $0xe0] sm:$0xff]  ;;  %v490_v33 = vld [vmem:[#allocation8 + $0xe8] sm:$0xff]  ;;  %v491_v34 = vld [vmem:[#allocation8 + $0xf0] sm:$0xff]  ;;  %p3175_p12 = pneg %p3174_p3 }
  0x6e   : > { %583 = vmatpush.msra.mxu2 %v504_v22  ;;  %603 = vmatpush.msra.mxu3 %v505_v23  ;;  %v492_v35 = vld [vmem:[#allocation8 + $0xf8] sm:$0xff]  ;;  %v485_v36 = vld [vmem:[#allocation8 + $0xc0] sm:$0xff]  ;;  %v486_v37 = vld [vmem:[#allocation8 + $0xc8] sm:$0xff] }
  0x6f   : > { %544 = vmatpush.msra.mxu0 %v498_v24  ;;  %564 = vmatpush.msra.mxu1 %v499_v25  ;;  %v487_v38 = vld [vmem:[#allocation8 + $0xd0] sm:$0xff]  ;;  %v488_v39 = vld [vmem:[#allocation8 + $0xd8] sm:$0xff]  ;;  %v481_v40 = vld [vmem:[#allocation8 + $0xa0] sm:$0xff]  ;;  %p3180_p10 = pnand %p3179_p8, %p3175_p12 }
  0x70   : > { %584 = vmatpush.msra.mxu2 %v500_v26  ;;  %604 = vmatpush.msra.mxu3 %v501_v27  ;;  %v482_v41 = vld [vmem:[#allocation8 + $0xa8] sm:$0xff]  ;;  %v483_v42 = vld [vmem:[#allocation8 + $0xb0] sm:$0xff]  ;;  %v484_v43 = vld [vmem:[#allocation8 + $0xb8] sm:$0xff] }
  0x71   : > { %545 = vmatpush.msra.mxu0 %v494_v28  ;;  %565 = vmatpush.msra.mxu1 %v495_v29  ;;  %v477_v44 = vld [vmem:[#allocation8 + $0x80] sm:$0xff]  ;;  %v478_v45 = vld [vmem:[#allocation8 + $0x88] sm:$0xff]  ;;  %v479_v46 = vld [vmem:[#allocation8 + $0x90] sm:$0xff] }
  0x72   : > { %585 = vmatpush.msra.mxu2 %v496_v30  ;;  %605 = vmatpush.msra.mxu3 %v497_v31  ;;  %v480_v47 = vld [vmem:[#allocation8 + $0x98] sm:$0xff]  ;;  %v473_v49 = vld [vmem:[#allocation8 + $0x60] sm:$0xff]  ;;  %v474_v50 = vld [vmem:[#allocation8 + $0x68] sm:$0xff] }
  0x73   : > { %621 = vmatpush.msrb.mxu0 %v489_v32  ;;  %641 = vmatpush.msrb.mxu1 %v490_v33  ;;  %v493_v48 = vld [vmem:[%s390_s15] sm:$0xff]  ;;  %v469_v53 = vld [vmem:[#allocation8 + $0x40] sm:$0xff]  ;;  %v470_v54 = vld [vmem:[#allocation8 + $0x48] sm:$0xff] }
  0x74   : > { %661 = vmatpush.msrb.mxu2 %v491_v34  ;;  %681 = vmatpush.msrb.mxu3 %v492_v35  ;;  %v475_v51 = vld [vmem:[#allocation8 + $0x70] sm:$0xff]  ;;  %v476_v52 = vld [vmem:[#allocation8 + $0x78] sm:$0xff]  ;;  %v465_v57 = vld [vmem:[#allocation8 + $0x20] sm:$0xff] }
  0x75   : > { %622 = vmatpush.msrb.mxu0 %v485_v36  ;;  %642 = vmatpush.msrb.mxu1 %v486_v37  ;;  %v471_v55 = vld [vmem:[#allocation8 + $0x50] sm:$0xff]  ;;  %v472_v56 = vld [vmem:[#allocation8 + $0x58] sm:$0xff]  ;;  %v466_v58 = vld [vmem:[#allocation8 + $0x28] sm:$0xff] }
  0x76   : > { %662 = vmatpush.msrb.mxu2 %v487_v38  ;;  %682 = vmatpush.msrb.mxu3 %v488_v39  ;;  %v467_v59 = vld [vmem:[#allocation8 + $0x30] sm:$0xff]  ;;  %v468_v60 = vld [vmem:[#allocation8 + $0x38] sm:$0xff]  ;;  %v461_v61 = vld [vmem:[#allocation8] sm:$0xff] }
  0x77   : > { %623 = vmatpush.msrb.mxu0 %v481_v40  ;;  %643 = vmatpush.msrb.mxu1 %v482_v41  ;;  %v462_v62 = vld [vmem:[#allocation8 + $0x8] sm:$0xff]  ;;  %v463_v63 = vld [vmem:[#allocation8 + $0x10] sm:$0xff]  ;;  %v464_v0 = vld [vmem:[#allocation8 + $0x18] sm:$0xff] }
  0x78   : > { %663 = vmatpush.msrb.mxu2 %v483_v42  ;;  %683 = vmatpush.msrb.mxu3 %v484_v43  ;;  %v460_v1 = vld [vmem:[%s380_s22] sm:$0xff] }
  0x79   : > { %624 = vmatpush.msrb.mxu0 %v477_v44  ;;  %644 = vmatpush.msrb.mxu1 %v478_v45  ;;  %v778_v2 = vld [vmem:[#allocation11 + $0x1e0] sm:$0xff] }
  0x7a   : > { %664 = vmatpush.msrb.mxu2 %v479_v46  ;;  %684 = vmatpush.msrb.mxu3 %v480_v47  ;;  %v842_v3 = vld [vmem:[#allocation11 + $0x3e0] sm:$0xff] }
  0x7b   : > { %2750 = vmatmul.msk.f32.vlgmr.msra.gmra.mxu0 %vm526_vm0, %v493_v48  ;;  %2751 = vmatmul.msk.f32.vlgmr.msra.gmra.mxu1 %vm526_vm0, %v493_v48  ;;  %v906_v4 = vld [vmem:[#allocation11 + $0x5e0] sm:$0xff] }
  0x7c   : > { %2752 = vmatmul.msk.f32.vlgmr.msra.gmra.mxu2 %vm526_vm0, %v493_v48  ;;  %2753 = vmatmul.msk.f32.vlgmr.msra.gmra.mxu3 %vm526_vm0, %v493_v48  ;;  %v970_v5 = vld [vmem:[#allocation11 + $0x7e0] sm:$0xff] }
  0x7d   : > { %625 = vmatpush.msrb.mxu0 %v473_v49  ;;  %645 = vmatpush.msrb.mxu1 %v474_v50  ;;  %v774_v6 = vld [vmem:[#allocation11 + $0x1c0] sm:$0xff] }
  0x7e   : > { %665 = vmatpush.msrb.mxu2 %v475_v51  ;;  %685 = vmatpush.msrb.mxu3 %v476_v52  ;;  %v838_v7 = vld [vmem:[#allocation11 + $0x3c0] sm:$0xff] }
  0x7f   : > { %626 = vmatpush.msrb.mxu0 %v469_v53  ;;  %646 = vmatpush.msrb.mxu1 %v470_v54  ;;  %v902_v8 = vld [vmem:[#allocation11 + $0x5c0] sm:$0xff] }
  0x80   : > { %666 = vmatpush.msrb.mxu2 %v471_v55  ;;  %686 = vmatpush.msrb.mxu3 %v472_v56  ;;  %v966_v9 = vld [vmem:[#allocation11 + $0x7c0] sm:$0xff] }
  0x81   : > { %627 = vmatpush.msrb.mxu0 %v465_v57  ;;  %647 = vmatpush.msrb.mxu1 %v466_v58  ;;  %v770_v10 = vld [vmem:[#allocation11 + $0x1a0] sm:$0xff] }
  0x82   : > { %667 = vmatpush.msrb.mxu2 %v467_v59  ;;  %687 = vmatpush.msrb.mxu3 %v468_v60  ;;  %v834_v11 = vld [vmem:[#allocation11 + $0x3a0] sm:$0xff] }
  0x83   : > { %628 = vmatpush.msrb.mxu0 %v461_v61  ;;  %648 = vmatpush.msrb.mxu1 %v462_v62  ;;  %v898_v12 = vld [vmem:[#allocation11 + $0x5a0] sm:$0xff] }
  0x84   : > { %668 = vmatpush.msrb.mxu2 %v463_v63  ;;  %688 = vmatpush.msrb.mxu3 %v464_v0  ;;  %v962_v13 = vld [vmem:[#allocation11 + $0x7a0] sm:$0xff]  ;;  %v779_v0 = vld [vmem:[#allocation11 + $0x1e8] sm:$0xff] }
  0x85   : > { %2754 = vmatmul.msk.f32.vlgmr.msrb.gmra.mxu0 %vm526_vm0, %v460_v1  ;;  %2755 = vmatmul.msk.f32.vlgmr.msrb.gmra.mxu1 %vm526_vm0, %v460_v1  ;;  %v766_v14 = vld [vmem:[#allocation11 + $0x180] sm:$0xff] }
  0x86   : > { %2756 = vmatmul.msk.f32.vlgmr.msrb.gmra.mxu2 %vm526_vm0, %v460_v1  ;;  %2757 = vmatmul.msk.f32.vlgmr.msrb.gmra.mxu3 %vm526_vm0, %v460_v1  ;;  %v830_v15 = vld [vmem:[#allocation11 + $0x380] sm:$0xff]  ;;  %v843_v1 = vld [vmem:[#allocation11 + $0x3e8] sm:$0xff] }
  0x87   : > { %983 = vmatpush.msra.mxu0 %v778_v2  ;;  %1003 = vmatpush.msra.mxu1 %v842_v3  ;;  %v894_v16 = vld [vmem:[#allocation11 + $0x580] sm:$0xff] }
  0x88   : > { %1023 = vmatpush.msra.mxu2 %v906_v4  ;;  %1043 = vmatpush.msra.mxu3 %v970_v5  ;;  %v958_v17 = vld [vmem:[#allocation11 + $0x780] sm:$0xff]  ;;  %v775_v4 = vld [vmem:[#allocation11 + $0x1c8] sm:$0xff] }
  0x89   : > { %984 = vmatpush.msra.mxu0 %v774_v6  ;;  %1004 = vmatpush.msra.mxu1 %v838_v7  ;;  %v762_v18 = vld [vmem:[#allocation11 + $0x160] sm:$0xff]  ;;  %v839_v5 = vld [vmem:[#allocation11 + $0x3c8] sm:$0xff] }
  0x8a   : > { %1024 = vmatpush.msra.mxu2 %v902_v8  ;;  %1044 = vmatpush.msra.mxu3 %v966_v9  ;;  %v826_v19 = vld [vmem:[#allocation11 + $0x360] sm:$0xff]  ;;  %v907_v6 = vld [vmem:[#allocation11 + $0x5e8] sm:$0xff] }
  0x8b   : > { %985 = vmatpush.msra.mxu0 %v770_v10  ;;  %1005 = vmatpush.msra.mxu1 %v834_v11  ;;  %v890_v20 = vld [vmem:[#allocation11 + $0x560] sm:$0xff]  ;;  %v971_v7 = vld [vmem:[#allocation11 + $0x7e8] sm:$0xff] }
  0x8c   : > { %1025 = vmatpush.msra.mxu2 %v898_v12  ;;  %1045 = vmatpush.msra.mxu3 %v962_v13  ;;  %v954_v21 = vld [vmem:[#allocation11 + $0x760] sm:$0xff]  ;;  %v771_v8 = vld [vmem:[#allocation11 + $0x1a8] sm:$0xff] }
  0x8d   : > { %986 = vmatpush.msra.mxu0 %v766_v14  ;;  %1006 = vmatpush.msra.mxu1 %v830_v15  ;;  %v758_v22 = vld [vmem:[#allocation11 + $0x140] sm:$0xff]  ;;  %v835_v9 = vld [vmem:[#allocation11 + $0x3a8] sm:$0xff] }
  0x8e   : > { %v822_v23 = vld [vmem:[#allocation11 + $0x340] sm:$0xff]  ;;  %1026 = vmatpush.msra.mxu2 %v894_v16  ;;  %1046 = vmatpush.msra.mxu3 %v958_v17  ;;  %v903_v10 = vld [vmem:[#allocation11 + $0x5c8] sm:$0xff] }
  0x8f   : > { %987 = vmatpush.msra.mxu0 %v762_v18  ;;  %1007 = vmatpush.msra.mxu1 %v826_v19  ;;  %v886_v24 = vld [vmem:[#allocation11 + $0x540] sm:$0xff]  ;;  %v967_v11 = vld [vmem:[#allocation11 + $0x7c8] sm:$0xff] }
  0x90   : > { %v950_v25 = vld [vmem:[#allocation11 + $0x740] sm:$0xff]  ;;  %1027 = vmatpush.msra.mxu2 %v890_v20  ;;  %1047 = vmatpush.msra.mxu3 %v954_v21  ;;  %v767_v12 = vld [vmem:[#allocation11 + $0x188] sm:$0xff] }
  0x91   : > { %v754_v26 = vld [vmem:[#allocation11 + $0x120] sm:$0xff]  ;;  %988 = vmatpush.msra.mxu0 %v758_v22  ;;  %1008 = vmatpush.msra.mxu1 %v822_v23  ;;  %v831_v13 = vld [vmem:[#allocation11 + $0x388] sm:$0xff] }
  0x92   : > { %v818_v27 = vld [vmem:[#allocation11 + $0x320] sm:$0xff]  ;;  %1028 = vmatpush.msra.mxu2 %v886_v24  ;;  %1048 = vmatpush.msra.mxu3 %v950_v25  ;;  %v899_v14 = vld [vmem:[#allocation11 + $0x5a8] sm:$0xff] }
  0x93   : > { %v882_v28 = vld [vmem:[#allocation11 + $0x520] sm:$0xff]  ;;  %989 = vmatpush.msra.mxu0 %v754_v26  ;;  %1009 = vmatpush.msra.mxu1 %v818_v27  ;;  %v963_v15 = vld [vmem:[#allocation11 + $0x7a8] sm:$0xff] }
  0x94   : > { %v946_v29 = vld [vmem:[#allocation11 + $0x720] sm:$0xff]  ;;  %1029 = vmatpush.msra.mxu2 %v882_v28  ;;  %v763_v16 = vld [vmem:[#allocation11 + $0x168] sm:$0xff] }
  0x95   : > { %v750_v30 = vld [vmem:[#allocation11 + $0x100] sm:$0xff]  ;;  %1049 = vmatpush.msra.mxu3 %v946_v29  ;;  %v827_v17 = vld [vmem:[#allocation11 + $0x368] sm:$0xff] }
  0x96   : > { %v814_v31 = vld [vmem:[#allocation11 + $0x300] sm:$0xff]  ;;  %990 = vmatpush.msra.mxu0 %v750_v30  ;;  %v895_v18 = vld [vmem:[#allocation11 + $0x588] sm:$0xff] }
  0x97   : > { %v878_v32 = vld [vmem:[#allocation11 + $0x500] sm:$0xff]  ;;  %1010 = vmatpush.msra.mxu1 %v814_v31  ;;  %v959_v19 = vld [vmem:[#allocation11 + $0x788] sm:$0xff] }
  0x98   : > { %v942_v33 = vld [vmem:[#allocation11 + $0x700] sm:$0xff]  ;;  %1030 = vmatpush.msra.mxu2 %v878_v32  ;;  %v759_v20 = vld [vmem:[#allocation11 + $0x148] sm:$0xff] }
  0x99   : > { %v746_v34 = vld [vmem:[#allocation11 + $0xe0] sm:$0xff]  ;;  %1050 = vmatpush.msra.mxu3 %v942_v33  ;;  %v823_v21 = vld [vmem:[#allocation11 + $0x348] sm:$0xff] }
  0x9a   : > { %v810_v35 = vld [vmem:[#allocation11 + $0x2e0] sm:$0xff]  ;;  %991 = vmatpush.msra.mxu0 %v746_v34  ;;  %v891_v22 = vld [vmem:[#allocation11 + $0x568] sm:$0xff] }
  0x9b   : > { %v874_v36 = vld [vmem:[#allocation11 + $0x4e0] sm:$0xff]  ;;  %1011 = vmatpush.msra.mxu1 %v810_v35  ;;  %v955_v23 = vld [vmem:[#allocation11 + $0x768] sm:$0xff] }
  0x9c   : > { %v938_v37 = vld [vmem:[#allocation11 + $0x6e0] sm:$0xff]  ;;  %1031 = vmatpush.msra.mxu2 %v874_v36  ;;  %v755_v24 = vld [vmem:[#allocation11 + $0x128] sm:$0xff] }
  0x9d   : > { %v742_v38 = vld [vmem:[#allocation11 + $0xc0] sm:$0xff]  ;;  %1051 = vmatpush.msra.mxu3 %v938_v37  ;;  %v819_v25 = vld [vmem:[#allocation11 + $0x328] sm:$0xff] }
  0x9e   : > { %v806_v39 = vld [vmem:[#allocation11 + $0x2c0] sm:$0xff]  ;;  %992 = vmatpush.msra.mxu0 %v742_v38  ;;  %v751_v26 = vld [vmem:[#allocation11 + $0x108] sm:$0xff] }
  0x9f   : > { %v870_v40 = vld [vmem:[#allocation11 + $0x4c0] sm:$0xff]  ;;  %1012 = vmatpush.msra.mxu1 %v806_v39  ;;  %v815_v27 = vld [vmem:[#allocation11 + $0x308] sm:$0xff] }
  0xa0   : > { %v934_v41 = vld [vmem:[#allocation11 + $0x6c0] sm:$0xff]  ;;  %1032 = vmatpush.msra.mxu2 %v870_v40  ;;  %v747_v28 = vld [vmem:[#allocation11 + $0xe8] sm:$0xff] }
  0xa1   : > { %v738_v42 = vld [vmem:[#allocation11 + $0xa0] sm:$0xff]  ;;  %1052 = vmatpush.msra.mxu3 %v934_v41  ;;  %v811_v29 = vld [vmem:[#allocation11 + $0x2e8] sm:$0xff] }
  0xa2   : > { %v802_v43 = vld [vmem:[#allocation11 + $0x2a0] sm:$0xff]  ;;  %993 = vmatpush.msra.mxu0 %v738_v42  ;;  %v887_v30 = vld [vmem:[#allocation11 + $0x548] sm:$0xff] }
  0xa3   : > { %v866_v44 = vld [vmem:[#allocation11 + $0x4a0] sm:$0xff]  ;;  %1013 = vmatpush.msra.mxu1 %v802_v43  ;;  %v951_v31 = vld [vmem:[#allocation11 + $0x748] sm:$0xff] }
  0xa4   : > { %v930_v45 = vld [vmem:[#allocation11 + $0x6a0] sm:$0xff]  ;;  %1033 = vmatpush.msra.mxu2 %v866_v44  ;;  %v743_v32 = vld [vmem:[#allocation11 + $0xc8] sm:$0xff] }
  0xa5   : > { %v734_v46 = vld [vmem:[#allocation11 + $0x80] sm:$0xff]  ;;  %1053 = vmatpush.msra.mxu3 %v930_v45  ;;  %v807_v33 = vld [vmem:[#allocation11 + $0x2c8] sm:$0xff] }
  0xa6   : > { %v798_v47 = vld [vmem:[#allocation11 + $0x280] sm:$0xff]  ;;  %994 = vmatpush.msra.mxu0 %v734_v46  ;;  %v883_v34 = vld [vmem:[#allocation11 + $0x528] sm:$0xff] }
  0xa7   : > { %v862_v48 = vld [vmem:[#allocation11 + $0x480] sm:$0xff]  ;;  %1014 = vmatpush.msra.mxu1 %v798_v47  ;;  %v947_v35 = vld [vmem:[#allocation11 + $0x728] sm:$0xff] }
  0xa8   : > { %v926_v49 = vld [vmem:[#allocation11 + $0x680] sm:$0xff]  ;;  %1034 = vmatpush.msra.mxu2 %v862_v48  ;;  %v739_v36 = vld [vmem:[#allocation11 + $0xa8] sm:$0xff] }
  0xa9   : > { %v730_v50 = vld [vmem:[#allocation11 + $0x60] sm:$0xff]  ;;  %1054 = vmatpush.msra.mxu3 %v926_v49  ;;  %v803_v37 = vld [vmem:[#allocation11 + $0x2a8] sm:$0xff] }
  0xaa   : > { %v794_v51 = vld [vmem:[#allocation11 + $0x260] sm:$0xff]  ;;  %995 = vmatpush.msra.mxu0 %v730_v50  ;;  %v879_v38 = vld [vmem:[#allocation11 + $0x508] sm:$0xff] }
  0xab   : > { %v858_v52 = vld [vmem:[#allocation11 + $0x460] sm:$0xff]  ;;  %1015 = vmatpush.msra.mxu1 %v794_v51  ;;  %v943_v39 = vld [vmem:[#allocation11 + $0x708] sm:$0xff] }
  0xac   : > { %v922_v53 = vld [vmem:[#allocation11 + $0x660] sm:$0xff]  ;;  %1035 = vmatpush.msra.mxu2 %v858_v52  ;;  %v735_v40 = vld [vmem:[#allocation11 + $0x88] sm:$0xff] }
  0xad   : > { %v726_v54 = vld [vmem:[#allocation11 + $0x40] sm:$0xff]  ;;  %1055 = vmatpush.msra.mxu3 %v922_v53  ;;  %v799_v41 = vld [vmem:[#allocation11 + $0x288] sm:$0xff] }
  0xae   : > { %v790_v55 = vld [vmem:[#allocation11 + $0x240] sm:$0xff]  ;;  %996 = vmatpush.msra.mxu0 %v726_v54  ;;  %v875_v42 = vld [vmem:[#allocation11 + $0x4e8] sm:$0xff] }
  0xaf   : > { %v854_v56 = vld [vmem:[#allocation11 + $0x440] sm:$0xff]  ;;  %1016 = vmatpush.msra.mxu1 %v790_v55  ;;  %v939_v43 = vld [vmem:[#allocation11 + $0x6e8] sm:$0xff] }
  0xb0   : > { %v918_v57 = vld [vmem:[#allocation11 + $0x640] sm:$0xff]  ;;  %1036 = vmatpush.msra.mxu2 %v854_v56  ;;  %v731_v44 = vld [vmem:[#allocation11 + $0x68] sm:$0xff] }
  0xb1   : > { %v722_v58 = vld [vmem:[#allocation11 + $0x20] sm:$0xff]  ;;  %1056 = vmatpush.msra.mxu3 %v918_v57  ;;  %v795_v45 = vld [vmem:[#allocation11 + $0x268] sm:$0xff] }
  0xb2   : > { %v786_v59 = vld [vmem:[#allocation11 + $0x220] sm:$0xff]  ;;  %997 = vmatpush.msra.mxu0 %v722_v58  ;;  %v871_v46 = vld [vmem:[#allocation11 + $0x4c8] sm:$0xff] }
  0xb3   : > { %v850_v60 = vld [vmem:[#allocation11 + $0x420] sm:$0xff]  ;;  %1017 = vmatpush.msra.mxu1 %v786_v59  ;;  %v935_v47 = vld [vmem:[#allocation11 + $0x6c8] sm:$0xff] }
  0xb4   : > { %v914_v61 = vld [vmem:[#allocation11 + $0x620] sm:$0xff]  ;;  %1037 = vmatpush.msra.mxu2 %v850_v60  ;;  %v727_v48 = vld [vmem:[#allocation11 + $0x48] sm:$0xff] }
  0xb5   : > { %v718_v62 = vld [vmem:[#allocation11] sm:$0xff]  ;;  %1057 = vmatpush.msra.mxu3 %v914_v61  ;;  %v791_v49 = vld [vmem:[#allocation11 + $0x248] sm:$0xff] }
  0xb6   : > { %v782_v63 = vld [vmem:[#allocation11 + $0x200] sm:$0xff]  ;;  %998 = vmatpush.msra.mxu0 %v718_v62  ;;  %v867_v50 = vld [vmem:[#allocation11 + $0x4a8] sm:$0xff] }
  0xb7   : > { %v846_v2 = vld [vmem:[#allocation11 + $0x400] sm:$0xff]  ;;  %1018 = vmatpush.msra.mxu1 %v782_v63  ;;  %v931_v51 = vld [vmem:[#allocation11 + $0x6a8] sm:$0xff] }
  0xb8   : > { %v910_v3 = vld [vmem:[#allocation11 + $0x600] sm:$0xff]  ;;  %1063 = vmatpush.msrb.mxu0 %v779_v0  ;;  %1038 = vmatpush.msra.mxu2 %v846_v2  ;;  %v723_v52 = vld [vmem:[#allocation11 + $0x28] sm:$0xff] }
  0xb9   : > { %1083 = vmatpush.msrb.mxu1 %v843_v1  ;;  %1058 = vmatpush.msra.mxu3 %v910_v3  ;;  %v787_v53 = vld [vmem:[#allocation11 + $0x228] sm:$0xff] }
  0xba   : > { %1064 = vmatpush.msrb.mxu0 %v775_v4  ;;  %1103 = vmatpush.msrb.mxu2 %v907_v6  ;;  %v863_v54 = vld [vmem:[#allocation11 + $0x488] sm:$0xff] }
  0xbb   : > { %1084 = vmatpush.msrb.mxu1 %v839_v5  ;;  %1123 = vmatpush.msrb.mxu3 %v971_v7  ;;  %v927_v55 = vld [vmem:[#allocation11 + $0x688] sm:$0xff] }
  0xbc   : > { %1065 = vmatpush.msrb.mxu0 %v771_v8  ;;  %1104 = vmatpush.msrb.mxu2 %v903_v10  ;;  %v719_v56 = vld [vmem:[#allocation11 + $0x8] sm:$0xff] }
  0xbd   : > { %1085 = vmatpush.msrb.mxu1 %v835_v9  ;;  %1124 = vmatpush.msrb.mxu3 %v967_v11  ;;  %v783_v57 = vld [vmem:[#allocation11 + $0x208] sm:$0xff] }
  0xbe   : > { %1066 = vmatpush.msrb.mxu0 %v767_v12  ;;  %1105 = vmatpush.msrb.mxu2 %v899_v14  ;;  %v859_v58 = vld [vmem:[#allocation11 + $0x468] sm:$0xff] }
  0xbf   : > { %1086 = vmatpush.msrb.mxu1 %v831_v13  ;;  %1125 = vmatpush.msrb.mxu3 %v963_v15  ;;  %v923_v59 = vld [vmem:[#allocation11 + $0x668] sm:$0xff] }
  0xc0   : > { %1067 = vmatpush.msrb.mxu0 %v763_v16  ;;  %1106 = vmatpush.msrb.mxu2 %v895_v18  ;;  %v855_v60 = vld [vmem:[#allocation11 + $0x448] sm:$0xff]  ;;  %v844_v18 = vld [vmem:[#allocation11 + $0x3f0] sm:$0xff] }
  0xc1   : > { %1087 = vmatpush.msrb.mxu1 %v827_v17  ;;  %1126 = vmatpush.msrb.mxu3 %v959_v19  ;;  %v919_v61 = vld [vmem:[#allocation11 + $0x648] sm:$0xff]  ;;  %v780_v17 = vld [vmem:[#allocation11 + $0x1f0] sm:$0xff] }
  0xc2   : > { %1068 = vmatpush.msrb.mxu0 %v759_v20  ;;  %1107 = vmatpush.msrb.mxu2 %v891_v22  ;;  %v851_v62 = vld [vmem:[#allocation11 + $0x428] sm:$0xff] }
  0xc3   : > { %1088 = vmatpush.msrb.mxu1 %v823_v21  ;;  %1127 = vmatpush.msrb.mxu3 %v955_v23  ;;  %v915_v63 = vld [vmem:[#allocation11 + $0x628] sm:$0xff]  ;;  %v776_v23 = vld [vmem:[#allocation11 + $0x1d0] sm:$0xff] }
  0xc4   : > { %1069 = vmatpush.msrb.mxu0 %v755_v24  ;;  %1108 = vmatpush.msrb.mxu2 %v887_v30  ;;  %v847_v0 = vld [vmem:[#allocation11 + $0x408] sm:$0xff]  ;;  %v840_v24 = vld [vmem:[#allocation11 + $0x3d0] sm:$0xff] }
  0xc5   : > { %1089 = vmatpush.msrb.mxu1 %v819_v25  ;;  %1128 = vmatpush.msrb.mxu3 %v951_v31  ;;  %v911_v1 = vld [vmem:[#allocation11 + $0x608] sm:$0xff] }
  0xc6   : > { %1070 = vmatpush.msrb.mxu0 %v751_v26  ;;  %1109 = vmatpush.msrb.mxu2 %v883_v34  ;;  %v459_v4 = vld [vmem:[#allocation7] ss:$8 sm:$0xf] }
  0xc7   : > { %1090 = vmatpush.msrb.mxu1 %v815_v27  ;;  %1129 = vmatpush.msrb.mxu3 %v947_v35  ;;  %v694_v7 = vperm.slane %v459_v4, 0  ;;  %v695_v8 = vperm.slane %v459_v4, 1  ;;  %v696_v19 = vperm.slane %v459_v4, 2  ;;  %v697_v20 = vperm.slane %v459_v4, 3  ;;  %v772_v27 = vld [vmem:[#allocation11 + $0x1b0] sm:$0xff] }
  0xc8   : > { %1071 = vmatpush.msrb.mxu0 %v747_v28  ;;  %1110 = vmatpush.msrb.mxu2 %v879_v38  ;;  %v836_v28 = vld [vmem:[#allocation11 + $0x3b0] sm:$0xff] }
  0xc9   : > { %1091 = vmatpush.msrb.mxu1 %v811_v29  ;;  %1130 = vmatpush.msrb.mxu3 %v943_v39  ;;  %v832_v34 = vld [vmem:[#allocation11 + $0x390] sm:$0xff] }
  0xca   : > { %1072 = vmatpush.msrb.mxu0 %v743_v32  ;;  %1111 = vmatpush.msrb.mxu2 %v875_v42  ;;  %v908_v35 = vld [vmem:[#allocation11 + $0x5f0] sm:$0xff] }
  0xcb   : > { %1092 = vmatpush.msrb.mxu1 %v807_v33  ;;  %1131 = vmatpush.msrb.mxu3 %v939_v43  ;;  %v768_v33 = vld [vmem:[#allocation11 + $0x190] sm:$0xff] }
  0xcc   : > { %1073 = vmatpush.msrb.mxu0 %v739_v36  ;;  %1112 = vmatpush.msrb.mxu2 %v871_v46  ;;  %v972_v36 = vld [vmem:[#allocation11 + $0x7f0] sm:$0xff] }
  0xcd   : > { %1093 = vmatpush.msrb.mxu1 %v803_v37  ;;  %1132 = vmatpush.msrb.mxu3 %v935_v47  ;;  %v764_v37 = vld [vmem:[#allocation11 + $0x170] sm:$0xff] }
  0xce   : > { %1074 = vmatpush.msrb.mxu0 %v735_v40  ;;  %1113 = vmatpush.msrb.mxu2 %v867_v50  ;;  %v828_v38 = vld [vmem:[#allocation11 + $0x370] sm:$0xff] }
  0xcf   : > { %1094 = vmatpush.msrb.mxu1 %v799_v41  ;;  %1133 = vmatpush.msrb.mxu3 %v931_v51  ;;  %v904_v39 = vld [vmem:[#allocation11 + $0x5d0] sm:$0xff] }
  0xd0   : > { %1075 = vmatpush.msrb.mxu0 %v731_v44  ;;  %1114 = vmatpush.msrb.mxu2 %v863_v54  ;;  %v968_v40 = vld [vmem:[#allocation11 + $0x7d0] sm:$0xff] }
  0xd1   : > { %1095 = vmatpush.msrb.mxu1 %v795_v45  ;;  %1134 = vmatpush.msrb.mxu3 %v927_v55  ;;  %v760_v41 = vld [vmem:[#allocation11 + $0x150] sm:$0xff] }
  0xd2   : > { %1076 = vmatpush.msrb.mxu0 %v727_v48  ;;  %1115 = vmatpush.msrb.mxu2 %v859_v58  ;;  %v824_v42 = vld [vmem:[#allocation11 + $0x350] sm:$0xff] }
  0xd3   : > { %1096 = vmatpush.msrb.mxu1 %v791_v49  ;;  %1135 = vmatpush.msrb.mxu3 %v923_v59  ;;  %v900_v43 = vld [vmem:[#allocation11 + $0x5b0] sm:$0xff] }
  0xd4   : > { %1077 = vmatpush.msrb.mxu0 %v723_v52  ;;  %1116 = vmatpush.msrb.mxu2 %v855_v60  ;;  %v964_v44 = vld [vmem:[#allocation11 + $0x7b0] sm:$0xff] }
  0xd5   : > { %1097 = vmatpush.msrb.mxu1 %v787_v53  ;;  %1136 = vmatpush.msrb.mxu3 %v919_v61  ;;  %v756_v45 = vld [vmem:[#allocation11 + $0x130] sm:$0xff] }
  0xd6   : > { %1078 = vmatpush.msrb.mxu0 %v719_v56  ;;  %1117 = vmatpush.msrb.mxu2 %v851_v62  ;;  %v820_v46 = vld [vmem:[#allocation11 + $0x330] sm:$0xff] }
  0xd7   : > { %1098 = vmatpush.msrb.mxu1 %v783_v57  ;;  %1137 = vmatpush.msrb.mxu3 %v915_v63  ;;  %v896_v47 = vld [vmem:[#allocation11 + $0x590] sm:$0xff] }
  0xd8   : > { %1118 = vmatpush.msrb.mxu2 %v847_v0  ;;  %v960_v48 = vld [vmem:[#allocation11 + $0x790] sm:$0xff] }
  0xd9   : > { %1138 = vmatpush.msrb.mxu3 %v911_v1  ;;  %v752_v49 = vld [vmem:[#allocation11 + $0x110] sm:$0xff] }
  0xda   : > { %v816_v50 = vld [vmem:[#allocation11 + $0x310] sm:$0xff] }
  0xdb   : > { %v892_v51 = vld [vmem:[#allocation11 + $0x570] sm:$0xff] }
  0xdc   : > { %v956_v52 = vld [vmem:[#allocation11 + $0x770] sm:$0xff] }
  0xdd   : > { %v748_v53 = vld [vmem:[#allocation11 + $0xf0] sm:$0xff] }
  0xde   : > { %v812_v54 = vld [vmem:[#allocation11 + $0x2f0] sm:$0xff] }
  0xdf   : > { %v888_v55 = vld [vmem:[#allocation11 + $0x550] sm:$0xff] }
  0xe0   : > { %v952_v56 = vld [vmem:[#allocation11 + $0x750] sm:$0xff] }
  0xe1   : > { %v744_v57 = vld [vmem:[#allocation11 + $0xd0] sm:$0xff] }
  0xe2   : > { %v808_v58 = vld [vmem:[#allocation11 + $0x2d0] sm:$0xff] }
  0xe3   : > { %v884_v59 = vld [vmem:[#allocation11 + $0x530] sm:$0xff] }
  0xe4   : > { %v948_v60 = vld [vmem:[#allocation11 + $0x730] sm:$0xff] }
  0xe5   : > { %v740_v61 = vld [vmem:[#allocation11 + $0xb0] sm:$0xff] }
  0xe6   : > { %v804_v62 = vld [vmem:[#allocation11 + $0x2b0] sm:$0xff] }
  0xe7   : > { %v880_v63 = vld [vmem:[#allocation11 + $0x510] sm:$0xff] }
  0xe8   : > { %v944_v0 = vld [vmem:[#allocation11 + $0x710] sm:$0xff] }
  0xe9   : > { %v736_v1 = vld [vmem:[#allocation11 + $0x90] sm:$0xff] }
  0xea   : > { %v940_v4 = vld [vmem:[#allocation11 + $0x6f0] sm:$0xff] }
  0xf8   : > { %v547_v2 = vpop.f32.mrf.mxu0  ;;  %v567_v3 = vpop.f32.mrf.mxu1 }
  0xff   : > { %v587_v5 = vpop.f32.mrf.mxu2  ;;  %v607_v6 = vpop.f32.mrf.mxu3 }
 0x102   : > { %v630_v9 = vpop.f32.mrf.mxu0  ;;  %v650_v10 = vpop.f32.mrf.mxu1 }
 0x103   : > { %v631_v11 = vadd.f32 %v630_v9, %v547_v2  ;;  %v651_v12 = vadd.f32 %v650_v10, %v567_v3  ;;  %v800_v2 = vld [vmem:[#allocation11 + $0x290] sm:$0xff] }
 0x104   : > { %v876_v3 = vld [vmem:[#allocation11 + $0x4f0] sm:$0xff] }
 0x105   : > { %v702_v13 = vadd.f32 %v694_v7, %v631_v11  ;;  %v703_v14 = vadd.f32 %v695_v8, %v651_v12  ;;  %v872_v7 = vld [vmem:[#allocation11 + $0x4d0] sm:$0xff] }
 0x106   : > { %v936_v8 = vld [vmem:[#allocation11 + $0x6d0] sm:$0xff] }
 0x107   : > { %v3498_v15 = vmax.f32 %v702_v13, 0.0  ;;  %v3500_v16 = vmax.f32 %v703_v14, 0.0  ;;  %v728_v9 = vld [vmem:[#allocation11 + $0x50] sm:$0xff] }
 0x108   : > { %v792_v10 = vld [vmem:[#allocation11 + $0x250] sm:$0xff] }
 0x109   : > { %v670_v21 = vpop.f32.mrf.mxu2  ;;  %v690_v22 = vpop.f32.mrf.mxu3  ;;  %999 = vmatmul.f32.vlgmr.msra.gmra.mxu0 %v3498_v15  ;;  %1019 = vmatmul.f32.vlgmr.msra.gmra.mxu1 %v3500_v16  ;;  %v868_v11 = vld [vmem:[#allocation11 + $0x4b0] sm:$0xff] }
 0x10a   : > { %v671_v25 = vadd.f32 %v670_v21, %v587_v5  ;;  %v691_v26 = vadd.f32 %v690_v22, %v607_v6  ;;  %1143 = vmatpush.msra.mxu0 %v780_v17  ;;  %1163 = vmatpush.msra.mxu1 %v844_v18  ;;  %v732_v5 = vld [vmem:[#allocation11 + $0x70] sm:$0xff] }
 0x10b   : > { %v796_v6 = vld [vmem:[#allocation11 + $0x270] sm:$0xff] }
 0x10c   : > { %v704_v29 = vadd.f32 %v696_v19, %v671_v25  ;;  %v705_v30 = vadd.f32 %v697_v20, %v691_v26  ;;  %1144 = vmatpush.msra.mxu0 %v776_v23  ;;  %1164 = vmatpush.msra.mxu1 %v840_v24  ;;  %v932_v12 = vld [vmem:[#allocation11 + $0x6b0] sm:$0xff]  ;;  %v781_v23 = vld [vmem:[#allocation11 + $0x1f8] sm:$0xff] }
 0x10d   : > { %v724_v13 = vld [vmem:[#allocation11 + $0x30] sm:$0xff]  ;;  %v845_v24 = vld [vmem:[#allocation11 + $0x3f8] sm:$0xff] }
 0x10e   : > { %v3504_v31 = vmax.f32 %v704_v29, 0.0  ;;  %v3506_v32 = vmax.f32 %v705_v30, 0.0  ;;  %1145 = vmatpush.msra.mxu0 %v772_v27  ;;  %1165 = vmatpush.msra.mxu1 %v836_v28  ;;  %v788_v14 = vld [vmem:[#allocation11 + $0x230] sm:$0xff]  ;;  %v777_v27 = vld [vmem:[#allocation11 + $0x1d8] sm:$0xff] }
 0x10f   : > { %v864_v17 = vld [vmem:[#allocation11 + $0x490] sm:$0xff]  ;;  %v841_v28 = vld [vmem:[#allocation11 + $0x3d8] sm:$0xff] }
 0x110   : > { %1039 = vmatmul.f32.vlgmr.msra.gmra.mxu2 %v3504_v31  ;;  %1059 = vmatmul.f32.vlgmr.msra.gmra.mxu3 %v3506_v32  ;;  %v928_v18 = vld [vmem:[#allocation11 + $0x690] sm:$0xff] }
 0x111   : > { %1146 = vmatpush.msra.mxu0 %v768_v33  ;;  %1166 = vmatpush.msra.mxu1 %v832_v34  ;;  %v720_v19 = vld [vmem:[#allocation11 + $0x10] sm:$0xff]  ;;  %v773_v33 = vld [vmem:[#allocation11 + $0x1b8] sm:$0xff] }
 0x112   : > { %1183 = vmatpush.msra.mxu2 %v908_v35  ;;  %1203 = vmatpush.msra.mxu3 %v972_v36  ;;  %v784_v20 = vld [vmem:[#allocation11 + $0x210] sm:$0xff]  ;;  %v837_v34 = vld [vmem:[#allocation11 + $0x3b8] sm:$0xff] }
 0x113   : > { %1079 = vmatmul.f32.vlgmr.msrb.gmra.mxu0 %v3498_v15  ;;  %1099 = vmatmul.f32.vlgmr.msrb.gmra.mxu1 %v3500_v16  ;;  %v860_v21 = vld [vmem:[#allocation11 + $0x470] sm:$0xff] }
 0x114   : > { %1147 = vmatpush.msra.mxu0 %v764_v37  ;;  %1167 = vmatpush.msra.mxu1 %v828_v38  ;;  %v924_v22 = vld [vmem:[#allocation11 + $0x670] sm:$0xff]  ;;  %v769_v37 = vld [vmem:[#allocation11 + $0x198] sm:$0xff] }
 0x115   : > { %1184 = vmatpush.msra.mxu2 %v904_v39  ;;  %1204 = vmatpush.msra.mxu3 %v968_v40  ;;  %v856_v25 = vld [vmem:[#allocation11 + $0x450] sm:$0xff]  ;;  %v833_v38 = vld [vmem:[#allocation11 + $0x398] sm:$0xff] }
 0x116   : > { %1148 = vmatpush.msra.mxu0 %v760_v41  ;;  %1168 = vmatpush.msra.mxu1 %v824_v42  ;;  %v920_v26 = vld [vmem:[#allocation11 + $0x650] sm:$0xff]  ;;  %v909_v39 = vld [vmem:[#allocation11 + $0x5f8] sm:$0xff] }
 0x117   : > { %1185 = vmatpush.msra.mxu2 %v900_v43  ;;  %1205 = vmatpush.msra.mxu3 %v964_v44  ;;  %v852_v29 = vld [vmem:[#allocation11 + $0x430] sm:$0xff]  ;;  %v973_v40 = vld [vmem:[#allocation11 + $0x7f8] sm:$0xff] }
 0x118   : > { %1149 = vmatpush.msra.mxu0 %v756_v45  ;;  %1169 = vmatpush.msra.mxu1 %v820_v46  ;;  %v916_v30 = vld [vmem:[#allocation11 + $0x630] sm:$0xff]  ;;  %v765_v41 = vld [vmem:[#allocation11 + $0x178] sm:$0xff] }
 0x119   : > { %1186 = vmatpush.msra.mxu2 %v896_v47  ;;  %1206 = vmatpush.msra.mxu3 %v960_v48  ;;  %v848_v35 = vld [vmem:[#allocation11 + $0x410] sm:$0xff]  ;;  %v829_v42 = vld [vmem:[#allocation11 + $0x378] sm:$0xff] }
 0x11a   : > { %1119 = vmatmul.f32.vlgmr.msrb.gmra.mxu2 %v3504_v31  ;;  %1139 = vmatmul.f32.vlgmr.msrb.gmra.mxu3 %v3506_v32  ;;  %v912_v36 = vld [vmem:[#allocation11 + $0x610] sm:$0xff]  ;;  %v905_v43 = vld [vmem:[#allocation11 + $0x5d8] sm:$0xff] }
 0x11b   : > { %1150 = vmatpush.msra.mxu0 %v752_v49  ;;  %1170 = vmatpush.msra.mxu1 %v816_v50  ;;  %v969_v44 = vld [vmem:[#allocation11 + $0x7d8] sm:$0xff] }
 0x11c   : > { %1187 = vmatpush.msra.mxu2 %v892_v51  ;;  %1207 = vmatpush.msra.mxu3 %v956_v52  ;;  %v761_v45 = vld [vmem:[#allocation11 + $0x158] sm:$0xff] }
 0x11d   : > { %1151 = vmatpush.msra.mxu0 %v748_v53  ;;  %1171 = vmatpush.msra.mxu1 %v812_v54  ;;  %v825_v46 = vld [vmem:[#allocation11 + $0x358] sm:$0xff] }
 0x11e   : > { %1188 = vmatpush.msra.mxu2 %v888_v55  ;;  %1208 = vmatpush.msra.mxu3 %v952_v56  ;;  %v901_v47 = vld [vmem:[#allocation11 + $0x5b8] sm:$0xff] }
 0x11f   : > { %1152 = vmatpush.msra.mxu0 %v744_v57  ;;  %1172 = vmatpush.msra.mxu1 %v808_v58  ;;  %v965_v48 = vld [vmem:[#allocation11 + $0x7b8] sm:$0xff] }
 0x120   : > { %1189 = vmatpush.msra.mxu2 %v884_v59  ;;  %1209 = vmatpush.msra.mxu3 %v948_v60  ;;  %v757_v49 = vld [vmem:[#allocation11 + $0x138] sm:$0xff] }
 0x121   : > { %1153 = vmatpush.msra.mxu0 %v740_v61  ;;  %1173 = vmatpush.msra.mxu1 %v804_v62  ;;  %v821_v50 = vld [vmem:[#allocation11 + $0x338] sm:$0xff] }
 0x122   : > { %1190 = vmatpush.msra.mxu2 %v880_v63  ;;  %1210 = vmatpush.msra.mxu3 %v944_v0  ;;  %v897_v51 = vld [vmem:[#allocation11 + $0x598] sm:$0xff] }
 0x123   : > { %1154 = vmatpush.msra.mxu0 %v736_v1  ;;  %1174 = vmatpush.msra.mxu1 %v800_v2  ;;  %v961_v52 = vld [vmem:[#allocation11 + $0x798] sm:$0xff] }
 0x124   : > { %1191 = vmatpush.msra.mxu2 %v876_v3  ;;  %1211 = vmatpush.msra.mxu3 %v940_v4  ;;  %v753_v53 = vld [vmem:[#allocation11 + $0x118] sm:$0xff] }
 0x125   : > { %1155 = vmatpush.msra.mxu0 %v732_v5  ;;  %1175 = vmatpush.msra.mxu1 %v796_v6  ;;  %v817_v54 = vld [vmem:[#allocation11 + $0x318] sm:$0xff] }
 0x126   : > { %1192 = vmatpush.msra.mxu2 %v872_v7  ;;  %1212 = vmatpush.msra.mxu3 %v936_v8  ;;  %v893_v55 = vld [vmem:[#allocation11 + $0x578] sm:$0xff] }
 0x127   : > { %1156 = vmatpush.msra.mxu0 %v728_v9  ;;  %1176 = vmatpush.msra.mxu1 %v792_v10  ;;  %v957_v56 = vld [vmem:[#allocation11 + $0x778] sm:$0xff] }
 0x128   : > { %1193 = vmatpush.msra.mxu2 %v868_v11  ;;  %1213 = vmatpush.msra.mxu3 %v932_v12  ;;  %v749_v57 = vld [vmem:[#allocation11 + $0xf8] sm:$0xff] }
 0x129   : > { %1157 = vmatpush.msra.mxu0 %v724_v13  ;;  %1177 = vmatpush.msra.mxu1 %v788_v14  ;;  %v813_v58 = vld [vmem:[#allocation11 + $0x2f8] sm:$0xff] }
 0x12a   : > { %1194 = vmatpush.msra.mxu2 %v864_v17  ;;  %1214 = vmatpush.msra.mxu3 %v928_v18  ;;  %v889_v59 = vld [vmem:[#allocation11 + $0x558] sm:$0xff] }
 0x12b   : > { %1158 = vmatpush.msra.mxu0 %v720_v19  ;;  %1178 = vmatpush.msra.mxu1 %v784_v20  ;;  %v953_v60 = vld [vmem:[#allocation11 + $0x758] sm:$0xff] }
 0x12c   : > { %1195 = vmatpush.msra.mxu2 %v860_v21  ;;  %1215 = vmatpush.msra.mxu3 %v924_v22  ;;  %v745_v61 = vld [vmem:[#allocation11 + $0xd8] sm:$0xff] }
 0x12d   : > { %1159 = vmatmul.f32.vlgmr.msra.gmra.mxu0 %v3498_v15  ;;  %1179 = vmatmul.f32.vlgmr.msra.gmra.mxu1 %v3500_v16  ;;  %v809_v62 = vld [vmem:[#allocation11 + $0x2d8] sm:$0xff] }
 0x12e   : > { %1223 = vmatpush.msrb.mxu0 %v781_v23  ;;  %1243 = vmatpush.msrb.mxu1 %v845_v24  ;;  %v885_v63 = vld [vmem:[#allocation11 + $0x538] sm:$0xff] }
 0x12f   : > { %1196 = vmatpush.msra.mxu2 %v856_v25  ;;  %1216 = vmatpush.msra.mxu3 %v920_v26  ;;  %v949_v0 = vld [vmem:[#allocation11 + $0x738] sm:$0xff] }
 0x130   : > { %1224 = vmatpush.msrb.mxu0 %v777_v27  ;;  %1244 = vmatpush.msrb.mxu1 %v841_v28  ;;  %v741_v1 = vld [vmem:[#allocation11 + $0xb8] sm:$0xff] }
 0x131   : > { %1197 = vmatpush.msra.mxu2 %v852_v29  ;;  %1217 = vmatpush.msra.mxu3 %v916_v30  ;;  %v805_v2 = vld [vmem:[#allocation11 + $0x2b8] sm:$0xff]  ;;  %v1367_v29 = vld [vmem:[#allocation13 + $0x1e0] sm:$0xff] }
 0x132   : > { %1225 = vmatpush.msrb.mxu0 %v773_v33  ;;  %1245 = vmatpush.msrb.mxu1 %v837_v34  ;;  %v881_v3 = vld [vmem:[#allocation11 + $0x518] sm:$0xff]  ;;  %v1431_v30 = vld [vmem:[#allocation13 + $0x3e0] sm:$0xff] }
 0x133   : > { %1198 = vmatpush.msra.mxu2 %v848_v35  ;;  %1218 = vmatpush.msra.mxu3 %v912_v36  ;;  %v945_v4 = vld [vmem:[#allocation11 + $0x718] sm:$0xff]  ;;  %v1363_v35 = vld [vmem:[#allocation13 + $0x1c0] sm:$0xff] }
 0x134   : > { %1199 = vmatmul.f32.vlgmr.msra.gmra.mxu2 %v3504_v31  ;;  %1219 = vmatmul.f32.vlgmr.msra.gmra.mxu3 %v3506_v32  ;;  %v737_v5 = vld [vmem:[#allocation11 + $0x98] sm:$0xff]  ;;  %v1427_v36 = vld [vmem:[#allocation13 + $0x3c0] sm:$0xff] }
 0x135   : > { %1226 = vmatpush.msrb.mxu0 %v769_v37  ;;  %1246 = vmatpush.msrb.mxu1 %v833_v38  ;;  %v801_v6 = vld [vmem:[#allocation11 + $0x298] sm:$0xff] }
 0x136   : > { %1263 = vmatpush.msrb.mxu2 %v909_v39  ;;  %1283 = vmatpush.msrb.mxu3 %v973_v40  ;;  %v877_v7 = vld [vmem:[#allocation11 + $0x4f8] sm:$0xff]  ;;  %v1359_v39 = vld [vmem:[#allocation13 + $0x1a0] sm:$0xff] }
 0x137   : > { %1227 = vmatpush.msrb.mxu0 %v765_v41  ;;  %1247 = vmatpush.msrb.mxu1 %v829_v42  ;;  %v941_v8 = vld [vmem:[#allocation11 + $0x6f8] sm:$0xff]  ;;  %v1423_v40 = vld [vmem:[#allocation13 + $0x3a0] sm:$0xff] }
 0x138   : > { %1264 = vmatpush.msrb.mxu2 %v905_v43  ;;  %1284 = vmatpush.msrb.mxu3 %v969_v44  ;;  %v733_v9 = vld [vmem:[#allocation11 + $0x78] sm:$0xff]  ;;  %v1495_v41 = vld [vmem:[#allocation13 + $0x5e0] sm:$0xff] }
 0x139   : > { %1228 = vmatpush.msrb.mxu0 %v761_v45  ;;  %1248 = vmatpush.msrb.mxu1 %v825_v46  ;;  %v797_v10 = vld [vmem:[#allocation11 + $0x278] sm:$0xff]  ;;  %v1355_v42 = vld [vmem:[#allocation13 + $0x180] sm:$0xff] }
 0x13a   : > { %1265 = vmatpush.msrb.mxu2 %v901_v47  ;;  %1285 = vmatpush.msrb.mxu3 %v965_v48  ;;  %v873_v11 = vld [vmem:[#allocation11 + $0x4d8] sm:$0xff]  ;;  %v1419_v43 = vld [vmem:[#allocation13 + $0x380] sm:$0xff] }
 0x13b   : > { %1229 = vmatpush.msrb.mxu0 %v757_v49  ;;  %1249 = vmatpush.msrb.mxu1 %v821_v50  ;;  %v937_v12 = vld [vmem:[#allocation11 + $0x6d8] sm:$0xff]  ;;  %v1491_v44 = vld [vmem:[#allocation13 + $0x5c0] sm:$0xff] }
 0x13c   : > { %1266 = vmatpush.msrb.mxu2 %v897_v51  ;;  %1286 = vmatpush.msrb.mxu3 %v961_v52  ;;  %v729_v13 = vld [vmem:[#allocation11 + $0x58] sm:$0xff]  ;;  %v1351_v45 = vld [vmem:[#allocation13 + $0x160] sm:$0xff] }
 0x13d   : > { %1230 = vmatpush.msrb.mxu0 %v753_v53  ;;  %1250 = vmatpush.msrb.mxu1 %v817_v54  ;;  %v793_v14 = vld [vmem:[#allocation11 + $0x258] sm:$0xff]  ;;  %v1415_v46 = vld [vmem:[#allocation13 + $0x360] sm:$0xff] }
 0x13e   : > { %1267 = vmatpush.msrb.mxu2 %v893_v55  ;;  %1287 = vmatpush.msrb.mxu3 %v957_v56  ;;  %v869_v17 = vld [vmem:[#allocation11 + $0x4b8] sm:$0xff]  ;;  %v1487_v47 = vld [vmem:[#allocation13 + $0x5a0] sm:$0xff] }
 0x13f   : > { %1231 = vmatpush.msrb.mxu0 %v749_v57  ;;  %1251 = vmatpush.msrb.mxu1 %v813_v58  ;;  %v933_v18 = vld [vmem:[#allocation11 + $0x6b8] sm:$0xff]  ;;  %v1347_v48 = vld [vmem:[#allocation13 + $0x140] sm:$0xff] }
 0x140   : > { %1268 = vmatpush.msrb.mxu2 %v889_v59  ;;  %1288 = vmatpush.msrb.mxu3 %v953_v60  ;;  %v725_v19 = vld [vmem:[#allocation11 + $0x38] sm:$0xff]  ;;  %v1411_v49 = vld [vmem:[#allocation13 + $0x340] sm:$0xff] }
 0x141   : > { %1232 = vmatpush.msrb.mxu0 %v745_v61  ;;  %1252 = vmatpush.msrb.mxu1 %v809_v62  ;;  %v789_v20 = vld [vmem:[#allocation11 + $0x238] sm:$0xff]  ;;  %v1483_v50 = vld [vmem:[#allocation13 + $0x580] sm:$0xff] }
 0x142   : > { %1269 = vmatpush.msrb.mxu2 %v885_v63  ;;  %1289 = vmatpush.msrb.mxu3 %v949_v0  ;;  %v865_v21 = vld [vmem:[#allocation11 + $0x498] sm:$0xff]  ;;  %v1343_v51 = vld [vmem:[#allocation13 + $0x120] sm:$0xff] }
 0x143   : > { %1233 = vmatpush.msrb.mxu0 %v741_v1  ;;  %1253 = vmatpush.msrb.mxu1 %v805_v2  ;;  %v929_v22 = vld [vmem:[#allocation11 + $0x698] sm:$0xff]  ;;  %v1407_v52 = vld [vmem:[#allocation13 + $0x320] sm:$0xff] }
 0x144   : > { %1270 = vmatpush.msrb.mxu2 %v881_v3  ;;  %1290 = vmatpush.msrb.mxu3 %v945_v4  ;;  %v721_v23 = vld [vmem:[#allocation11 + $0x18] sm:$0xff]  ;;  %v1479_v53 = vld [vmem:[#allocation13 + $0x560] sm:$0xff] }
 0x145   : > { %1234 = vmatpush.msrb.mxu0 %v737_v5  ;;  %1254 = vmatpush.msrb.mxu1 %v801_v6  ;;  %v785_v24 = vld [vmem:[#allocation11 + $0x218] sm:$0xff]  ;;  %v1339_v54 = vld [vmem:[#allocation13 + $0x100] sm:$0xff] }
 0x146   : > { %1271 = vmatpush.msrb.mxu2 %v877_v7  ;;  %1291 = vmatpush.msrb.mxu3 %v941_v8  ;;  %v861_v25 = vld [vmem:[#allocation11 + $0x478] sm:$0xff]  ;;  %v1403_v55 = vld [vmem:[#allocation13 + $0x300] sm:$0xff] }
 0x147   : > { %1235 = vmatpush.msrb.mxu0 %v733_v9  ;;  %1255 = vmatpush.msrb.mxu1 %v797_v10  ;;  %v925_v26 = vld [vmem:[#allocation11 + $0x678] sm:$0xff]  ;;  %v1475_v56 = vld [vmem:[#allocation13 + $0x540] sm:$0xff] }
 0x148   : > { %1272 = vmatpush.msrb.mxu2 %v873_v11  ;;  %1292 = vmatpush.msrb.mxu3 %v937_v12  ;;  %v857_v27 = vld [vmem:[#allocation11 + $0x458] sm:$0xff]  ;;  %v1335_v57 = vld [vmem:[#allocation13 + $0xe0] sm:$0xff]  ;;  %v1368_v12 = vld [vmem:[#allocation13 + $0x1e8] sm:$0xff] }
 0x149   : > { %1236 = vmatpush.msrb.mxu0 %v729_v13  ;;  %1256 = vmatpush.msrb.mxu1 %v793_v14  ;;  %v921_v28 = vld [vmem:[#allocation11 + $0x658] sm:$0xff]  ;;  %v1399_v58 = vld [vmem:[#allocation13 + $0x2e0] sm:$0xff]  ;;  %v1432_v13 = vld [vmem:[#allocation13 + $0x3e8] sm:$0xff] }
 0x14a   : > { %1273 = vmatpush.msrb.mxu2 %v869_v17  ;;  %1293 = vmatpush.msrb.mxu3 %v933_v18  ;;  %v853_v33 = vld [vmem:[#allocation11 + $0x438] sm:$0xff]  ;;  %v1331_v59 = vld [vmem:[#allocation13 + $0xc0] sm:$0xff]  ;;  %v1364_v17 = vld [vmem:[#allocation13 + $0x1c8] sm:$0xff] }
 0x14b   : > { %1237 = vmatpush.msrb.mxu0 %v725_v19  ;;  %1257 = vmatpush.msrb.mxu1 %v789_v20  ;;  %v917_v34 = vld [vmem:[#allocation11 + $0x638] sm:$0xff]  ;;  %v1395_v60 = vld [vmem:[#allocation13 + $0x2c0] sm:$0xff]  ;;  %v1428_v18 = vld [vmem:[#allocation13 + $0x3c8] sm:$0xff] }
 0x14c   : > { %1274 = vmatpush.msrb.mxu2 %v865_v21  ;;  %1294 = vmatpush.msrb.mxu3 %v929_v22  ;;  %v849_v37 = vld [vmem:[#allocation11 + $0x418] sm:$0xff]  ;;  %v1327_v61 = vld [vmem:[#allocation13 + $0xa0] sm:$0xff]  ;;  %v1360_v19 = vld [vmem:[#allocation13 + $0x1a8] sm:$0xff] }
 0x14d   : > { %1238 = vmatpush.msrb.mxu0 %v721_v23  ;;  %1258 = vmatpush.msrb.mxu1 %v785_v24  ;;  %v913_v38 = vld [vmem:[#allocation11 + $0x618] sm:$0xff]  ;;  %v1391_v62 = vld [vmem:[#allocation13 + $0x2a0] sm:$0xff]  ;;  %v1424_v20 = vld [vmem:[#allocation13 + $0x3a8] sm:$0xff] }
 0x14e   : > { %1275 = vmatpush.msrb.mxu2 %v861_v25  ;;  %1295 = vmatpush.msrb.mxu3 %v925_v26  ;;  %v1323_v63 = vld [vmem:[#allocation13 + $0x80] sm:$0xff]  ;;  %v1356_v22 = vld [vmem:[#allocation13 + $0x188] sm:$0xff] }
 0x14f   : > { %1239 = vmatmul.f32.vlgmr.msrb.gmra.mxu0 %v3498_v15  ;;  %1259 = vmatmul.f32.vlgmr.msrb.gmra.mxu1 %v3500_v16  ;;  %v1387_v0 = vld [vmem:[#allocation13 + $0x280] sm:$0xff]  ;;  %v1420_v23 = vld [vmem:[#allocation13 + $0x388] sm:$0xff] }
 0x150   : > { %1276 = vmatpush.msrb.mxu2 %v857_v27  ;;  %1296 = vmatpush.msrb.mxu3 %v921_v28  ;;  %v1319_v1 = vld [vmem:[#allocation13 + $0x60] sm:$0xff]  ;;  %v1352_v25 = vld [vmem:[#allocation13 + $0x168] sm:$0xff] }
 0x151   : > { %1572 = vmatpush.msra.mxu0 %v1367_v29  ;;  %1592 = vmatpush.msra.mxu1 %v1431_v30  ;;  %v1383_v2 = vld [vmem:[#allocation13 + $0x260] sm:$0xff]  ;;  %v1416_v26 = vld [vmem:[#allocation13 + $0x368] sm:$0xff] }
 0x152   : > { %1277 = vmatpush.msrb.mxu2 %v853_v33  ;;  %1297 = vmatpush.msrb.mxu3 %v917_v34  ;;  %v1315_v3 = vld [vmem:[#allocation13 + $0x40] sm:$0xff]  ;;  %v1348_v27 = vld [vmem:[#allocation13 + $0x148] sm:$0xff] }
 0x153   : > { %1573 = vmatpush.msra.mxu0 %v1363_v35  ;;  %1593 = vmatpush.msra.mxu1 %v1427_v36  ;;  %v1379_v4 = vld [vmem:[#allocation13 + $0x240] sm:$0xff]  ;;  %v1412_v28 = vld [vmem:[#allocation13 + $0x348] sm:$0xff] }
 0x154   : > { %1278 = vmatpush.msrb.mxu2 %v849_v37  ;;  %1298 = vmatpush.msrb.mxu3 %v913_v38  ;;  %v1471_v5 = vld [vmem:[#allocation13 + $0x520] sm:$0xff]  ;;  %v1344_v33 = vld [vmem:[#allocation13 + $0x128] sm:$0xff] }
 0x155   : > { %1279 = vmatmul.f32.vlgmr.msrb.gmra.mxu2 %v3504_v31  ;;  %1299 = vmatmul.f32.vlgmr.msrb.gmra.mxu3 %v3506_v32  ;;  %v1467_v6 = vld [vmem:[#allocation13 + $0x500] sm:$0xff]  ;;  %v1408_v34 = vld [vmem:[#allocation13 + $0x328] sm:$0xff] }
 0x156   : > { %1574 = vmatpush.msra.mxu0 %v1359_v39  ;;  %1594 = vmatpush.msra.mxu1 %v1423_v40  ;;  %v1311_v7 = vld [vmem:[#allocation13 + $0x20] sm:$0xff]  ;;  %v1340_v36 = vld [vmem:[#allocation13 + $0x108] sm:$0xff] }
 0x157   : > { %1612 = vmatpush.msra.mxu2 %v1495_v41  ;;  %v1375_v8 = vld [vmem:[#allocation13 + $0x220] sm:$0xff]  ;;  %v1404_v37 = vld [vmem:[#allocation13 + $0x308] sm:$0xff] }
 0x158   : > { %1575 = vmatpush.msra.mxu0 %v1355_v42  ;;  %1595 = vmatpush.msra.mxu1 %v1419_v43  ;;  %v1463_v9 = vld [vmem:[#allocation13 + $0x4e0] sm:$0xff]  ;;  %v1336_v40 = vld [vmem:[#allocation13 + $0xe8] sm:$0xff] }
 0x159   : > { %1613 = vmatpush.msra.mxu2 %v1491_v44  ;;  %v1307_v10 = vld [vmem:[#allocation13] sm:$0xff]  ;;  %v1400_v41 = vld [vmem:[#allocation13 + $0x2e8] sm:$0xff] }
 0x15a   : > { %1576 = vmatpush.msra.mxu0 %v1351_v45  ;;  %1596 = vmatpush.msra.mxu1 %v1415_v46  ;;  %v1371_v11 = vld [vmem:[#allocation13 + $0x200] sm:$0xff]  ;;  %v1496_v42 = vld [vmem:[#allocation13 + $0x5e8] sm:$0xff] }
 0x15b   : > { %1614 = vmatpush.msra.mxu2 %v1487_v47  ;;  %v1459_v14 = vld [vmem:[#allocation13 + $0x4c0] sm:$0xff]  ;;  %v1332_v43 = vld [vmem:[#allocation13 + $0xc8] sm:$0xff] }
 0x15c   : > { %1577 = vmatpush.msra.mxu0 %v1347_v48  ;;  %1597 = vmatpush.msra.mxu1 %v1411_v49  ;;  %v1455_v21 = vld [vmem:[#allocation13 + $0x4a0] sm:$0xff]  ;;  %v1396_v44 = vld [vmem:[#allocation13 + $0x2c8] sm:$0xff] }
 0x15d   : > { %1615 = vmatpush.msra.mxu2 %v1483_v50  ;;  %v1451_v24 = vld [vmem:[#allocation13 + $0x480] sm:$0xff]  ;;  %v1328_v45 = vld [vmem:[#allocation13 + $0xa8] sm:$0xff] }
 0x15e   : > { %1578 = vmatpush.msra.mxu0 %v1343_v51  ;;  %1598 = vmatpush.msra.mxu1 %v1407_v52  ;;  %v1447_v29 = vld [vmem:[#allocation13 + $0x460] sm:$0xff]  ;;  %v1392_v46 = vld [vmem:[#allocation13 + $0x2a8] sm:$0xff] }
 0x15f   : > { %1616 = vmatpush.msra.mxu2 %v1479_v53  ;;  %v1443_v30 = vld [vmem:[#allocation13 + $0x440] sm:$0xff]  ;;  %v1492_v48 = vld [vmem:[#allocation13 + $0x5c8] sm:$0xff] }
 0x160   : > { %1579 = vmatpush.msra.mxu0 %v1339_v54  ;;  %1599 = vmatpush.msra.mxu1 %v1403_v55  ;;  %v1439_v35 = vld [vmem:[#allocation13 + $0x420] sm:$0xff]  ;;  %v1488_v50 = vld [vmem:[#allocation13 + $0x5a8] sm:$0xff] }
 0x161   : > { %1617 = vmatpush.msra.mxu2 %v1475_v56  ;;  %v1559_v38 = vld [vmem:[#allocation13 + $0x7e0] sm:$0xff]  ;;  %v1324_v51 = vld [vmem:[#allocation13 + $0x88] sm:$0xff] }
 0x162   : > { %1580 = vmatpush.msra.mxu0 %v1335_v57  ;;  %1600 = vmatpush.msra.mxu1 %v1399_v58  ;;  %v1435_v39 = vld [vmem:[#allocation13 + $0x400] sm:$0xff]  ;;  %v1388_v52 = vld [vmem:[#allocation13 + $0x288] sm:$0xff] }
 0x163   : > { %1618 = vmatpush.msra.mxu2 %v1471_v5  ;;  %1632 = vmatpush.msra.mxu3 %v1559_v38  ;;  %v1555_v47 = vld [vmem:[#allocation13 + $0x7c0] sm:$0xff]  ;;  %v1484_v54 = vld [vmem:[#allocation13 + $0x588] sm:$0xff] }
 0x164   : > { %1581 = vmatpush.msra.mxu0 %v1331_v59  ;;  %1601 = vmatpush.msra.mxu1 %v1395_v60  ;;  %v1551_v49 = vld [vmem:[#allocation13 + $0x7a0] sm:$0xff]  ;;  %v1320_v55 = vld [vmem:[#allocation13 + $0x68] sm:$0xff] }
 0x165   : > { %1619 = vmatpush.msra.mxu2 %v1467_v6  ;;  %1633 = vmatpush.msra.mxu3 %v1555_v47  ;;  %v1547_v53 = vld [vmem:[#allocation13 + $0x780] sm:$0xff]  ;;  %v1384_v56 = vld [vmem:[#allocation13 + $0x268] sm:$0xff]  ;;  %v1357_v47 = vld [vmem:[#allocation13 + $0x190] sm:$0xff] }
 0x166   : > { %1582 = vmatpush.msra.mxu0 %v1327_v61  ;;  %1602 = vmatpush.msra.mxu1 %v1391_v62  ;;  %v3522_v57 = vld [vmem:[#allocation7 + $0x1] ss:$8 sm:$0xf] }
 0x167   : > { %1620 = vmatpush.msra.mxu2 %v1463_v9  ;;  %1634 = vmatpush.msra.mxu3 %v1551_v49  ;;  %v1543_v58 = vld [vmem:[#allocation13 + $0x760] sm:$0xff]  ;;  %v1480_v59 = vld [vmem:[#allocation13 + $0x568] sm:$0xff] }
 0x168   : > { %1583 = vmatpush.msra.mxu0 %v1323_v63  ;;  %1603 = vmatpush.msra.mxu1 %v1387_v0  ;;  %v1316_v60 = vld [vmem:[#allocation13 + $0x48] sm:$0xff]  ;;  %v1539_v62 = vld [vmem:[#allocation13 + $0x740] sm:$0xff]  ;;  %v975_v0 = vperm.slane %v3522_v57, 0 }
 0x169   : > { %1621 = vmatpush.msra.mxu2 %v1459_v14  ;;  %v1380_v61 = vld [vmem:[#allocation13 + $0x248] sm:$0xff]  ;;  %1635 = vmatpush.msra.mxu3 %v1547_v53  ;;  %v1535_v6 = vld [vmem:[#allocation13 + $0x720] sm:$0xff] }
 0x16a   : > { %1584 = vmatpush.msra.mxu0 %v1319_v1  ;;  %1604 = vmatpush.msra.mxu1 %v1383_v2  ;;  %v1476_v63 = vld [vmem:[#allocation13 + $0x548] sm:$0xff]  ;;  %v1523_v14 = vld [vmem:[#allocation13 + $0x6c0] sm:$0xff] }
 0x16b   : > { %1622 = vmatpush.msra.mxu2 %v1455_v21  ;;  %v1312_v1 = vld [vmem:[#allocation13 + $0x28] sm:$0xff]  ;;  %1636 = vmatpush.msra.mxu3 %v1543_v58 }
 0x16c   : > { %1585 = vmatpush.msra.mxu0 %v1315_v3  ;;  %1605 = vmatpush.msra.mxu1 %v1379_v4  ;;  %v1376_v2 = vld [vmem:[#allocation13 + $0x228] sm:$0xff] }
 0x16d   : > { %1623 = vmatpush.msra.mxu2 %v1451_v24  ;;  %v1308_v4 = vld [vmem:[#allocation13 + $0x8] sm:$0xff]  ;;  %1637 = vmatpush.msra.mxu3 %v1539_v62  ;;  %v1425_v62 = vld [vmem:[#allocation13 + $0x3b0] sm:$0xff] }
 0x16e   : > { %1586 = vmatpush.msra.mxu0 %v1311_v7  ;;  %1606 = vmatpush.msra.mxu1 %v1375_v8  ;;  %v1372_v5 = vld [vmem:[#allocation13 + $0x208] sm:$0xff]  ;;  %v1531_v8 = vld [vmem:[#allocation13 + $0x700] sm:$0xff] }
 0x16f   : > { %1624 = vmatpush.msra.mxu2 %v1447_v29  ;;  %v1472_v7 = vld [vmem:[#allocation13 + $0x528] sm:$0xff]  ;;  %1638 = vmatpush.msra.mxu3 %v1535_v6 }
 0x170   : > { %1587 = vmatpush.msra.mxu0 %v1307_v10  ;;  %1607 = vmatpush.msra.mxu1 %v1371_v11  ;;  %v1468_v9 = vld [vmem:[#allocation13 + $0x508] sm:$0xff]  ;;  %v1527_v11 = vld [vmem:[#allocation13 + $0x6e0] sm:$0xff] }
 0x171   : > { %1625 = vmatpush.msra.mxu2 %v1443_v30  ;;  %1639 = vmatpush.msra.mxu3 %v1531_v8  ;;  %v1456_v21 = vld [vmem:[#allocation13 + $0x4a8] sm:$0xff]  ;;  %v1329_v8 = vld [vmem:[#allocation13 + $0xb0] sm:$0xff] }
 0x172   : > { %1652 = vmatpush.msrb.mxu0 %v1368_v12  ;;  %1672 = vmatpush.msrb.mxu1 %v1432_v13  ;;  %v1464_v12 = vld [vmem:[#allocation13 + $0x4e8] sm:$0xff] }
 0x173   : > { %1626 = vmatpush.msra.mxu2 %v1439_v35  ;;  %1640 = vmatpush.msra.mxu3 %v1527_v11  ;;  %v1448_v35 = vld [vmem:[#allocation13 + $0x468] sm:$0xff]  ;;  %v1409_v11 = vld [vmem:[#allocation13 + $0x330] sm:$0xff] }
 0x174   : > { %1653 = vmatpush.msrb.mxu0 %v1364_v17  ;;  %1673 = vmatpush.msrb.mxu1 %v1428_v18  ;;  %v1460_v17 = vld [vmem:[#allocation13 + $0x4c8] sm:$0xff] }
 0x175   : > { %1627 = vmatpush.msra.mxu2 %v1435_v39  ;;  %1641 = vmatpush.msra.mxu3 %v1523_v14  ;;  %v1444_v38 = vld [vmem:[#allocation13 + $0x448] sm:$0xff] }
 0x176   : > { %1654 = vmatpush.msrb.mxu0 %v1360_v19  ;;  %1674 = vmatpush.msrb.mxu1 %v1424_v20  ;;  %v1519_v20 = vld [vmem:[#allocation13 + $0x6a0] sm:$0xff]  ;;  %v1556_v53 = vld [vmem:[#allocation13 + $0x7c8] sm:$0xff] }
 0x177   : > { %1692 = vmatpush.msrb.mxu2 %v1496_v42  ;;  %1642 = vmatpush.msra.mxu3 %v1519_v20  ;;  %v1503_v42 = vld [vmem:[#allocation13 + $0x620] sm:$0xff]  ;;  %v1552_v58 = vld [vmem:[#allocation13 + $0x7a8] sm:$0xff] }
 0x178   : > { %1655 = vmatpush.msrb.mxu0 %v1356_v22  ;;  %1675 = vmatpush.msrb.mxu1 %v1420_v23  ;;  %v976_v22 = vperm.slane %v3522_v57, 1  ;;  %v1536_v6 = vld [vmem:[#allocation13 + $0x728] sm:$0xff] }
 0x179   : > { %1693 = vmatpush.msrb.mxu2 %v1492_v48  ;;  %v1436_v48 = vld [vmem:[#allocation13 + $0x408] sm:$0xff] }
 0x17a   : > { %1656 = vmatpush.msrb.mxu0 %v1352_v25  ;;  %1676 = vmatpush.msrb.mxu1 %v1416_v26  ;;  %v1515_v26 = vld [vmem:[#allocation13 + $0x680] sm:$0xff]  ;;  %v1528_v14 = vld [vmem:[#allocation13 + $0x6e8] sm:$0xff] }
 0x17b   : > { %1694 = vmatpush.msrb.mxu2 %v1488_v50  ;;  %1643 = vmatpush.msra.mxu3 %v1515_v26  ;;  %v1560_v50 = vld [vmem:[#allocation13 + $0x7e8] sm:$0xff] }
 0x17c   : > { %1657 = vmatpush.msrb.mxu0 %v1348_v27  ;;  %1677 = vmatpush.msrb.mxu1 %v1412_v28  ;;  %v1452_v27 = vld [vmem:[#allocation13 + $0x488] sm:$0xff] }
 0x17d   : > { %1695 = vmatpush.msrb.mxu2 %v1484_v54 }
 0x17e   : > { %1658 = vmatpush.msrb.mxu0 %v1344_v33  ;;  %1678 = vmatpush.msrb.mxu1 %v1408_v34  ;;  %v1369_v33 = vld [vmem:[#allocation13 + $0x1f0] sm:$0xff]  ;;  %v1511_v34 = vld [vmem:[#allocation13 + $0x660] sm:$0xff] }
 0x17f   : > { %1696 = vmatpush.msrb.mxu2 %v1480_v59  ;;  %1644 = vmatpush.msra.mxu3 %v1511_v34  ;;  %v1429_v59 = vld [vmem:[#allocation13 + $0x3d0] sm:$0xff] }
 0x180   : > { %1659 = vmatpush.msrb.mxu0 %v1340_v36  ;;  %1679 = vmatpush.msrb.mxu1 %v1404_v37  ;;  %v1365_v36 = vld [vmem:[#allocation13 + $0x1d0] sm:$0xff]  ;;  %v1507_v37 = vld [vmem:[#allocation13 + $0x640] sm:$0xff] }
 0x181   : > { %1697 = vmatpush.msrb.mxu2 %v1476_v63  ;;  %1645 = vmatpush.msra.mxu3 %v1507_v37  ;;  %v1341_v63 = vld [vmem:[#allocation13 + $0x110] sm:$0xff] }
 0x182   : > { %1660 = vmatpush.msrb.mxu0 %v1336_v40  ;;  %1680 = vmatpush.msrb.mxu1 %v1400_v41  ;;  %v1361_v41 = vld [vmem:[#allocation13 + $0x1b0] sm:$0xff] }
 0x183   : > { %1698 = vmatpush.msrb.mxu2 %v1472_v7  ;;  %1646 = vmatpush.msra.mxu3 %v1503_v42  ;;  %v1413_v7 = vld [vmem:[#allocation13 + $0x350] sm:$0xff] }
 0x184   : > { %1661 = vmatpush.msrb.mxu0 %v1332_v43  ;;  %1681 = vmatpush.msrb.mxu1 %v1396_v44  ;;  %v1440_v43 = vld [vmem:[#allocation13 + $0x428] sm:$0xff]  ;;  %v1389_v37 = vld [vmem:[#allocation13 + $0x290] sm:$0xff] }
 0x185   : > { %1699 = vmatpush.msrb.mxu2 %v1468_v9  ;;  %v1532_v9 = vld [vmem:[#allocation13 + $0x708] sm:$0xff]  ;;  %v1385_v42 = vld [vmem:[#allocation13 + $0x270] sm:$0xff] }
 0x186   : > { %1662 = vmatpush.msrb.mxu0 %v1328_v45  ;;  %1682 = vmatpush.msrb.mxu1 %v1392_v46  ;;  %v1000_v3 = vpop.f32.mrf.mxu0  ;;  %v1020_v13 = vpop.f32.mrf.mxu1  ;;  %v1499_v45 = vld [vmem:[#allocation13 + $0x600] sm:$0xff] }
 0x187   : > { %v1001_v10 = vadd.f32 %v1000_v3, %v975_v0  ;;  %1700 = vmatpush.msrb.mxu2 %v1464_v12  ;;  %1647 = vmatpush.msra.mxu3 %v1499_v45  ;;  %v1544_v0 = vld [vmem:[#allocation13 + $0x768] sm:$0xff]  ;;  %v1325_v12 = vld [vmem:[#allocation13 + $0x90] sm:$0xff] }
 0x188   : > { %1663 = vmatpush.msrb.mxu0 %v1324_v51  ;;  %1683 = vmatpush.msrb.mxu1 %v1388_v52  ;;  %v1353_v52 = vld [vmem:[#allocation13 + $0x170] sm:$0xff]  ;;  %v1540_v3 = vld [vmem:[#allocation13 + $0x748] sm:$0xff] }
 0x189   : > { %v1021_v18 = vadd.f32 %v1020_v13, %v1001_v10  ;;  %1701 = vmatpush.msrb.mxu2 %v1460_v17  ;;  %1712 = vmatpush.msrb.mxu3 %v1560_v50  ;;  %v977_v10 = vperm.slane %v3522_v57, 2  ;;  %v1405_v17 = vld [vmem:[#allocation13 + $0x310] sm:$0xff] }
 0x18a   : > { %1664 = vmatpush.msrb.mxu0 %v1320_v55  ;;  %1684 = vmatpush.msrb.mxu1 %v1384_v56  ;;  %v1433_v55 = vld [vmem:[#allocation13 + $0x3f0] sm:$0xff] }
 0x18b   : > { %1702 = vmatpush.msrb.mxu2 %v1456_v21  ;;  %v1349_v56 = vld [vmem:[#allocation13 + $0x150] sm:$0xff]  ;;  %1713 = vmatpush.msrb.mxu3 %v1556_v53 }
 0x18c   : > { %1665 = vmatpush.msrb.mxu0 %v1316_v60  ;;  %1685 = vmatpush.msrb.mxu1 %v1380_v61  ;;  %v1345_v60 = vld [vmem:[#allocation13 + $0x130] sm:$0xff]  ;;  %v1548_v61 = vld [vmem:[#allocation13 + $0x788] sm:$0xff] }
 0x18d   : > { %1703 = vmatpush.msrb.mxu2 %v1452_v27  ;;  %1714 = vmatpush.msrb.mxu3 %v1552_v58  ;;  %v1401_v21 = vld [vmem:[#allocation13 + $0x2f0] sm:$0xff]  ;;  %v1516_v27 = vld [vmem:[#allocation13 + $0x688] sm:$0xff] }
 0x18e   : > { %1666 = vmatpush.msrb.mxu0 %v1312_v1  ;;  %1686 = vmatpush.msrb.mxu1 %v1376_v2  ;;  %v1421_v1 = vld [vmem:[#allocation13 + $0x390] sm:$0xff] }
 0x18f   : > { %1704 = vmatpush.msrb.mxu2 %v1448_v35  ;;  %v1337_v2 = vld [vmem:[#allocation13 + $0xf0] sm:$0xff]  ;;  %1715 = vmatpush.msrb.mxu3 %v1548_v61  ;;  %v1512_v35 = vld [vmem:[#allocation13 + $0x668] sm:$0xff] }
 0x190   : > { %1667 = vmatpush.msrb.mxu0 %v1308_v4  ;;  %1687 = vmatpush.msrb.mxu1 %v1372_v5  ;;  %v1080_v24 = vpop.f32.mrf.mxu0  ;;  %v1100_v39 = vpop.f32.mrf.mxu1  ;;  %v1417_v4 = vld [vmem:[#allocation13 + $0x370] sm:$0xff] }
 0x191   : > { %v1081_v29 = vadd.f32 %v1080_v24, %v976_v22  ;;  %1705 = vmatpush.msrb.mxu2 %v1444_v38  ;;  %v1333_v5 = vld [vmem:[#allocation13 + $0xd0] sm:$0xff]  ;;  %1716 = vmatpush.msrb.mxu3 %v1544_v0  ;;  %v1370_v38 = vld [vmem:[#allocation13 + $0x1f8] sm:$0xff] }
 0x192   : > { %v1317_v22 = vld [vmem:[#allocation13 + $0x50] sm:$0xff] }
 0x193   : > { %v1040_v19 = vpop.f32.mrf.mxu2  ;;  %v1060_v25 = vpop.f32.mrf.mxu3  ;;  %v1101_v40 = vadd.f32 %v1100_v39, %v1081_v29  ;;  %1706 = vmatpush.msrb.mxu2 %v1440_v43  ;;  %1717 = vmatpush.msrb.mxu3 %v1540_v3  ;;  %v1397_v24 = vld [vmem:[#allocation13 + $0x2d0] sm:$0xff]  ;;  %v1366_v43 = vld [vmem:[#allocation13 + $0x1d8] sm:$0xff] }
 0x194   : > { %v1041_v23 = vadd.f32 %v1040_v19, %v1021_v18  ;;  %v1321_v18 = vld [vmem:[#allocation13 + $0x70] sm:$0xff]  ;;  %v1524_v19 = vld [vmem:[#allocation13 + $0x6c8] sm:$0xff] }
 0x195   : > { %1707 = vmatpush.msrb.mxu2 %v1436_v48  ;;  %1718 = vmatpush.msrb.mxu3 %v1536_v6  ;;  %v1393_v29 = vld [vmem:[#allocation13 + $0x2b0] sm:$0xff]  ;;  %v1362_v48 = vld [vmem:[#allocation13 + $0x1b8] sm:$0xff] }
 0x196   : > { %v1061_v28 = vadd.f32 %v1060_v25, %v1041_v23  ;;  %v1520_v23 = vld [vmem:[#allocation13 + $0x6a8] sm:$0xff]  ;;  %v1313_v25 = vld [vmem:[#allocation13 + $0x30] sm:$0xff] }
 0x197   : > { %1719 = vmatpush.msrb.mxu3 %v1532_v9  ;;  %v1493_v50 = vld [vmem:[#allocation13 + $0x5d0] sm:$0xff] }
 0x198   : > { %v3526_v30 = vmax.f32 %v1061_v28, 0.0  ;;  %v1489_v53 = vld [vmem:[#allocation13 + $0x5b0] sm:$0xff] }
 0x199   : > { %1720 = vmatpush.msrb.mxu3 %v1528_v14  ;;  %v1485_v58 = vld [vmem:[#allocation13 + $0x590] sm:$0xff]  ;;  %v978_v14 = vperm.slane %v3522_v57, 3  ;;  %v1398_v57 = vld [vmem:[#allocation13 + $0x2d8] sm:$0xff] }
 0x19a   : > { %1588 = vmatmul.f32.vlgmr.msra.gmra.mxu0 %v3526_v30  ;;  %v1481_v61 = vld [vmem:[#allocation13 + $0x570] sm:$0xff] }
 0x19b   : > { %1732 = vmatpush.msra.mxu0 %v1369_v33  ;;  %1721 = vmatpush.msrb.mxu3 %v1524_v19  ;;  %v1309_v33 = vld [vmem:[#allocation13 + $0x10] sm:$0xff] }
 0x19c   : > { %v1477_v0 = vld [vmem:[#allocation13 + $0x550] sm:$0xff] }
 0x19d   : > { %v1120_v44 = vpop.f32.mrf.mxu2  ;;  %1733 = vmatpush.msra.mxu0 %v1365_v36  ;;  %v1140_v49 = vpop.f32.mrf.mxu3  ;;  %1722 = vmatpush.msrb.mxu3 %v1520_v23  ;;  %v1473_v3 = vld [vmem:[#allocation13 + $0x530] sm:$0xff]  ;;  %v1402_v23 = vld [vmem:[#allocation13 + $0x2f8] sm:$0xff] }
 0x19e   : > { %v1121_v46 = vadd.f32 %v1120_v44, %v1101_v40  ;;  %v1508_v40 = vld [vmem:[#allocation13 + $0x648] sm:$0xff]  ;;  %v1469_v6 = vld [vmem:[#allocation13 + $0x510] sm:$0xff] }
 0x19f   : > { %1734 = vmatpush.msra.mxu0 %v1361_v41  ;;  %1723 = vmatpush.msrb.mxu3 %v1516_v27  ;;  %v1504_v44 = vld [vmem:[#allocation13 + $0x628] sm:$0xff]  ;;  %v1465_v9 = vld [vmem:[#allocation13 + $0x4f0] sm:$0xff]  ;;  %v1314_v27 = vld [vmem:[#allocation13 + $0x38] sm:$0xff] }
 0x1a0   : > { %v1141_v51 = vadd.f32 %v1140_v49, %v1121_v46  ;;  %v1497_v46 = vld [vmem:[#allocation13 + $0x5f0] sm:$0xff]  ;;  %v1500_v49 = vld [vmem:[#allocation13 + $0x608] sm:$0xff] }
 0x1a1   : > { %1735 = vmatpush.msra.mxu0 %v1357_v47  ;;  %1724 = vmatpush.msrb.mxu3 %v1512_v35  ;;  %v1381_v47 = vld [vmem:[#allocation13 + $0x250] sm:$0xff]  ;;  %v1310_v35 = vld [vmem:[#allocation13 + $0x18] sm:$0xff] }
 0x1a2   : > { %v3529_v54 = vmax.f32 %v1141_v51, 0.0  ;;  %1668 = vmatmul.f32.vlgmr.msrb.gmra.mxu0 %v3526_v30  ;;  %v1377_v51 = vld [vmem:[#allocation13 + $0x230] sm:$0xff] }
 0x1a3   : > { %1736 = vmatpush.msra.mxu0 %v1353_v52  ;;  %1725 = vmatpush.msrb.mxu3 %v1508_v40  ;;  %v1358_v52 = vld [vmem:[#allocation13 + $0x198] sm:$0xff]  ;;  %v1457_v19 = vld [vmem:[#allocation13 + $0x4b0] sm:$0xff] }
 0x1a4   : > { %1608 = vmatmul.f32.vlgmr.msra.gmra.mxu1 %v3529_v54 }
 0x1a5   : > { %1752 = vmatpush.msra.mxu1 %v1433_v55  ;;  %1737 = vmatpush.msra.mxu0 %v1349_v56  ;;  %v1373_v55 = vld [vmem:[#allocation13 + $0x210] sm:$0xff]  ;;  %v1354_v56 = vld [vmem:[#allocation13 + $0x178] sm:$0xff] }
 0x1a6   : > { %1726 = vmatpush.msrb.mxu3 %v1504_v44  ;;  %v1498_v44 = vld [vmem:[#allocation13 + $0x5f8] sm:$0xff] }
 0x1a7   : > { %1753 = vmatpush.msra.mxu1 %v1429_v59  ;;  %1738 = vmatpush.msra.mxu0 %v1345_v60  ;;  %v1434_v59 = vld [vmem:[#allocation13 + $0x3f8] sm:$0xff] }
 0x1a8   : > { %1727 = vmatpush.msrb.mxu3 %v1500_v49  ;;  %v1350_v60 = vld [vmem:[#allocation13 + $0x158] sm:$0xff] }
 0x1a9   : > { %1754 = vmatpush.msra.mxu1 %v1425_v62  ;;  %1739 = vmatpush.msra.mxu0 %v1341_v63  ;;  %v1430_v62 = vld [vmem:[#allocation13 + $0x3d8] sm:$0xff] }
 0x1aa   : > { %v1160_v13 = vpop.f32.mrf.mxu0  ;;  %v1180_v26 = vpop.f32.mrf.mxu1  ;;  %v1346_v63 = vld [vmem:[#allocation13 + $0x138] sm:$0xff] }
 0x1ab   : > { %1755 = vmatpush.msra.mxu1 %v1421_v1  ;;  %1740 = vmatpush.msra.mxu0 %v1337_v2  ;;  %v1161_v20 = vadd.f32 %v1160_v13, %v977_v10  ;;  %v1426_v1 = vld [vmem:[#allocation13 + $0x3b8] sm:$0xff] }
 0x1ac   : > { %1688 = vmatmul.f32.vlgmr.msrb.gmra.mxu1 %v3529_v54  ;;  %v1342_v2 = vld [vmem:[#allocation13 + $0x118] sm:$0xff] }
 0x1ad   : > { %1756 = vmatpush.msra.mxu1 %v1417_v4  ;;  %1741 = vmatpush.msra.mxu0 %v1333_v5  ;;  %v1181_v28 = vadd.f32 %v1180_v26, %v1161_v20  ;;  %v1422_v4 = vld [vmem:[#allocation13 + $0x398] sm:$0xff]  ;;  %v1449_v26 = vld [vmem:[#allocation13 + $0x470] sm:$0xff] }
 0x1ae   : > { %v1338_v5 = vld [vmem:[#allocation13 + $0xf8] sm:$0xff] }
 0x1af   : > { %1757 = vmatpush.msra.mxu1 %v1413_v7  ;;  %1742 = vmatpush.msra.mxu0 %v1329_v8  ;;  %v1418_v7 = vld [vmem:[#allocation13 + $0x378] sm:$0xff] }
 0x1b0   : > { %v1334_v8 = vld [vmem:[#allocation13 + $0xd8] sm:$0xff] }
 0x1b1   : > { %1758 = vmatpush.msra.mxu1 %v1409_v11  ;;  %1743 = vmatpush.msra.mxu0 %v1325_v12  ;;  %v1414_v10 = vld [vmem:[#allocation13 + $0x358] sm:$0xff]  ;;  %v1461_v12 = vld [vmem:[#allocation13 + $0x4d0] sm:$0xff] }
 0x1b2   : > { %v1330_v11 = vld [vmem:[#allocation13 + $0xb8] sm:$0xff] }
 0x1b3   : > { %1759 = vmatpush.msra.mxu1 %v1405_v17  ;;  %1744 = vmatpush.msra.mxu0 %v1321_v18  ;;  %v1410_v13 = vld [vmem:[#allocation13 + $0x338] sm:$0xff] }
 0x1b4   : > { %v1326_v17 = vld [vmem:[#allocation13 + $0x98] sm:$0xff] }
 0x1b5   : > { %1760 = vmatpush.msra.mxu1 %v1401_v21  ;;  %1745 = vmatpush.msra.mxu0 %v1317_v22  ;;  %v1406_v20 = vld [vmem:[#allocation13 + $0x318] sm:$0xff]  ;;  %v1453_v22 = vld [vmem:[#allocation13 + $0x490] sm:$0xff] }
 0x1b6   : > { %v1322_v21 = vld [vmem:[#allocation13 + $0x78] sm:$0xff] }
 0x1b7   : > { %v1200_v34 = vpop.f32.mrf.mxu2  ;;  %1761 = vmatpush.msra.mxu1 %v1397_v24  ;;  %1746 = vmatpush.msra.mxu0 %v1313_v25  ;;  %v1220_v39 = vpop.f32.mrf.mxu3  ;;  %v1318_v25 = vld [vmem:[#allocation13 + $0x58] sm:$0xff] }
 0x1b8   : > { %v1201_v36 = vadd.f32 %v1200_v34, %v1181_v28  ;;  %v1494_v49 = vld [vmem:[#allocation13 + $0x5d8] sm:$0xff] }
 0x1b9   : > { %1762 = vmatpush.msra.mxu1 %v1393_v29  ;;  %1747 = vmatpush.msra.mxu0 %v1309_v33  ;;  %v1445_v29 = vld [vmem:[#allocation13 + $0x450] sm:$0xff]  ;;  %v1394_v33 = vld [vmem:[#allocation13 + $0x2b8] sm:$0xff] }
 0x1ba   : > { %v1221_v41 = vadd.f32 %v1220_v39, %v1201_v36  ;;  %1748 = vmatmul.f32.vlgmr.msra.gmra.mxu0 %v3526_v30 }
 0x1bb   : > { %1763 = vmatpush.msra.mxu1 %v1389_v37  ;;  %1812 = vmatpush.msrb.mxu0 %v1370_v38  ;;  %v1441_v37 = vld [vmem:[#allocation13 + $0x430] sm:$0xff]  ;;  %v1390_v38 = vld [vmem:[#allocation13 + $0x298] sm:$0xff] }
 0x1bc   : > { %v3536_v45 = vmax.f32 %v1221_v41, 0.0  ;;  %v1437_v41 = vld [vmem:[#allocation13 + $0x410] sm:$0xff] }
 0x1bd   : > { %1764 = vmatpush.msra.mxu1 %v1385_v42  ;;  %1813 = vmatpush.msrb.mxu0 %v1366_v43  ;;  %v1386_v42 = vld [vmem:[#allocation13 + $0x278] sm:$0xff] }
 0x1be   : > { %1628 = vmatmul.f32.vlgmr.msra.gmra.mxu2 %v3536_v45 }
 0x1bf   : > { %1772 = vmatpush.msra.mxu2 %v1497_v46  ;;  %1765 = vmatpush.msra.mxu1 %v1381_v47  ;;  %v1561_v47 = vld [vmem:[#allocation13 + $0x7f0] sm:$0xff] }
 0x1c0   : > { %1814 = vmatpush.msrb.mxu0 %v1362_v48  ;;  %v1382_v48 = vld [vmem:[#allocation13 + $0x258] sm:$0xff] }
 0x1c1   : > { %1773 = vmatpush.msra.mxu2 %v1493_v50  ;;  %1766 = vmatpush.msra.mxu1 %v1377_v51  ;;  %v1557_v50 = vld [vmem:[#allocation13 + $0x7d0] sm:$0xff]  ;;  %v1378_v51 = vld [vmem:[#allocation13 + $0x238] sm:$0xff] }
 0x1c2   : > { %1815 = vmatpush.msrb.mxu0 %v1358_v52  ;;  %v1490_v52 = vld [vmem:[#allocation13 + $0x5b8] sm:$0xff] }
 0x1c3   : > { %1774 = vmatpush.msra.mxu2 %v1489_v53  ;;  %1767 = vmatpush.msra.mxu1 %v1373_v55  ;;  %v1374_v53 = vld [vmem:[#allocation13 + $0x218] sm:$0xff] }
 0x1c4   : > { %1768 = vmatmul.f32.vlgmr.msra.gmra.mxu1 %v3529_v54  ;;  %1816 = vmatpush.msrb.mxu0 %v1354_v56  ;;  %v1486_v55 = vld [vmem:[#allocation13 + $0x598] sm:$0xff]  ;;  %v1549_v56 = vld [vmem:[#allocation13 + $0x790] sm:$0xff] }
 0x1c5   : > { %1775 = vmatpush.msra.mxu2 %v1485_v58  ;;  %1832 = vmatpush.msrb.mxu1 %v1434_v59  ;;  %v1482_v58 = vld [vmem:[#allocation13 + $0x578] sm:$0xff]  ;;  %v1545_v59 = vld [vmem:[#allocation13 + $0x770] sm:$0xff] }
 0x1c6   : > { %1708 = vmatmul.f32.vlgmr.msrb.gmra.mxu2 %v3536_v45  ;;  %1817 = vmatpush.msrb.mxu0 %v1350_v60  ;;  %v1478_v60 = vld [vmem:[#allocation13 + $0x558] sm:$0xff] }
 0x1c7   : > { %1776 = vmatpush.msra.mxu2 %v1481_v61  ;;  %1833 = vmatpush.msrb.mxu1 %v1430_v62  ;;  %v1541_v61 = vld [vmem:[#allocation13 + $0x750] sm:$0xff]  ;;  %v1474_v62 = vld [vmem:[#allocation13 + $0x538] sm:$0xff] }
 0x1c8   : > { %1818 = vmatpush.msrb.mxu0 %v1346_v63  ;;  %v1537_v63 = vld [vmem:[#allocation13 + $0x730] sm:$0xff] }
 0x1c9   : > { %1777 = vmatpush.msra.mxu2 %v1477_v0  ;;  %1834 = vmatpush.msrb.mxu1 %v1426_v1  ;;  %v1470_v0 = vld [vmem:[#allocation13 + $0x518] sm:$0xff]  ;;  %v1533_v1 = vld [vmem:[#allocation13 + $0x710] sm:$0xff] }
 0x1ca   : > { %1819 = vmatpush.msrb.mxu0 %v1342_v2  ;;  %v1466_v2 = vld [vmem:[#allocation13 + $0x4f8] sm:$0xff] }
 0x1cb   : > { %1778 = vmatpush.msra.mxu2 %v1473_v3  ;;  %1835 = vmatpush.msrb.mxu1 %v1422_v4  ;;  %v1529_v3 = vld [vmem:[#allocation13 + $0x6f0] sm:$0xff] }
 0x1cc   : > { %1820 = vmatpush.msrb.mxu0 %v1338_v5  ;;  %v1240_v18 = vpop.f32.mrf.mxu0  ;;  %v1260_v28 = vpop.f32.mrf.mxu1  ;;  %v1525_v4 = vld [vmem:[#allocation13 + $0x6d0] sm:$0xff]  ;;  %v1458_v5 = vld [vmem:[#allocation13 + $0x4b8] sm:$0xff] }
 0x1cd   : > { %1779 = vmatpush.msra.mxu2 %v1469_v6  ;;  %1836 = vmatpush.msrb.mxu1 %v1418_v7  ;;  %v1241_v24 = vadd.f32 %v1240_v18, %v978_v14  ;;  %v1521_v6 = vld [vmem:[#allocation13 + $0x6b0] sm:$0xff]  ;;  %v1454_v7 = vld [vmem:[#allocation13 + $0x498] sm:$0xff] }
 0x1ce   : > { %1821 = vmatpush.msrb.mxu0 %v1334_v8  ;;  %v1517_v8 = vld [vmem:[#allocation13 + $0x690] sm:$0xff] }
 0x1cf   : > { %1780 = vmatpush.msra.mxu2 %v1465_v9  ;;  %1837 = vmatpush.msrb.mxu1 %v1414_v10  ;;  %v1261_v34 = vadd.f32 %v1260_v28, %v1241_v24  ;;  %v1450_v9 = vld [vmem:[#allocation13 + $0x478] sm:$0xff]  ;;  %v1513_v10 = vld [vmem:[#allocation13 + $0x670] sm:$0xff] }
 0x1d0   : > { %1822 = vmatpush.msrb.mxu0 %v1330_v11  ;;  %v1446_v11 = vld [vmem:[#allocation13 + $0x458] sm:$0xff]  ;;  %v1505_v14 = vld [vmem:[#allocation13 + $0x630] sm:$0xff] }
 0x1d1   : > { %1781 = vmatpush.msra.mxu2 %v1461_v12  ;;  %1838 = vmatpush.msrb.mxu1 %v1410_v13  ;;  %v1509_v12 = vld [vmem:[#allocation13 + $0x650] sm:$0xff]  ;;  %v1442_v13 = vld [vmem:[#allocation13 + $0x438] sm:$0xff] }
 0x1d2   : > { %1823 = vmatpush.msrb.mxu0 %v1326_v17  ;;  %v1438_v17 = vld [vmem:[#allocation13 + $0x418] sm:$0xff]  ;;  %v1501_v18 = vld [vmem:[#allocation13 + $0x610] sm:$0xff] }
 0x1d3   : > { %1782 = vmatpush.msra.mxu2 %v1457_v19  ;;  %1839 = vmatpush.msrb.mxu1 %v1406_v20  ;;  %v1562_v19 = vld [vmem:[#allocation13 + $0x7f8] sm:$0xff] }
 0x1d4   : > { %1824 = vmatpush.msrb.mxu0 %v1322_v21  ;;  %v1558_v20 = vld [vmem:[#allocation13 + $0x7d8] sm:$0xff] }
 0x1d5   : > { %1783 = vmatpush.msra.mxu2 %v1453_v22  ;;  %1840 = vmatpush.msrb.mxu1 %v1402_v23  ;;  %v1554_v21 = vld [vmem:[#allocation13 + $0x7b8] sm:$0xff] }
 0x1d6   : > { %1825 = vmatpush.msrb.mxu0 %v1318_v25  ;;  %v1550_v22 = vld [vmem:[#allocation13 + $0x798] sm:$0xff] }
 0x1d7   : > { %1784 = vmatpush.msra.mxu2 %v1449_v26  ;;  %1841 = vmatpush.msrb.mxu1 %v1398_v57  ;;  %v1546_v23 = vld [vmem:[#allocation13 + $0x778] sm:$0xff] }
 0x1d8   : > { %v1280_v36 = vpop.f32.mrf.mxu2  ;;  %1826 = vmatpush.msrb.mxu0 %v1314_v27  ;;  %v1300_v40 = vpop.f32.mrf.mxu3  ;;  %v1542_v24 = vld [vmem:[#allocation13 + $0x758] sm:$0xff] }
 0x1d9   : > { %v1281_v39 = vadd.f32 %v1280_v36, %v1261_v34  ;;  %1785 = vmatpush.msra.mxu2 %v1445_v29  ;;  %1842 = vmatpush.msrb.mxu1 %v1394_v33  ;;  %v1538_v25 = vld [vmem:[#allocation13 + $0x738] sm:$0xff] }
 0x1da   : > { %1827 = vmatpush.msrb.mxu0 %v1310_v35  ;;  %v1534_v26 = vld [vmem:[#allocation13 + $0x718] sm:$0xff] }
 0x1db   : > { %v1301_v43 = vadd.f32 %v1300_v40, %v1281_v39  ;;  %1786 = vmatpush.msra.mxu2 %v1441_v37  ;;  %1843 = vmatpush.msrb.mxu1 %v1390_v38  ;;  %v1530_v57 = vld [vmem:[#allocation13 + $0x6f8] sm:$0xff] }
 0x1dc   : > { %1828 = vmatmul.f32.vlgmr.msrb.gmra.mxu0 %v3526_v30  ;;  %v1553_v30 = vld [vmem:[#allocation13 + $0x7b0] sm:$0xff]  ;;  %v1526_v27 = vld [vmem:[#allocation13 + $0x6d8] sm:$0xff] }
 0x1dd   : > { %v3543_v46 = vmax.f32 %v1301_v43, 0.0  ;;  %1787 = vmatpush.msra.mxu2 %v1437_v41  ;;  %1844 = vmatpush.msrb.mxu1 %v1386_v42  ;;  %v1518_v28 = vld [vmem:[#allocation13 + $0x698] sm:$0xff] }
 0x1de   : > { %1788 = vmatmul.f32.vlgmr.msra.gmra.mxu2 %v3536_v45  ;;  %v1514_v29 = vld [vmem:[#allocation13 + $0x678] sm:$0xff] }
 0x1df   : > { %1648 = vmatmul.f32.vlgmr.msra.gmra.mxu3 %v3543_v46  ;;  %1852 = vmatpush.msrb.mxu2 %v1498_v44  ;;  %v1510_v33 = vld [vmem:[#allocation13 + $0x658] sm:$0xff] }
 0x1e0   : > { %1792 = vmatpush.msra.mxu3 %v1561_v47  ;;  %1845 = vmatpush.msrb.mxu1 %v1382_v48  ;;  %v1506_v34 = vld [vmem:[#allocation13 + $0x638] sm:$0xff] }
 0x1e1   : > { %1853 = vmatpush.msrb.mxu2 %v1494_v49  ;;  %v1502_v35 = vld [vmem:[#allocation13 + $0x618] sm:$0xff] }
 0x1e2   : > { %1793 = vmatpush.msra.mxu3 %v1557_v50  ;;  %1846 = vmatpush.msrb.mxu1 %v1378_v51  ;;  %v713_v36 = vld [vmem:[#allocation7 + $0x2] ss:$8 sm:$0xf] }
 0x1e3   : > { %1854 = vmatpush.msrb.mxu2 %v1490_v52  ;;  %v1564_v37 = vperm.slane %v713_v36, 0  ;;  %v1565_v48 = vperm.slane %v713_v36, 1 }
 0x1e4   : > { %1794 = vmatpush.msra.mxu3 %v1553_v30  ;;  %1847 = vmatpush.msrb.mxu1 %v1374_v53 }
 0x1e5   : > { %1855 = vmatpush.msrb.mxu2 %v1486_v55  ;;  %1848 = vmatmul.f32.vlgmr.msrb.gmra.mxu1 %v3529_v54  ;;  %v1462_v54 = vld [vmem:[#allocation13 + $0x4d8] sm:$0xff] }
 0x1e6   : > { %1795 = vmatpush.msra.mxu3 %v1549_v56 }
 0x1e7   : > { %1728 = vmatmul.f32.vlgmr.msrb.gmra.mxu3 %v3543_v46  ;;  %1856 = vmatpush.msrb.mxu2 %v1482_v58  ;;  %v1566_v58 = vperm.slane %v713_v36, 2 }
 0x1e8   : > { %1796 = vmatpush.msra.mxu3 %v1545_v59 }
 0x1e9   : > { %1857 = vmatpush.msrb.mxu2 %v1478_v60 }
 0x1ea   : > { %1797 = vmatpush.msra.mxu3 %v1541_v61 }
 0x1eb   : > { %1858 = vmatpush.msrb.mxu2 %v1474_v62 }
 0x1ec   : > { %1798 = vmatpush.msra.mxu3 %v1537_v63 }
 0x1ed   : > { %1859 = vmatpush.msrb.mxu2 %v1470_v0 }
 0x1ee   : > { %1799 = vmatpush.msra.mxu3 %v1533_v1 }
 0x1ef   : > { %1860 = vmatpush.msrb.mxu2 %v1466_v2 }
 0x1f0   : > { %1800 = vmatpush.msra.mxu3 %v1529_v3 }
 0x1f1   : > { %1861 = vmatpush.msrb.mxu2 %v1462_v54 }
 0x1f2   : > { %1801 = vmatpush.msra.mxu3 %v1525_v4 }
 0x1f3   : > { %1862 = vmatpush.msrb.mxu2 %v1458_v5  ;;  %v1567_v5 = vperm.slane %v713_v36, 3 }
 0x1f4   : > { %1802 = vmatpush.msra.mxu3 %v1521_v6 }
 0x1f5   : > { %1863 = vmatpush.msrb.mxu2 %v1454_v7 }
 0x1f6   : > { %1803 = vmatpush.msra.mxu3 %v1517_v8 }
 0x1f7   : > { %1864 = vmatpush.msrb.mxu2 %v1450_v9 }
 0x1f8   : > { %1804 = vmatpush.msra.mxu3 %v1513_v10 }
 0x1f9   : > { %1865 = vmatpush.msrb.mxu2 %v1446_v11 }
 0x1fa   : > { %1805 = vmatpush.msra.mxu3 %v1509_v12 }
 0x1fb   : > { %1866 = vmatpush.msrb.mxu2 %v1442_v13 }
 0x1fc   : > { %1806 = vmatpush.msra.mxu3 %v1505_v14 }
 0x1fd   : > { %1867 = vmatpush.msrb.mxu2 %v1438_v17 }
 0x1fe   : > { %1807 = vmatpush.msra.mxu3 %v1501_v18  ;;  %1868 = vmatmul.f32.vlgmr.msrb.gmra.mxu2 %v3536_v45  ;;  %v1522_v45 = vld [vmem:[#allocation13 + $0x6b8] sm:$0xff] }
 0x1ff   : > { %1808 = vmatmul.f32.vlgmr.msra.gmra.mxu3 %v3543_v46 }
 0x200   : > { %1872 = vmatpush.msrb.mxu3 %v1562_v19 }
 0x202   : > { %1873 = vmatpush.msrb.mxu3 %v1558_v20 }
 0x204   : > { %1874 = vmatpush.msrb.mxu3 %v1554_v21 }
 0x206   : > { %1875 = vmatpush.msrb.mxu3 %v1550_v22 }
 0x208   : > { %1876 = vmatpush.msrb.mxu3 %v1546_v23 }
 0x20a   : > { %1877 = vmatpush.msrb.mxu3 %v1542_v24 }
 0x20c   : > { %1878 = vmatpush.msrb.mxu3 %v1538_v25 }
 0x20e   : > { %1879 = vmatpush.msrb.mxu3 %v1534_v26 }
 0x210   : > { %1880 = vmatpush.msrb.mxu3 %v1530_v57 }
 0x212   : > { %1881 = vmatpush.msrb.mxu3 %v1526_v27 }
 0x214   : > { %1882 = vmatpush.msrb.mxu3 %v1522_v45 }
 0x216   : > { %1883 = vmatpush.msrb.mxu3 %v1518_v28 }
 0x217   : > { %v1589_v38 = vpop.f32.mrf.mxu0 }
 0x218   : > { %1884 = vmatpush.msrb.mxu3 %v1514_v29  ;;  %v1590_v40 = vadd.f32 %v1589_v38, %v1564_v37 }
 0x21a   : > { %1885 = vmatpush.msrb.mxu3 %v1510_v33 }
 0x21c   : > { %1886 = vmatpush.msrb.mxu3 %v1506_v34  ;;  %v3257_v34 = vmov 32.0  }
 0x21d   : > { %2882 = vrcp.f32 %v3257_v34 }
 0x21e   : > { %1887 = vmatpush.msrb.mxu3 %v1502_v35 }
 0x21f   : > { %1888 = vmatmul.f32.vlgmr.msrb.gmra.mxu3 %v3543_v46  ;;  %v1669_v49 = vpop.f32.mrf.mxu0 }
 0x220   : > { %v1670_v51 = vadd.f32 %v1669_v49, %v1565_v48 }
 0x221   : > { %v1609_v39 = vpop.f32.mrf.mxu1 }
 0x222   : > { %v1610_v42 = vadd.f32 %v1609_v39, %v1590_v40 }
 0x223   : > { %v2883_v35 = vpop.eup %2882 }
 0x224   : > { %v1897_v36 = vmul.f32 32.0, %v2883_v35  ;;  %vm1901_vm2 = vweird.f32 %v2883_v35 }
 0x226   : > { %v1898_v37 = vsub.f32 1.0, %v1897_v36 }
 0x228   : > { %v1899_v38 = vmul.f32 %v2883_v35, %v1898_v37 }
 0x229   : > { %v1689_v50 = vpop.f32.mrf.mxu1 }
 0x22a   : > { %v1690_v30 = vadd.f32 %v1689_v50, %v1670_v51  ;;  %v1900_v40 = vadd.f32 %v2883_v35, %v1899_v38 }
 0x237   : > { %v1749_v59 = vpop.f32.mrf.mxu0 }
 0x238   : > { %v1750_v62 = vadd.f32 %v1749_v59, %v1566_v58 }
 0x241   : > { %v1629_v41 = vpop.f32.mrf.mxu2  ;;  %v1769_v61 = vpop.f32.mrf.mxu1 }
 0x242   : > { %v1630_v43 = vadd.f32 %v1629_v41, %v1610_v42  ;;  %v1770_v0 = vadd.f32 %v1769_v61, %v1750_v62  ;;  %v3626_v41 = vsel %vm1901_vm2, %v2883_v35, %v1900_v40 }
 0x249   : > { %v1709_v52 = vpop.f32.mrf.mxu2 }
 0x24a   : > { %v1710_v55 = vadd.f32 %v1709_v52, %v1690_v30 }
 0x259   : > { %v1829_v6 = vpop.f32.mrf.mxu0 }
 0x25a   : > { %v1830_v8 = vadd.f32 %v1829_v6, %v1567_v5 }
 0x261   : > { %v1789_v63 = vpop.f32.mrf.mxu2 }
 0x262   : > { %v1649_v44 = vpop.f32.mrf.mxu3  ;;  %v1790_v1 = vadd.f32 %v1789_v63, %v1770_v0  ;;  %v1849_v7 = vpop.f32.mrf.mxu1 }
 0x263   : > { %v3552_v47 = vadd.f32 %v1649_v44, %v1630_v43  ;;  %v1850_v10 = vadd.f32 %v1849_v7, %v1830_v8 }
 0x265   : > { %1957 = vrot.lane.b32.xlu0 %v3552_v47, %s3254_s19  ;;  %1926 = vrot.lane.b32.xlu1 %v3552_v47, %s3255_s18  ;;  %v1904_v46 = vmul.f32 %v3552_v47, %v3552_v47  ;;  %v1893_v54 = vsel %vm1892_vm1, %v3552_v47, 0.0 }
 0x267   : > { %1934 = vrot.lane.b32.xlu2 %v1904_v46, %s3255_s18  ;;  %v1905_v18 = vsel %vm1892_vm1, %v1904_v46, 0.0 }
 0x26a   : > { %v1729_v53 = vpop.f32.mrf.mxu3 }
 0x26b   : > { %v3564_v56 = vadd.f32 %v1729_v53, %v1710_v55 }
 0x26d   : > { %1987 = vrot.lane.b32.xlu1 %v3552_v47, %s3256_s24  ;;  %v2021_v60 = vmul.f32 %v3564_v56, %v3564_v56  ;;  %v2017_v20 = vsel %vm1892_vm1, %v3564_v56, 0.0 }
 0x26f   : > { %1964 = vrot.lane.b32.xlu2 %v1904_v46, %s3254_s19  ;;  %v2022_v17 = vsel %vm1892_vm1, %v2021_v60, 0.0 }
 0x275   : > { %2104 = vrot.lane.b32.xlu1 %v3564_v56, %s3256_s24 }
 0x277   : > { %2043 = vrot.lane.b32.xlu2 %v3564_v56, %s3255_s18 }
 0x27d   : > { %2051 = vrot.lane.b32.xlu1 %v2021_v60, %s3255_s18 }
 0x27f   : > { %2074 = vrot.lane.b32.xlu2 %v3564_v56, %s3254_s19 }
 0x281   : > { %v1869_v9 = vpop.f32.mrf.mxu2 }
 0x282   : > { %v1809_v2 = vpop.f32.mrf.mxu3  ;;  %v1870_v11 = vadd.f32 %v1869_v9, %v1850_v10 }
 0x283   : > { %v3575_v3 = vadd.f32 %v1809_v2, %v1790_v1 }
 0x285   : > { %2160 = vrot.lane.b32.xlu1 %v3575_v3, %s3255_s18  ;;  %v2138_v4 = vmul.f32 %v3575_v3, %v3575_v3  ;;  %v2134_v27 = vsel %vm1892_vm1, %v3575_v3, 0.0 }
 0x287   : > { %2081 = vrot.lane.b32.xlu2 %v2021_v60, %s3254_s19  ;;  %v2139_v25 = vsel %vm1892_vm1, %v2138_v4, 0.0 }
 0x28d   : > { %2221 = vrot.lane.b32.xlu1 %v3575_v3, %s3256_s24 }
 0x28f   : > { %1894 = vadd.xlane.f32.xlu0 %v1893_v54 }
 0x295   : > { %2198 = vrot.lane.b32.xlu1 %v2138_v4, %s3254_s19 }
 0x2a2   : > { %v1889_v12 = vpop.f32.mrf.mxu3 }
 0x2a3   : > { %v3587_v13 = vadd.f32 %v1889_v12, %v1870_v11  ;;  %1994 = vrot.lane.b32.xlu0 %v1904_v46, %s3256_s24 }
 0x2a5   : > { %v3592_v14 = vmul.f32 %v3587_v13, %v3587_v13  ;;  %v2251_v10 = vsel %vm1892_vm1, %v3587_v13, 0.0 }
 0x2a7   : > { %2285 = vrot.lane.b32.xlu1 %v3592_v14, %s3255_s18  ;;  %v2256_v50 = vsel %vm1892_vm1, %v3592_v14, 0.0 }
 0x2af   : > { %2345 = vrot.lane.b32.xlu1 %v3592_v14, %s3256_s24 }
 0x2b0   : > { %2023 = vadd.xlane.f32.xlu2 %v2022_v17 }
 0x2c1   : > { %v3602_v19 = vpop.permute.xlu2 %1934 }
 0x2c2   : > { %v1937_v5 = vsel %vm1892_vm1, %v3602_v19, 0.0 }
 0x2c8   : > { %2191 = vrot.lane.b32.xlu2 %v3575_v3, %s3254_s19 }
 0x2c9   : > { %v1965_v23 = vpop.permute.xlu2 %1964 }
 0x2ca   : > { %v1967_v24 = vsel %vm1892_vm1, %v1965_v23, 0.0 }
 0x2cd   : > { %1906 = vadd.xlane.f32.xlu0 %v1905_v18 }
 0x2d1   : > { %v2044_v29 = vpop.permute.xlu2 %2043 }
 0x2d2   : > { %v2046_v33 = vsel %vm1892_vm1, %v2044_v29, 0.0 }
 0x2d5   : > { %2018 = vadd.xlane.f32.xlu0 %v2017_v20 }
 0x2d7   : > { %v1927_v21 = vpop.permute.xlu1 %1926  ;;  %v3610_v26 = vpop.permute.xlu0 %1957 }
 0x2d8   : > { %v1929_v22 = vsel %vm1892_vm1, %v1927_v21, 0.0 }
 0x2d9   : > { %1930 = vadd.xlane.f32.xlu1 %v1929_v22  ;;  %v3624_v39 = vpop.permute.xlu2 %2074 }
 0x2df   : > { %v1988_v42 = vpop.permute.xlu1 %1987 }
 0x2e1   : > { %1968 = vadd.xlane.f32.xlu1 %v1967_v24  ;;  %v3629_v44 = vpop.permute.xlu2 %2081 }
 0x2e7   : > { %v2105_v30 = vpop.permute.xlu1 %2104 }
 0x2e8   : > { %v2107_v17 = vsel %vm1892_vm1, %v2105_v30, 0.0 }
 0x2e9   : > { %2111 = vrot.lane.b32.xlu0 %v2021_v60, %s3256_s24  ;;  %v1990_v60 = vsel %vm1892_vm1, %v1988_v42, 0.0 }
 0x2ef   : > { %v3637_v2 = vpop.permute.xlu1 %2051 }
 0x2f1   : > { %2140 = vadd.xlane.f32.xlu2 %v2139_v25 }
 0x2f7   : > { %v2161_v18 = vpop.permute.xlu1 %2160 }
 0x2ff   : > { %v2222_v29 = vpop.permute.xlu1 %2221 }
 0x300   : > { %v2224_v35 = vsel %vm1892_vm1, %v2222_v29, 0.0 }
 0x302   : > { %v1895_v57 = vpop.xlane.xlu0 %1894 }
 0x303   : > { %v1903_v43 = vmul.f32 %v3626_v41, %v1895_v57 }
 0x305   : > { %v1909_v48 = vmul.f32 %v1903_v43, %v1903_v43  ;;  %v1911_v12 = vsub.f32 %v3552_v47, %v1903_v43 }
 0x307   : > { %v2199_v36 = vpop.permute.xlu1 %2198 }
 0x308   : > { %v2201_v37 = vsel %vm1892_vm1, %v2199_v36, 0.0 }
 0x309   : > { %2277 = vrot.lane.b32.xlu2 %v3587_v13, %s3255_s18 }
 0x311   : > { %2308 = vrot.lane.b32.xlu2 %v3587_v13, %s3254_s19 }
 0x313   : > { %2135 = vadd.xlane.f32.xlu0 %v2134_v27  ;;  %v2163_v27 = vsel %vm1892_vm1, %v2161_v18, 0.0 }
 0x315   : > { %v1995_v45 = vpop.permute.xlu0 %1994 }
 0x316   : > { %v1997_v28 = vsel %vm1892_vm1, %v1995_v45, 0.0 }
 0x317   : > { %1998 = vadd.xlane.f32.xlu1 %v1997_v28 }
 0x319   : > { %2338 = vrot.lane.b32.xlu2 %v3587_v13, %s3256_s24 }
 0x31f   : > { %2047 = vadd.xlane.f32.xlu1 %v2046_v33 }
 0x323   : > { %v2024_v55 = vpop.xlane.xlu2 %2023 }
 0x324   : > { %v2025_v61 = vmul.f32 %v2024_v55, %v3626_v41 }
 0x327   : > { %2168 = vrot.lane.b32.xlu0 %v2138_v4, %s3255_s18 }
 0x32b   : > { %v2192_v38 = vpop.permute.xlu2 %2191 }
 0x32f   : > { %2228 = vrot.lane.b32.xlu0 %v2138_v4, %s3256_s24 }
 0x340   : > { %v1907_v46 = vpop.xlane.xlu0 %1906 }
 0x341   : > { %v1908_v49 = vmul.f32 %v1907_v46, %v3626_v41 }
 0x342   : > { %2257 = vadd.xlane.f32.xlu2 %v2256_v50 }
 0x343   : > { %v1910_v51 = vsub.f32 %v1908_v49, %v1909_v48 }
 0x345   : > { %v1912_v52 = vmax.f32 %v1910_v51, 0.0 }
 0x347   : > { %v1913_v53 = vadd.f32 1e-05, %v1912_v52  ;;  %v1960_v52 = vsel %vm1892_vm1, %v3610_v26, 0.0 }
 0x348   : > { %v2019_v58 = vpop.xlane.xlu0 %2018 }
 0x349   : > { %2884 = vrsqrt.f32 %v1913_v53  ;;  %v2020_v59 = vmul.f32 %v2019_v58, %v3626_v41  ;;  %vm1920_vm4 = vweird.f32 %v1913_v53 }
 0x34a   : > { %1991 = vadd.xlane.f32.xlu2 %v1990_v60 }
 0x34b   : > { %v2026_v62 = vmul.f32 %v2020_v59, %v2020_v59  ;;  %v2028_v28 = vsub.f32 %v3564_v56, %v2020_v59 }
 0x34d   : > { %v2027_v63 = vsub.f32 %v2025_v61, %v2026_v62  ;;  %v2077_v62 = vsel %vm1892_vm1, %v3624_v39, 0.0 }
 0x34f   : > { %v2885_v0 = vpop.eup %2884  ;;  %v2029_v1 = vmax.f32 %v2027_v63, 0.0 }
 0x350   : > { %v1915_v54 = vmul.f32 %v2885_v0, %v1913_v53  ;;  %vm1921_vm3 = vweird.f32 %v2885_v0 }
 0x351   : > { %v2030_v4 = vadd.f32 1e-05, %v2029_v1  ;;  %vm1922_vm5 = vmor %vm1920_vm4, %vm1921_vm3 }
 0x352   : > { %v1916_v6 = vmul.f32 %v2885_v0, %v1915_v54  ;;  %1938 = vadd.xlane.f32.xlu2 %v1937_v5 }
 0x353   : > { %2886 = vrsqrt.f32 %v2030_v4  ;;  %vm2037_vm7 = vweird.f32 %v2030_v4 }
 0x354   : > { %v1917_v7 = vmul.f32 0.5, %v1916_v6  ;;  %v2054_v6 = vsel %vm1892_vm1, %v3637_v2, 0.0 }
 0x356   : > { %v1918_v8 = vsub.f32 1.5, %v1917_v7  ;;  %v2084_v7 = vsel %vm1892_vm1, %v3629_v44, 0.0 }
 0x358   : > { %v1919_v9 = vmul.f32 %v2885_v0, %v1918_v8 }
 0x359   : > { %v2887_v11 = vpop.eup %2886  ;;  %2252 = vadd.xlane.f32.xlu0 %v2251_v10  ;;  %v2194_v10 = vsel %vm1892_vm1, %v2192_v38, 0.0 }
 0x35a   : > { %v1923_v19 = vsel %vm1922_vm5, %v2885_v0, %v1919_v9  ;;  %v2032_v20 = vmul.f32 %v2887_v11, %v2030_v4  ;;  %2108 = vadd.xlane.f32.xlu2 %v2107_v17  ;;  %vm2038_vm6 = vweird.f32 %v2887_v11 }
 0x35b   : > { %v3645_v21 = vmul.f32 %v1923_v19, %v1911_v12  ;;  %v2112_v22 = vpop.permute.xlu0 %2111  ;;  %vm2039_vm8 = vmor %vm2037_vm7, %vm2038_vm6  ;;  %v2286_v12 = vpop.permute.xlu1 %2285 }
 0x35c   : > { %v2033_v23 = vmul.f32 %v2887_v11, %v2032_v20  ;;  %v2114_v24 = vsel %vm1892_vm1, %v2112_v22, 0.0  ;;  %v2288_v2 = vsel %vm1892_vm1, %v2286_v12, 0.0  ;;  %v2422_v12 = vld [vmem:[#allocation14 + $0x30] sm:$0xff] }
 0x35d   : > { %2115 = vadd.xlane.f32.xlu1 %v2114_v24 }
 0x35e   : > { %v2034_v25 = vmul.f32 0.5, %v2033_v23 }
 0x360   : > { %v2035_v57 = vsub.f32 1.5, %v2034_v25 }
 0x362   : > { %v2036_v45 = vmul.f32 %v2887_v11, %v2035_v57  ;;  %2164 = vadd.xlane.f32.xlu2 %v2163_v27 }
 0x363   : > { %v2346_v17 = vpop.permute.xlu1 %2345 }
 0x364   : > { %v2040_v33 = vsel %vm2039_vm8, %v2887_v11, %v2036_v45  ;;  %v2141_v40 = vpop.xlane.xlu2 %2140  ;;  %v2348_v20 = vsel %vm1892_vm1, %v2346_v17, 0.0 }
 0x365   : > { %v3650_v34 = vmul.f32 %v2040_v33, %v2028_v28  ;;  %v2142_v46 = vmul.f32 %v2141_v40, %v3626_v41 }
 0x36a   : > { %2225 = vadd.xlane.f32.xlu2 %v2224_v35 }
 0x36b   : > { %v1931_v35 = vpop.xlane.xlu1 %1930 }
 0x36c   : > { %v2278_v59 = vpop.permute.xlu2 %2277 }
 0x36d   : > { %2315 = vrot.lane.b32.xlu0 %v3592_v14, %s3254_s19  ;;  %v2280_v39 = vsel %vm1892_vm1, %v2278_v59, 0.0 }
 0x372   : > { %2202 = vadd.xlane.f32.xlu2 %v2201_v37 }
 0x374   : > { %v2309_v5 = vpop.permute.xlu2 %2308 }
 0x375   : > { %v2311_v11 = vsel %vm1892_vm1, %v2309_v5, 0.0  ;;  %v2426_v5 = vld [vmem:[#allocation14 + $0x50] sm:$0xff] }
 0x37c   : > { %v2339_v8 = vpop.permute.xlu2 %2338 }
 0x37d   : > { %v2341_v9 = vsel %vm1892_vm1, %v2339_v8, 0.0 }
 0x386   : > { %v2136_v42 = vpop.xlane.xlu0 %2135 }
 0x387   : > { %v2137_v43 = vmul.f32 %v2136_v42, %v3626_v41 }
 0x389   : > { %v2143_v48 = vmul.f32 %v2137_v43, %v2137_v43  ;;  %v2145_v26 = vsub.f32 %v3575_v3, %v2137_v43 }
 0x38b   : > { %v2144_v49 = vsub.f32 %v2142_v46, %v2143_v48  ;;  %v1969_v48 = vpop.xlane.xlu1 %1968 }
 0x38d   : > { %v2146_v50 = vmax.f32 %v2144_v49, 0.0 }
 0x38f   : > { %v2147_v51 = vadd.f32 1e-05, %v2146_v50  ;;  %v3684_v50 = vmul.f32 %v1931_v35, %v3626_v41 }
 0x391   : > { %2888 = vrsqrt.f32 %v2147_v51  ;;  %vm2154_vm10 = vweird.f32 %v2147_v51 }
 0x397   : > { %v2889_v14 = vpop.eup %2888  ;;  %1961 = vadd.xlane.f32.xlu0 %v1960_v52  ;;  %v1999_v52 = vpop.xlane.xlu1 %1998 }
 0x398   : > { %v2149_v30 = vmul.f32 %v2889_v14, %v2147_v51  ;;  %vm2155_vm9 = vweird.f32 %v2889_v14 }
 0x399   : > { %v2169_v53 = vpop.permute.xlu0 %2168  ;;  %vm2156_vm11 = vmor %vm2154_vm10, %vm2155_vm9  ;;  %vm2370_vm10 = vcmask 785408  }
 0x39a   : > { %v2150_v55 = vmul.f32 %v2889_v14, %v2149_v30  ;;  %v2171_v58 = vsel %vm1892_vm1, %v2169_v53, 0.0  ;;  %v2431_v30 = vld [vmem:[#allocation14 + $0x78] sm:$0xff]  ;;  %v1941_v53 = vmul.f32 %v3684_v50, %v3684_v50 }
 0x39b   : > { %2172 = vadd.xlane.f32.xlu1 %v2171_v58  ;;  %2480 = vmatpush.msra.mxu0 %v2431_v30  ;;  %v2430_v58 = vld [vmem:[#allocation14 + $0x70] sm:$0xff] }
 0x39c   : > { %v2151_v60 = vmul.f32 0.5, %v2150_v55 }
 0x39d   : > { %2481 = vmatpush.msra.mxu0 %v2430_v58  ;;  %v2443_v58 = vld [vmem:[#allocation14 + $0xd8] sm:$0xff] }
 0x39e   : > { %v2152_v61 = vsub.f32 1.5, %v2151_v60  ;;  %v2000_v60 = vmul.f32 %v1999_v52, %v3626_v41 }
 0x39f   : > { %2078 = vadd.xlane.f32.xlu0 %v2077_v62 }
 0x3a0   : > { %v2153_v63 = vmul.f32 %v2889_v14, %v2152_v61  ;;  %v2429_v61 = vld [vmem:[#allocation14 + $0x68] sm:$0xff] }
 0x3a1   : > { %v2229_v0 = vpop.permute.xlu0 %2228  ;;  %2482 = vmatpush.msra.mxu0 %v2429_v61 }
 0x3a2   : > { %v2157_v1 = vsel %vm2156_vm11, %v2889_v14, %v2153_v63  ;;  %v2231_v54 = vsel %vm1892_vm1, %v2229_v0, 0.0  ;;  %v2428_v63 = vld [vmem:[#allocation14 + $0x60] sm:$0xff]  ;;  %v2427_v0 = vld [vmem:[#allocation14 + $0x58] sm:$0xff] }
 0x3a3   : > { %v3665_v4 = vmul.f32 %v2157_v1, %v2145_v26  ;;  %2232 = vadd.xlane.f32.xlu1 %v2231_v54  ;;  %2483 = vmatpush.msra.mxu0 %v2428_v63  ;;  %v3695_v1 = vpop.xlane.xlu1 %2047  ;;  %v2442_v63 = vld [vmem:[#allocation14 + $0xd0] sm:$0xff] }
 0x3a5   : > { %2484 = vmatpush.msra.mxu0 %v2427_v0 }
 0x3a7   : > { %2055 = vadd.xlane.f32.xlu0 %v2054_v6  ;;  %2485 = vmatpush.msra.mxu0 %v2426_v5 }
 0x3ab   : > { %2281 = vadd.xlane.f32.xlu1 %v2280_v39 }
 0x3af   : > { %2085 = vadd.xlane.f32.xlu0 %v2084_v7  ;;  %v2425_v7 = vld [vmem:[#allocation14 + $0x48] sm:$0xff] }
 0x3b0   : > { %2486 = vmatpush.msra.mxu0 %v2425_v7 }
 0x3b3   : > { %2342 = vadd.xlane.f32.xlu1 %v2341_v9  ;;  %v2424_v9 = vld [vmem:[#allocation14 + $0x40] sm:$0xff] }
 0x3b4   : > { %2487 = vmatpush.msra.mxu0 %v2424_v9  ;;  %v2441_v9 = vld [vmem:[#allocation14 + $0xc8] sm:$0xff] }
 0x3b5   : > { %v2258_v18 = vpop.xlane.xlu2 %2257 }
 0x3b6   : > { %v2259_v22 = vmul.f32 %v2258_v18, %v3626_v41 }
 0x3b7   : > { %2195 = vadd.xlane.f32.xlu0 %v2194_v10  ;;  %v2423_v10 = vld [vmem:[#allocation14 + $0x38] sm:$0xff] }
 0x3b8   : > { %2488 = vmatpush.msra.mxu0 %v2423_v10  ;;  %v2462_v10 = vld [vmem:[#allocation14 + $0x170] sm:$0xff] }
 0x3ba   : > { %2489 = vmatpush.msra.mxu0 %v2422_v12 }
 0x3bd   : > { %v1992_v40 = vpop.xlane.xlu2 %1991 }
 0x3be   : > { %v3687_v51 = vmul.f32 %v1992_v40, %v3626_v41 }
 0x3bf   : > { %2312 = vadd.xlane.f32.xlu0 %v2311_v11 }
 0x3c0   : > { %v2001_v55 = vmul.f32 %v3687_v51, %v3687_v51 }
 0x3c2   : > { %v2002_v62 = vsub.f32 %v2000_v60, %v2001_v55  ;;  %v2416_v55 = vld [vmem:[#allocation14] sm:$0xff] }
 0x3c4   : > { %v2004_v54 = vmax.f32 %v2002_v62, 0.0 }
 0x3c5   : > { %v1939_v49 = vpop.xlane.xlu2 %1938 }
 0x3c6   : > { %v1940_v14 = vmul.f32 %v1939_v49, %v3626_v41  ;;  %v3699_v8 = vadd.f32 1e-05, %v2004_v54  ;;  %v2444_v49 = vld [vmem:[#allocation14 + $0xe0] sm:$0xff] }
 0x3c7   : > { %2289 = vadd.xlane.f32.xlu0 %v2288_v2  ;;  %v2421_v2 = vld [vmem:[#allocation14 + $0x28] sm:$0xff] }
 0x3c8   : > { %v1942_v59 = vsub.f32 %v1940_v14, %v1941_v53  ;;  %2490 = vmatpush.msra.mxu0 %v2421_v2  ;;  %vm2012_vm6 = vweird.f32 %v3699_v8 }
 0x3ca   : > { %v1944_v26 = vmax.f32 %v1942_v59, 0.0 }
 0x3cc   : > { %v2253_v19 = vpop.xlane.xlu0 %2252  ;;  %v3697_v6 = vadd.f32 1e-05, %v1944_v26  ;;  %v2463_v26 = vld [vmem:[#allocation14 + $0x178] sm:$0xff] }
 0x3cd   : > { %v2254_v44 = vmul.f32 %v2253_v19, %v3626_v41  ;;  %v2109_v39 = vpop.xlane.xlu2 %2108  ;;  %2520 = vmatpush.msra.mxu2 %v2463_v26  ;;  %v2436_v26 = vld [vmem:[#allocation14 + $0xa0] sm:$0xff] }
 0x3ce   : > { %v3706_v18 = vmul.f32 %v2109_v39, %v3626_v41  ;;  %v3736_v39 = vmul.f32 %v3695_v1, %v3626_v41  ;;  %vm1952_vm2 = vweird.f32 %v3697_v6 }
 0x3cf   : > { %v2260_v23 = vmul.f32 %v2254_v44, %v2254_v44  ;;  %2349 = vadd.xlane.f32.xlu0 %v2348_v20  ;;  %v2262_v42 = vsub.f32 %v3587_v13, %v2254_v44  ;;  %2521 = vmatpush.msra.mxu2 %v2462_v10 }
 0x3d0   : > { %v2116_v11 = vpop.xlane.xlu1 %2115 }
 0x3d1   : > { %v2261_v24 = vsub.f32 %v2259_v22, %v2260_v23  ;;  %v2420_v22 = vld [vmem:[#allocation14 + $0x20] sm:$0xff]  ;;  %v2447_v23 = vld [vmem:[#allocation14 + $0xf8] sm:$0xff] }
 0x3d2   : > { %2491 = vmatpush.msra.mxu0 %v2420_v22  ;;  %2500 = vmatpush.msra.mxu1 %v2447_v23  ;;  %v2461_v22 = vld [vmem:[#allocation14 + $0x168] sm:$0xff] }
 0x3d3   : > { %v2263_v25 = vmax.f32 %v2261_v24, 0.0  ;;  %2522 = vmatpush.msra.mxu2 %v2461_v22 }
 0x3d5   : > { %v2264_v57 = vadd.f32 1e-05, %v2263_v25  ;;  %v2165_v19 = vpop.xlane.xlu2 %2164  ;;  %v1970_v25 = vmul.f32 %v1969_v48, %v3626_v41  ;;  %v2417_v48 = vld [vmem:[#allocation14 + $0x8] sm:$0xff] }
 0x3d6   : > { %v3725_v14 = vmul.f32 %v2165_v19, %v3626_v41 }
 0x3d7   : > { %2890 = vrsqrt.f32 %v2264_v57  ;;  %vm2271_vm13 = vweird.f32 %v2264_v57 }
 0x3d8   : > { %2892 = vrsqrt.f32 %v3697_v6  ;;  %v2175_v54 = vmul.f32 %v3725_v14, %v3725_v14 }
 0x3d9   : > { %2894 = vrsqrt.f32 %v3699_v8 }
 0x3dd   : > { %v2891_v27 = vpop.eup %2890  ;;  %v2226_v60 = vpop.xlane.xlu2 %2225 }
 0x3de   : > { %v2266_v45 = vmul.f32 %v2891_v27, %v2264_v57  ;;  %vm2272_vm12 = vweird.f32 %v2891_v27  ;;  %v3703_v17 = vpop.eup %2892  ;;  %v3739_v7 = vmul.f32 %v2226_v60, %v3626_v41 }
 0x3df   : > { %v2316_v28 = vpop.permute.xlu0 %2315  ;;  %vm2273_vm14 = vmor %vm2271_vm13, %vm2272_vm12  ;;  %v3711_v24 = vpop.eup %2894  ;;  %v1947_v57 = vmul.f32 %v3703_v17, %v3697_v6  ;;  %vm1953_vm15 = vweird.f32 %v3703_v17 }
 0x3e0   : > { %v2267_v29 = vmul.f32 %v2891_v27, %v2266_v45  ;;  %v2318_v33 = vsel %vm1892_vm1, %v2316_v28, 0.0  ;;  %v2419_v45 = vld [vmem:[#allocation14 + $0x18] sm:$0xff]  ;;  %v2446_v28 = vld [vmem:[#allocation14 + $0xf0] sm:$0xff]  ;;  %v2007_v40 = vmul.f32 %v3711_v24, %v3699_v8  ;;  %vm2013_vm3 = vweird.f32 %v3711_v24  ;;  %vm3764_vm4 = vmor %vm1952_vm2, %vm1953_vm15 }
 0x3e1   : > { %2319 = vadd.xlane.f32.xlu2 %v2318_v33  ;;  %v2117_v33 = vmul.f32 %v2116_v11, %v3626_v41  ;;  %2492 = vmatpush.msra.mxu0 %v2419_v45  ;;  %vm3788_vm7 = vmor %vm2012_vm6, %vm2013_vm3 }
 0x3e2   : > { %v2268_v36 = vmul.f32 0.5, %v2267_v29  ;;  %v2118_v29 = vmul.f32 %v3706_v18, %v3706_v18  ;;  %2501 = vmatpush.msra.mxu1 %v2446_v28  ;;  %v2008_v59 = vmul.f32 %v3711_v24, %v2007_v40  ;;  %v2439_v28 = vld [vmem:[#allocation14 + $0xb8] sm:$0xff] }
 0x3e4   : > { %v2269_v37 = vsub.f32 1.5, %v2268_v36  ;;  %v2119_v52 = vsub.f32 %v2117_v33, %v2118_v29  ;;  %v2009_v11 = vmul.f32 0.5, %v2008_v59  ;;  %v2460_v29 = vld [vmem:[#allocation14 + $0x160] sm:$0xff] }
 0x3e5   : > { %2523 = vmatpush.msra.mxu2 %v2460_v29 }
 0x3e6   : > { %v2270_v38 = vmul.f32 %v2891_v27, %v2269_v37  ;;  %v2418_v37 = vld [vmem:[#allocation14 + $0x10] sm:$0xff]  ;;  %v2121_v0 = vmax.f32 %v2119_v52, 0.0  ;;  %v2010_v33 = vsub.f32 1.5, %v2009_v11  ;;  %v2435_v11 = vld [vmem:[#allocation14 + $0x98] sm:$0xff] }
 0x3e7   : > { %2493 = vmatpush.msra.mxu0 %v2418_v37 }
 0x3e8   : > { %v2274_v43 = vsel %vm2273_vm14, %v2891_v27, %v2270_v38  ;;  %v2445_v38 = vld [vmem:[#allocation14 + $0xe8] sm:$0xff]  ;;  %v3742_v23 = vadd.f32 1e-05, %v2121_v0  ;;  %v2011_v6 = vmul.f32 %v3711_v24, %v2010_v33 }
 0x3e9   : > { %v3681_v46 = vmul.f32 %v2274_v43, %v2262_v42  ;;  %2502 = vmatpush.msra.mxu1 %v2445_v38  ;;  %v1948_v42 = vmul.f32 %v3703_v17, %v1947_v57  ;;  %2494 = vmatpush.msra.mxu0 %v2417_v48  ;;  %v2058_v57 = vmul.f32 %v3736_v39, %v3736_v39  ;;  %v2457_v0 = vld [vmem:[#allocation14 + $0x148] sm:$0xff] }
 0x3ea   : > { %v2015_v22 = vsel %vm3788_vm7, %v3711_v24, %v2011_v6  ;;  %vm2129_vm2 = vweird.f32 %v3742_v23 }
 0x3eb   : > { %2503 = vmatpush.msra.mxu1 %v2444_v49  ;;  %2495 = vmatpush.msra.mxu0 %v2416_v55  ;;  %v1949_v62 = vmul.f32 0.5, %v1948_v42  ;;  %v2438_v42 = vld [vmem:[#allocation14 + $0xb0] sm:$0xff]  ;;  %v2437_v55 = vld [vmem:[#allocation14 + $0xa8] sm:$0xff] }
 0x3ed   : > { %2504 = vmatpush.msra.mxu1 %v2443_v58  ;;  %v1950_v2 = vsub.f32 1.5, %v1949_v62  ;;  %v2458_v58 = vld [vmem:[#allocation14 + $0x150] sm:$0xff] }
 0x3ef   : > { %2505 = vmatpush.msra.mxu1 %v2442_v63  ;;  %v1951_v37 = vmul.f32 %v3703_v17, %v1950_v2 }
 0x3f1   : > { %2506 = vmatpush.msra.mxu1 %v2441_v9 }
 0x40a   : > { %v1962_v44 = vpop.xlane.xlu0 %1961 }
 0x40b   : > { %v3709_v20 = vmul.f32 %v1962_v44, %v3626_v41  ;;  %v2440_v44 = vld [vmem:[#allocation14 + $0xc0] sm:$0xff] }
 0x40c   : > { %2507 = vmatpush.msra.mxu1 %v2440_v44  ;;  %v3795_v44 = vld [vmem:[#allocation7 + $0x3] ss:$8 sm:$0xf] }
 0x40d   : > { %v1971_v27 = vmul.f32 %v3709_v20, %v3709_v20 }
 0x40e   : > { %v2173_v35 = vpop.xlane.xlu1 %2172  ;;  %2508 = vmatpush.msra.mxu1 %v2439_v28  ;;  %v2003_v28 = vsub.f32 %v3552_v47, %v3687_v51 }
 0x40f   : > { %v1972_v36 = vsub.f32 %v1970_v25, %v1971_v27  ;;  %v2174_v61 = vmul.f32 %v2173_v35, %v3626_v41  ;;  %v2235_v27 = vmul.f32 %v3739_v7, %v3739_v7 }
 0x410   : > { %2509 = vmatpush.msra.mxu1 %v2438_v42 }
 0x411   : > { %v1974_v43 = vmax.f32 %v1972_v36, 0.0  ;;  %v2176_v12 = vsub.f32 %v2174_v61, %v2175_v54  ;;  %v1943_v54 = vsub.f32 %v3552_v47, %v3684_v50 }
 0x412   : > { %v2079_v30 = vpop.xlane.xlu0 %2078  ;;  %2510 = vmatpush.msra.mxu1 %v2437_v55 }
 0x413   : > { %v3727_v53 = vadd.f32 1e-05, %v1974_v43  ;;  %v2178_v36 = vmax.f32 %v2176_v12, 0.0  ;;  %v2459_v43 = vld [vmem:[#allocation14 + $0x158] sm:$0xff]  ;;  %v3759_v49 = vmul.f32 %v2079_v30, %v3626_v41  ;;  %v1955_v30 = vsel %vm3764_vm4, %v3703_v17, %v1951_v37  ;;  %v2456_v12 = vld [vmem:[#allocation14 + $0x140] sm:$0xff] }
 0x414   : > { %2524 = vmatpush.msra.mxu2 %v2459_v43  ;;  %2511 = vmatpush.msra.mxu1 %v2436_v26  ;;  %v2016_v37 = vmul.f32 %v2015_v22, %v2003_v28  ;;  %v2432_v43 = vld [vmem:[#allocation14 + $0x80] sm:$0xff] }
 0x415   : > { %2896 = vrsqrt.f32 %v3727_v53  ;;  %v3768_v61 = vadd.f32 1e-05, %v2178_v36  ;;  %v2088_v10 = vmul.f32 %v3759_v49, %v3759_v49  ;;  %vm1982_vm8 = vweird.f32 %v3727_v53  ;;  %v2454_v36 = vld [vmem:[#allocation14 + $0x130] sm:$0xff] }
 0x416   : > { %v2233_v5 = vpop.xlane.xlu1 %2232  ;;  %2898 = vrsqrt.f32 %v3742_v23  ;;  %2525 = vmatpush.msra.mxu2 %v2458_v58  ;;  %2512 = vmatpush.msra.mxu1 %v2435_v11 }
 0x417   : > { %v2234_v19 = vmul.f32 %v2233_v5, %v3626_v41  ;;  %vm2186_vm7 = vweird.f32 %v3768_v61 }
 0x418   : > { %2526 = vmatpush.msra.mxu2 %v2457_v0 }
 0x419   : > { %v2236_v38 = vsub.f32 %v2234_v19, %v2235_v27  ;;  %v1956_v19 = vmul.f32 %v1955_v30, %v1943_v54  ;;  %v2452_v30 = vld [vmem:[#allocation14 + $0x120] sm:$0xff] }
 0x41a   : > { %v2056_v25 = vpop.xlane.xlu0 %2055  ;;  %2527 = vmatpush.msra.mxu2 %v2456_v12 }
 0x41b   : > { %v3744_v1 = vpop.eup %2896  ;;  %v2057_v45 = vmul.f32 %v2056_v25, %v3626_v41  ;;  %v2238_v62 = vmax.f32 %v2236_v38, 0.0  ;;  %v1973_v25 = vsub.f32 %v3552_v47, %v3709_v20  ;;  %v2368_v38 = vsel %vm1892_vm1, %v3645_v21, %v1956_v19  ;;  %v2450_v19 = vld [vmem:[#allocation14 + $0x110] sm:$0xff] }
 0x41c   : > { %v1977_v35 = vmul.f32 %v3744_v1, %v3727_v53  ;;  %vm1983_vm5 = vweird.f32 %v3744_v1  ;;  %v3784_v2 = vpop.eup %2898  ;;  %v2434_v53 = vld [vmem:[#allocation14 + $0x90] sm:$0xff]  ;;  %v2382_v47 = vperm.slane %v3795_v44, 0 }
 0x41d   : > { %v2059_v40 = vsub.f32 %v2057_v45, %v2058_v57  ;;  %vm1984_vm9 = vmor %vm1982_vm8, %vm1983_vm5  ;;  %v3804_v57 = vadd.f32 1e-05, %v2238_v62  ;;  %v2455_v45 = vld [vmem:[#allocation14 + $0x138] sm:$0xff]  ;;  %2513 = vmatpush.msra.mxu1 %v2434_v53  ;;  %v2124_v24 = vmul.f32 %v3784_v2, %v3742_v23  ;;  %vm2130_vm14 = vweird.f32 %v3784_v2 }
 0x41e   : > { %v1978_v48 = vmul.f32 %v3744_v1, %v1977_v35  ;;  %2528 = vmatpush.msra.mxu2 %v2455_v45  ;;  %v2433_v35 = vld [vmem:[#allocation14 + $0x88] sm:$0xff]  ;;  %vm3861_vm3 = vmor %vm2129_vm2, %vm2130_vm14 }
 0x41f   : > { %v2061_v52 = vmax.f32 %v2059_v40, 0.0  ;;  %v3813_v40 = vld [vmem:[#allocation7 + $0x4] ss:$8 sm:$0xf]  ;;  %2514 = vmatpush.msra.mxu1 %v2433_v35  ;;  %v2125_v59 = vmul.f32 %v3784_v2, %v2124_v24 }
 0x420   : > { %v1979_v60 = vmul.f32 0.5, %v1978_v48  ;;  %2529 = vmatpush.msra.mxu2 %v2454_v36  ;;  %v2453_v48 = vld [vmem:[#allocation14 + $0x128] sm:$0xff]  ;;  %v2395_v6 = vperm.slane %v3813_v40, 0 }
 0x421   : > { %v3774_v63 = vadd.f32 1e-05, %v2061_v52  ;;  %2515 = vmatpush.msra.mxu1 %v2432_v43  ;;  %v2126_v12 = vmul.f32 0.5, %v2125_v59  ;;  %v2449_v45 = vld [vmem:[#allocation14 + $0x108] sm:$0xff] }
 0x422   : > { %v1980_v5 = vsub.f32 1.5, %v1979_v60  ;;  %v2086_v9 = vpop.xlane.xlu0 %2085  ;;  %2530 = vmatpush.msra.mxu2 %v2453_v48  ;;  %v2203_v60 = vpop.xlane.xlu2 %2202 }
 0x423   : > { %2900 = vrsqrt.f32 %v3774_v63  ;;  %v2087_v17 = vmul.f32 %v2086_v9, %v3626_v41  ;;  %v2204_v9 = vmul.f32 %v2203_v60, %v3626_v41  ;;  %v2127_v35 = vsub.f32 1.5, %v2126_v12 }
 0x424   : > { %v1981_v8 = vmul.f32 %v3744_v1, %v1980_v5  ;;  %2902 = vrsqrt.f32 %v3768_v61  ;;  %2531 = vmatpush.msra.mxu2 %v2452_v30  ;;  %v2451_v5 = vld [vmem:[#allocation14 + $0x118] sm:$0xff]  ;;  %vm2069_vm12 = vweird.f32 %v3774_v63 }
 0x425   : > { %v2089_v27 = vsub.f32 %v2087_v17, %v2088_v10  ;;  %2904 = vrsqrt.f32 %v3804_v57 }
 0x426   : > { %v1985_v29 = vsel %vm1984_vm9, %v3744_v1, %v1981_v8  ;;  %2532 = vmatpush.msra.mxu2 %v2451_v5  ;;  %v2120_v5 = vsub.f32 %v3564_v56, %v3706_v18 }
 0x427   : > { %v1986_v20 = vmul.f32 %v1985_v29, %v1973_v25  ;;  %v2091_v33 = vmax.f32 %v2089_v27, 0.0  ;;  %v2282_v29 = vpop.xlane.xlu1 %2281 }
 0x428   : > { %2533 = vmatpush.msra.mxu2 %v2450_v19  ;;  %v3872_v23 = vmul.f32 %v2282_v29, %v3626_v41 }
 0x429   : > { %v3816_v51 = vpop.eup %2900  ;;  %v2369_v1 = vsel %vm526_vm0, %v2368_v38, %v1986_v20  ;;  %v3820_v42 = vadd.f32 1e-05, %v2091_v33  ;;  %v2448_v38 = vld [vmem:[#allocation14 + $0x100] sm:$0xff] }
 0x42a   : > { %v3822_v52 = vpop.eup %2902  ;;  %v2371_v21 = vsel %vm2370_vm10, %v2369_v1, %v2016_v37  ;;  %v2064_v55 = vmul.f32 %v3816_v51, %v3774_v63  ;;  %v2196_v58 = vpop.xlane.xlu0 %2195  ;;  %2534 = vmatpush.msra.mxu2 %v2449_v45  ;;  %vm2070_vm11 = vweird.f32 %v3816_v51  ;;  %v2292_v18 = vmul.f32 %v3872_v23, %v3872_v23 }
 0x42b   : > { %2906 = vrsqrt.f32 %v3820_v42  ;;  %v3832_v26 = vmul.f32 %v2196_v58, %v3626_v41  ;;  %v2390_v0 = vmul.f32 %v2382_v47, %v2371_v21  ;;  %v2181_v54 = vmul.f32 %v3822_v52, %v3768_v61  ;;  %v3839_v11 = vpop.eup %2904  ;;  %vm2071_vm13 = vmor %vm2069_vm12, %vm2070_vm11 }
 0x42c   : > { %v2065_v62 = vmul.f32 %v3816_v51, %v2064_v55  ;;  %v2241_v28 = vmul.f32 %v3839_v11, %v3804_v57  ;;  %2535 = vmatpush.msra.mxu2 %v2448_v38  ;;  %v2128_v21 = vmul.f32 %v3784_v2, %v2127_v35  ;;  %v2060_v58 = vsub.f32 %v3564_v56, %v3736_v39  ;;  %v2477_v35 = vld [vmem:[#allocation14 + $0x1e8] sm:$0xff] }
 0x42d   : > { %v2205_v17 = vmul.f32 %v3832_v26, %v3832_v26  ;;  %v2403_v50 = vadd.f32 %v2395_v6, %v2390_v0  ;;  %v2182_v27 = vmul.f32 %v3822_v52, %v2181_v54  ;;  %vm2099_vm4 = vweird.f32 %v3820_v42 }
 0x42e   : > { %v2066_v10 = vmul.f32 0.5, %v2065_v62  ;;  %v2242_v43 = vmul.f32 %v3839_v11, %v2241_v28  ;;  %v2090_v39 = vsub.f32 %v3564_v56, %v3759_v49  ;;  %vm2187_vm6 = vweird.f32 %v3822_v52 }
 0x42f   : > { %v2206_v22 = vsub.f32 %v2204_v9, %v2205_v17  ;;  %v2407_v53 = vadd.f32 %v2403_v50, %v3498_v15  ;;  %v2183_v1 = vmul.f32 0.5, %v2182_v27  ;;  %v2479_v50 = vld [vmem:[#allocation14 + $0x1f8] sm:$0xff]  ;;  %vm3892_vm8 = vmor %vm2186_vm7, %vm2187_vm6  ;;  %vm2247_vm9 = vweird.f32 %v3839_v11 }
 0x430   : > { %v2067_v8 = vsub.f32 1.5, %v2066_v10  ;;  %v2243_v6 = vmul.f32 0.5, %v2242_v43  ;;  %v2383_v10 = vperm.slane %v3795_v44, 1  ;;  %2540 = vmatpush.msra.mxu3 %v2479_v50  ;;  %v2476_v43 = vld [vmem:[#allocation14 + $0x1e0] sm:$0xff]  ;;  %vm2246_vm12 = vweird.f32 %v3804_v57  ;;  %v2469_v50 = vld [vmem:[#allocation14 + $0x1a8] sm:$0xff] }
 0x431   : > { %v2907_v25 = vpop.eup %2906  ;;  %v2208_v20 = vmax.f32 %v2206_v22, 0.0  ;;  %v2411_v37 = vmax.f32 %v2407_v53, 0.0  ;;  %v2184_v63 = vsub.f32 1.5, %v2183_v1  ;;  %v2478_v53 = vld [vmem:[#allocation14 + $0x1f0] sm:$0xff] }
 0x432   : > { %v2094_v24 = vmul.f32 %v2907_v25, %v3820_v42  ;;  %v3846_v33 = vpop.xlane.xlu0 %2312  ;;  %v2068_v36 = vmul.f32 %v3816_v51, %v2067_v8  ;;  %vm2100_vm15 = vweird.f32 %v2907_v25  ;;  %v2343_v42 = vpop.xlane.xlu1 %2342  ;;  %v2244_v8 = vsub.f32 1.5, %v2243_v6  ;;  %2541 = vmatpush.msra.mxu3 %v2478_v53  ;;  %v2466_v53 = vld [vmem:[#allocation14 + $0x190] sm:$0xff] }
 0x433   : > { %v3850_v15 = vadd.f32 1e-05, %v2208_v20  ;;  %2496 = vmatmul.f32.vlgmr.msra.gmra.mxu0 %v2411_v37  ;;  %vm2101_vm5 = vmor %vm2099_vm4, %vm2100_vm15  ;;  %v2185_v17 = vmul.f32 %v3822_v52, %v2184_v63  ;;  %v3887_v22 = vmul.f32 %v2343_v42, %v3626_v41  ;;  %v2475_v63 = vld [vmem:[#allocation14 + $0x1d8] sm:$0xff]  ;;  %v2207_v6 = vsub.f32 %v3575_v3, %v3832_v26  ;;  %v2473_v42 = vld [vmem:[#allocation14 + $0x1c8] sm:$0xff] }
 0x434   : > { %v2095_v47 = vmul.f32 %v2907_v25, %v2094_v24  ;;  %v2072_v55 = vsel %vm2071_vm13, %v3816_v51, %v2068_v36  ;;  %v2132_v51 = vsel %vm3861_vm3, %v3784_v2, %v2128_v21  ;;  %v2177_v36 = vsub.f32 %v3575_v3, %v3725_v14  ;;  %2542 = vmatpush.msra.mxu3 %v2477_v35  ;;  %vm3909_vm13 = vmor %vm2246_vm12, %vm2247_vm9 }
 0x435   : > { %2908 = vrsqrt.f32 %v3850_v15  ;;  %v2073_v30 = vmul.f32 %v2072_v55, %v2060_v58  ;;  %v2133_v19 = vmul.f32 %v2132_v51, %v2120_v5  ;;  %v2189_v28 = vsel %vm3892_vm8, %v3822_v52, %v2185_v17 }
 0x436   : > { %v2096_v48 = vmul.f32 0.5, %v2095_v47  ;;  %v2245_v37 = vmul.f32 %v3839_v11, %v2244_v8  ;;  %v2352_v47 = vmul.f32 %v3887_v22, %v3887_v22  ;;  %2543 = vmatpush.msra.mxu3 %v2476_v43  ;;  %vm2216_vm14 = vweird.f32 %v3850_v15 }
 0x437   : > { %v2372_v56 = vsel %vm1892_vm1, %v3650_v34, %v2073_v30  ;;  %v2396_v34 = vperm.slane %v3813_v40, 1  ;;  %v2237_v30 = vsub.f32 %v3575_v3, %v3739_v7  ;;  %v2472_v7 = vld [vmem:[#allocation14 + $0x1c0] sm:$0xff]  ;;  %v2314_v8 = vmul.f32 %v3846_v33, %v3626_v41 }
 0x438   : > { %v2097_v59 = vsub.f32 1.5, %v2096_v48  ;;  %v2190_v48 = vmul.f32 %v2189_v28, %v2177_v36  ;;  %v2249_v60 = vsel %vm3909_vm13, %v3839_v11, %v2245_v37  ;;  %2544 = vmatpush.msra.mxu3 %v2475_v63  ;;  %v2465_v28 = vld [vmem:[#allocation14 + $0x188] sm:$0xff] }
 0x439   : > { %v2250_v5 = vmul.f32 %v2249_v60, %v2237_v30  ;;  %v2322_v45 = vmul.f32 %v2314_v8, %v2314_v8 }
 0x43a   : > { %v2098_v62 = vmul.f32 %v2907_v25, %v2097_v59  ;;  %v2290_v0 = vpop.xlane.xlu0 %2289  ;;  %v2375_v11 = vsel %vm1892_vm1, %v3665_v4, %v2190_v48  ;;  %v2470_v4 = vld [vmem:[#allocation14 + $0x1b0] sm:$0xff] }
 0x43b   : > { %v2909_v54 = vpop.eup %2908  ;;  %v2291_v49 = vmul.f32 %v2290_v0, %v3626_v41 }
 0x43c   : > { %v2102_v9 = vsel %vm2101_vm5, %v2907_v25, %v2098_v62  ;;  %v2211_v12 = vmul.f32 %v2909_v54, %v3850_v15  ;;  %vm2217_vm11 = vweird.f32 %v2909_v54  ;;  %v2474_v15 = vld [vmem:[#allocation14 + $0x1d0] sm:$0xff] }
 0x43d   : > { %v2103_v2 = vmul.f32 %v2102_v9, %v2090_v39  ;;  %v2293_v24 = vsub.f32 %v2291_v49, %v2292_v18  ;;  %vm2218_vm15 = vmor %vm2216_vm14, %vm2217_vm11  ;;  %v2384_v39 = vperm.slane %v3795_v44, 2  ;;  %2545 = vmatpush.msra.mxu3 %v2474_v15 }
 0x43e   : > { %v2212_v25 = vmul.f32 %v2909_v54, %v2211_v12 }
 0x43f   : > { %v2373_v27 = vsel %vm526_vm0, %v2372_v56, %v2103_v2  ;;  %v2295_v58 = vmax.f32 %v2293_v24, 0.0  ;;  %2546 = vmatpush.msra.mxu3 %v2473_v42  ;;  %v2471_v2 = vld [vmem:[#allocation14 + $0x1b8] sm:$0xff]  ;;  %v2464_v24 = vld [vmem:[#allocation14 + $0x180] sm:$0xff] }
 0x440   : > { %v2374_v61 = vsel %vm2370_vm10, %v2373_v27, %v2133_v19  ;;  %v2213_v29 = vmul.f32 0.5, %v2212_v25  ;;  %v2468_v19 = vld [vmem:[#allocation14 + $0x1a0] sm:$0xff]  ;;  %v2467_v25 = vld [vmem:[#allocation14 + $0x198] sm:$0xff] }
 0x441   : > { %v2391_v20 = vmul.f32 %v2383_v10, %v2374_v61  ;;  %v2296_v26 = vadd.f32 1e-05, %v2295_v58  ;;  %v2397_v10 = vperm.slane %v3813_v40, 2  ;;  %2547 = vmatpush.msra.mxu3 %v2472_v7 }
 0x442   : > { %v2350_v38 = vpop.xlane.xlu0 %2349  ;;  %v2214_v1 = vsub.f32 1.5, %v2213_v29 }
 0x443   : > { %v2351_v52 = vmul.f32 %v2350_v38, %v3626_v41  ;;  %v2404_v21 = vadd.f32 %v2396_v34, %v2391_v20  ;;  %2910 = vrsqrt.f32 %v2296_v26  ;;  %2548 = vmatpush.msra.mxu3 %v2471_v2  ;;  %vm2303_vm3 = vweird.f32 %v2296_v26 }
 0x444   : > { %v2215_v55 = vmul.f32 %v2909_v54, %v2214_v1 }
 0x445   : > { %v2353_v59 = vsub.f32 %v2351_v52, %v2352_v47  ;;  %v2408_v57 = vadd.f32 %v2404_v21, %v3500_v16  ;;  %2549 = vmatpush.msra.mxu3 %v2470_v4 }
 0x446   : > { %v2219_v62 = vsel %vm2218_vm15, %v2909_v54, %v2215_v55 }
 0x447   : > { %v2220_v0 = vmul.f32 %v2219_v62, %v2207_v6  ;;  %v2412_v51 = vmax.f32 %v2408_v57, 0.0  ;;  %v2355_v9 = vmax.f32 %v2353_v59, 0.0  ;;  %2550 = vmatpush.msra.mxu3 %v2469_v50  ;;  %v2294_v59 = vsub.f32 %v3587_v13, %v3872_v23 }
 0x448   : > { %v2324_v57 = vsub.f32 %v3587_v13, %v2314_v8  ;;  %v2354_v62 = vsub.f32 %v3587_v13, %v3887_v22 }
 0x449   : > { %v2376_v16 = vsel %vm526_vm0, %v2375_v11, %v2220_v0  ;;  %2516 = vmatmul.f32.vlgmr.msra.gmra.mxu1 %v2412_v51  ;;  %v2356_v17 = vadd.f32 1e-05, %v2355_v9  ;;  %v2911_v18 = vpop.eup %2910  ;;  %2551 = vmatpush.msra.mxu3 %v2468_v19  ;;  %v2385_v51 = vperm.slane %v3795_v44, 3  ;;  %v2398_v11 = vperm.slane %v3813_v40, 3 }
 0x44a   : > { %v2377_v3 = vsel %vm2370_vm10, %v2376_v16, %v2250_v5  ;;  %v2298_v61 = vmul.f32 %v2911_v18, %v2296_v26  ;;  %vm2304_vm2 = vweird.f32 %v2911_v18  ;;  %v2415_v16 = vld [vmem:[#allocation7 + $0x5] ss:$0 sm:$0xff] }
 0x44b   : > { %v2392_v54 = vmul.f32 %v2384_v39, %v2377_v3  ;;  %2912 = vrsqrt.f32 %v2356_v17  ;;  %2552 = vmatpush.msra.mxu3 %v2467_v25  ;;  %vm2305_vm4 = vmor %vm2303_vm3, %vm2304_vm2  ;;  %vm2363_vm7 = vweird.f32 %v2356_v17 }
 0x44c   : > { %v2299_v20 = vmul.f32 %v2911_v18, %v2298_v61 }
 0x44d   : > { %v2405_v12 = vadd.f32 %v2397_v10, %v2392_v54  ;;  %2553 = vmatpush.msra.mxu3 %v2466_v53 }
 0x44e   : > { %v2300_v37 = vmul.f32 0.5, %v2299_v20 }
 0x44f   : > { %v2409_v49 = vadd.f32 %v2405_v12, %v3504_v31  ;;  %2554 = vmatpush.msra.mxu3 %v2465_v28 }
 0x450   : > { %v2301_v47 = vsub.f32 1.5, %v2300_v37 }
 0x451   : > { %v2413_v56 = vmax.f32 %v2409_v49, 0.0  ;;  %v2913_v31 = vpop.eup %2912  ;;  %2555 = vmatpush.msra.mxu3 %v2464_v24 }
 0x452   : > { %v2358_v33 = vmul.f32 %v2913_v31, %v2356_v17  ;;  %vm2364_vm5 = vweird.f32 %v2913_v31 }
 0x453   : > { %2536 = vmatmul.f32.vlgmr.msra.gmra.mxu2 %v2413_v56  ;;  %vm2365_vm8 = vmor %vm2363_vm7, %vm2364_vm5 }
 0x454   : > { %v2320_v27 = vpop.xlane.xlu2 %2319  ;;  %v2359_v38 = vmul.f32 %v2913_v31, %v2358_v33 }
 0x455   : > { %v2321_v34 = vmul.f32 %v2320_v27, %v3626_v41  ;;  %v2302_v41 = vmul.f32 %v2911_v18, %v2301_v47 }
 0x456   : > { %v2360_v1 = vmul.f32 0.5, %v2359_v38 }
 0x457   : > { %v2323_v29 = vsub.f32 %v2321_v34, %v2322_v45  ;;  %v2306_v55 = vsel %vm2305_vm4, %v2911_v18, %v2302_v41 }
 0x458   : > { %v2361_v48 = vsub.f32 1.5, %v2360_v1  ;;  %v2307_v60 = vmul.f32 %v2306_v55, %v2294_v59 }
 0x459   : > { %v2325_v35 = vmax.f32 %v2323_v29, 0.0 }
 0x45a   : > { %v2362_v58 = vmul.f32 %v2913_v31, %v2361_v48  ;;  %v2378_v23 = vsel %vm1892_vm1, %v3681_v46, %v2307_v60 }
 0x45b   : > { %v2326_v36 = vadd.f32 1e-05, %v2325_v35 }
 0x45c   : > { %v2366_v30 = vsel %vm2365_vm8, %v2913_v31, %v2362_v58 }
 0x45d   : > { %2914 = vrsqrt.f32 %v2326_v36  ;;  %vm2333_vm9 = vweird.f32 %v2326_v36  ;;  %v2367_v39 = vmul.f32 %v2366_v30, %v2354_v62 }
 0x463   : > { %v2915_v52 = vpop.eup %2914 }
 0x464   : > { %v2328_v43 = vmul.f32 %v2915_v52, %v2326_v36  ;;  %vm2334_vm6 = vweird.f32 %v2915_v52 }
 0x465   : > { %vm2335_vm11 = vmor %vm2333_vm9, %vm2334_vm6 }
 0x466   : > { %v2329_v21 = vmul.f32 %v2915_v52, %v2328_v43 }
 0x468   : > { %v2330_v14 = vmul.f32 0.5, %v2329_v21 }
 0x46a   : > { %v2331_v63 = vsub.f32 1.5, %v2330_v14 }
 0x46c   : > { %v2332_v6 = vmul.f32 %v2915_v52, %v2331_v63 }
 0x46e   : > { %v2336_v15 = vsel %vm2335_vm11, %v2915_v52, %v2332_v6 }
 0x46f   : > { %v2337_v0 = vmul.f32 %v2336_v15, %v2324_v57 }
 0x471   : > { %v2379_v5 = vsel %vm526_vm0, %v2378_v23, %v2337_v0 }
 0x472   : > { %v2380_v26 = vsel %vm2370_vm10, %v2379_v5, %v2367_v39 }
 0x473   : > { %v2393_v9 = vmul.f32 %v2385_v51, %v2380_v26 }
 0x475   : > { %v2406_v42 = vadd.f32 %v2398_v11, %v2393_v9 }
 0x477   : > { %v2410_v13 = vadd.f32 %v2406_v42, %v3506_v32 }
 0x479   : > { %v2414_v22 = vmax.f32 %v2410_v13, 0.0 }
 0x47b   : > { %2556 = vmatmul.f32.vlgmr.msra.gmra.mxu3 %v2414_v22 }
 0x4b0   : > { %v2497_v10 = vpop.f32.mrf.mxu0 }
 0x4b1   : > { %v2498_v46 = vadd.f32 %v2497_v10, %v2415_v16 }
 0x4c6   : > { %v2517_v44 = vpop.f32.mrf.mxu1 }
 0x4c7   : > { %v2518_v40 = vadd.f32 %v2517_v44, %v2498_v46 }
 0x4d6   : > { %v2537_v3 = vpop.f32.mrf.mxu2 }
 0x4d7   : > { %v2538_v7 = vadd.f32 %v2537_v3, %v2518_v40 }
 0x4fe   : > { %v2557_v32 = vpop.f32.mrf.mxu3 }
 0x4ff   : > { %v2558_v54 = vadd.f32 %v2557_v32, %v2538_v7 }
 0x501   : > { %2560 = vst [vmem:[%s458_s17] sm:$0xff] %v2558_v54 }
 0x502   : > { %3183 = shalt.err (!%p3180_p10)
}
 0x503   : > { %2790 = dma.vmem_to_hbm [thread:$0]  (%p3400_p5), %s2575_s14, 128, %s2577_s16, %s2562_s11  }
 0x504 PF: > { %s2588_s4 = sand.u32 1, %s3230_s27   ;;  %p4018_p11 = scmp.ge.s32.totalorder %s3242_s30, 2 }
 0x505   : > { %s2589_s13 = scalar_lea.sflag [#allocation4], %s2588_s4 }
 0x506   : > { %p2819_p4 = pnand %p4018_p11, %p3404_p6 }
 0x508   : > { %p2820_p13 = pneg %p2819_p4 }
 0x50a   : > { %3225 = dma.done.wait (%p2820_p13), %s2589_s13, 128  }
 0x50b   : > { %3227 = vsyncadd (%p2820_p13), %s2589_s13, 4294967168  ;;  %s4019_s15 = sld [smem:[#allocation24_spill]]  ;;  %p27_p0 = scmp.ge.s32.totalorder %s3374_s20, 4  }
 0x50c   : > { %s4020_s27 = smov %s3234_s28  ;;  %s4021_s28 = smov %s3238_s29 }
 0x50d   : > { %s4023_s30 = smov %s3374_s20  ;;  %29 = sbr.rel (!%p27_p0) target bundleno = 17 (0x11), region = 138 }
 0x511   : > { %s4022_s29 = smov %s4019_s15 }
 0x512   :  { %2595 = vsyncpa [#allocation3], 1 }
 0x513   :  { %2597 = vsyncpa [#allocation3 + $0x1], 1 }
 0x514   :  { %2598 = vsyncpa [#allocation6], 1 }
 0x515   :  { %2600 = vsyncpa [#allocation6 + $0x1], 1 }
 0x516   :  { %2601 = vsyncpa [#allocation9], 1 }
 0x517   :  { %2602 = vsyncpa [#allocation12], 1 }
 0x518   :  { %2603 = vsyncpa [#allocation15], 1 }
 0x519   :  { %2604 = vsyncpa [#allocation4], 1 }
 0x51a   :  { %2606 = vsyncpa [#allocation4 + $0x1], 1 }

</bundles_post_ra>
